<compile_context>
chip_gen: v7x
topology: tpu7x:2x2x1
jax: 0.10.0
libtpu: 0.0.40
codegen_flags: <defaults>
</compile_context>

<pallas_src>
import functools

import jax
import jax.numpy as jnp
from jax.experimental import pallas as pl
from jax.experimental.pallas import tpu as pltpu

NUM_CLASSES = 2
PAD_CLASSES = 128            # lane-dense classifier output (sliced to 2 outside)
VMEM_LIMIT = 32 * 1024 * 1024  # explicit, safe on v5e/v6e (128 MiB) and v7x (64 MiB)
NEG_INIT = -1e30             # finite init for the running max (avoids inf-inf NaN)


def _round_up(x, m):
    return ((x + m - 1) // m) * m


def _pick_block(n_pad, target):
    """Largest multiple of 128 <= target that divides n_pad (n_pad % 128 == 0)."""
    b = min(target, n_pad)
    b = (b // 128) * 128
    while n_pad % b != 0:
        b -= 128
    return max(b, 128)


# ---------------------------------------------------------------------------
# Kernel A: per-row-block linear transform + attention scores.
#   h      = x @ W                      (bf16 MXU operands, f32 accumulate)
#   s_dst  = sum_f h * a_dst            [tq, 1]
#   s_src  = sum_f h * a_src            [tq, 1]
# ---------------------------------------------------------------------------
def _proj_scores_kernel(x_ref, w_ref, a_dst_ref, a_src_ref,
                        h_ref, sd_ref, ss_ref):
    x = x_ref[...].astype(jnp.bfloat16)
    w = w_ref[...].astype(jnp.bfloat16)
    h = jnp.dot(x, w, preferred_element_type=jnp.float32)          # [tq, H] f32

    # Broadcast-multiply + lane reduce instead of two 1-wide matmuls.
    sd_ref[...] = jnp.sum(h * a_dst_ref[...], axis=-1, keepdims=True)
    ss_ref[...] = jnp.sum(h * a_src_ref[...], axis=-1, keepdims=True)
    h_ref[...] = h.astype(jnp.bfloat16)


# ---------------------------------------------------------------------------
# Kernel B: flash-style masked edge softmax + neighbor aggregation.
#   e_ij  = LeakyReLU_{0.2}(s_dst_i + s_src_j)   for edges j -> i (mask > 0)
#   out_i = (sum_j softmax_j(e_ij) * h_j) + bias  [+ ReLU]
# Online softmax across key blocks; normalization deferred past the matmul.
# ---------------------------------------------------------------------------
def _gat_attn_kernel(sd_ref, sst_ref, mask_ref, h_ref, b_ref, out_ref,
                     m_sc, l_sc, acc_sc, *, apply_relu):
    k = pl.program_id(1)

    @pl.when(k == 0)
    def _():
        m_sc[...] = jnp.full_like(m_sc, NEG_INIT)
        l_sc[...] = jnp.zeros_like(l_sc)
        acc_sc[...] = jnp.zeros_like(acc_sc)

    e = sd_ref[...] + sst_ref[...]                          # [tq, tk] f32
    # Two selects total: LeakyReLU + mask fill (-inf underflows to 0 in exp).
    e = jnp.where(mask_ref[...] > 0,
                  jnp.where(e > 0, e, 0.2 * e),
                  -jnp.inf)

    m_prev = m_sc[...]
    m_new = jnp.maximum(m_prev, jnp.max(e, axis=-1, keepdims=True))
    a = jnp.exp(m_prev - m_new)                             # rescale factor
    p = jnp.exp(e - m_new)                                  # masked -> 0

    l_sc[...] = a * l_sc[...] + jnp.sum(p, axis=-1, keepdims=True)
    acc_sc[...] = a * acc_sc[...] + jnp.dot(
        p.astype(jnp.bfloat16), h_ref[...],
        preferred_element_type=jnp.float32)
    m_sc[...] = m_new

    @pl.when(k == pl.num_programs(1) - 1)
    def _():
        denom = jnp.maximum(l_sc[...], 1e-30)   # self-loops keep this > 0
        out = acc_sc[...] * pl.reciprocal(denom, approx=True) + b_ref[...]
        if apply_relu:
            out = jnp.maximum(out, 0.0)
        out_ref[...] = out


def gat_layer(x, w, a_dst, a_src, bias, mask, *, apply_relu, block_q, block_k):
    n, f_in = x.shape
    hdim = w.shape[1]
    nqb = n // block_q
    nkb = n // block_k

    # --- projection + scores (row tiled) -----------------------------------
    h, sd, ss = pl.pallas_call(
        _proj_scores_kernel,
        grid=(nqb,),
        in_specs=[
            pl.BlockSpec((block_q, f_in), lambda i: (i, 0)),
            pl.BlockSpec((f_in, hdim), lambda i: (0, 0)),
            pl.BlockSpec((1, hdim), lambda i: (0, 0)),
            pl.BlockSpec((1, hdim), lambda i: (0, 0)),
        ],
        out_specs=[
            pl.BlockSpec((block_q, hdim), lambda i: (i, 0)),
            pl.BlockSpec((block_q, 1), lambda i: (i, 0)),
            pl.BlockSpec((block_q, 1), lambda i: (i, 0)),
        ],
        out_shape=[
            jax.ShapeDtypeStruct((n, hdim), jnp.bfloat16),
            jax.ShapeDtypeStruct((n, 1), jnp.float32),
            jax.ShapeDtypeStruct((n, 1), jnp.float32),
        ],
        compiler_params=pltpu.CompilerParams(
            dimension_semantics=("parallel",),
            vmem_limit_bytes=VMEM_LIMIT),
    )(x, w, a_dst, a_src)

    # One-time [N,1] -> [1,N] layout change in the wrapper so the tiled inner
    # loop never transposes source scores.
    sst = ss.T

    # --- masked softmax + aggregation (flash-style tiling) ------------------
    kernel = functools.partial(_gat_attn_kernel, apply_relu=apply_relu)
    out = pl.pallas_call(
        kernel,
        grid=(nqb, nkb),
        in_specs=[
            pl.BlockSpec((block_q, 1), lambda i, k: (i, 0)),        # s_dst
            pl.BlockSpec((1, block_k), lambda i, k: (0, k)),        # s_src^T
            pl.BlockSpec((block_q, block_k), lambda i, k: (i, k)),  # mask (bf16)
            pl.BlockSpec((block_k, hdim), lambda i, k: (k, 0)),     # h (keys/vals)
            pl.BlockSpec((1, hdim), lambda i, k: (0, 0)),           # bias
        ],
        out_specs=pl.BlockSpec((block_q, hdim), lambda i, k: (i, 0)),
        out_shape=jax.ShapeDtypeStruct((n, hdim), jnp.float32),
        scratch_shapes=[
            pltpu.VMEM((block_q, 1), jnp.float32),    # running max
            pltpu.VMEM((block_q, 1), jnp.float32),    # running denom
            pltpu.VMEM((block_q, hdim), jnp.float32),  # accumulator
        ],
        compiler_params=pltpu.CompilerParams(
            dimension_semantics=("parallel", "arbitrary"),
            vmem_limit_bytes=VMEM_LIMIT),
    )(sd, sst, mask, h, bias)
    return out


# ---------------------------------------------------------------------------
# Kernel C: global_add_pool + final Linear, tiled over nodes, lane-dense output.
#   pooled = pmat @ x            [B, H]   (accumulated over node blocks)
#   out    = pooled @ W_pad + b  [B, 128] (sliced to num_classes outside)
# ---------------------------------------------------------------------------
def _pool_linear_kernel(pmat_ref, x_ref, w_ref, b_ref, out_ref, acc_ref):
    k = pl.program_id(0)

    @pl.when(k == 0)
    def _():
        acc_ref[...] = jnp.zeros_like(acc_ref)

    acc_ref[...] += jnp.dot(pmat_ref[...].astype(jnp.bfloat16),
                            x_ref[...].astype(jnp.bfloat16),
                            preferred_element_type=jnp.float32)

    @pl.when(k == pl.num_programs(0) - 1)
    def _():
        out_ref[...] = jnp.dot(acc_ref[...].astype(jnp.bfloat16),
                               w_ref[...].astype(jnp.bfloat16),
                               preferred_element_type=jnp.float32) + b_ref[...]


def pool_linear(pmat, x, w_pad, b_pad, *, block_k):
    bsz, n = pmat.shape
    hdim = x.shape[1]
    c_pad = w_pad.shape[1]
    nkb = n // block_k
    return pl.pallas_call(
        _pool_linear_kernel,
        grid=(nkb,),
        in_specs=[
            pl.BlockSpec((bsz, block_k), lambda k: (0, k)),
            pl.BlockSpec((block_k, hdim), lambda k: (k, 0)),
            pl.BlockSpec((hdim, c_pad), lambda k: (0, 0)),
            pl.BlockSpec((1, c_pad), lambda k: (0, 0)),
        ],
        out_specs=pl.BlockSpec((bsz, c_pad), lambda k: (0, 0)),
        out_shape=jax.ShapeDtypeStruct((bsz, c_pad), jnp.float32),
        scratch_shapes=[pltpu.VMEM((bsz, hdim), jnp.float32)],
        compiler_params=pltpu.CompilerParams(
            dimension_semantics=("arbitrary",),
            vmem_limit_bytes=VMEM_LIMIT),
    )(pmat, x, w_pad, b_pad)


# ---------------------------------------------------------------------------
# Graph preprocessing (hoisted out of the forward; build once per static graph).
# ---------------------------------------------------------------------------
def prepare_graph(x, edge_index, batch, num_graphs, *, block_q=256, block_k=512):
    n, f = x.shape
    n_pad = _round_up(n, 128)
    bq = _pick_block(n_pad, block_q)
    bk = _pick_block(n_pad, block_k)

    x_pad = jnp.zeros((n_pad, f), x.dtype).at[:n, :].set(x)

    # Dense adjacency mask (edge j -> i) + self loops, in compact bf16.
    src, dst = edge_index[0], edge_index[1]
    mask = jnp.zeros((n_pad, n_pad), jnp.bfloat16)
    mask = mask.at[dst, src].set(1.0)
    idx = jnp.arange(n_pad)
    mask = mask.at[idx, idx].set(1.0)   # incl. pad rows -> non-degenerate softmax

    # One-hot pooling matrix; pad nodes get batch=-1 so they contribute nothing.
    batch_pad = jnp.concatenate(
        [batch, jnp.full((n_pad - n,), -1, batch.dtype)])
    pmat = (batch_pad[None, :] == jnp.arange(num_graphs)[:, None]).astype(
        jnp.float32)

    return x_pad, mask, pmat, bq, bk


def gcn_forward(params, x_pad, mask, pmat, *, block_q, block_k):
    hdim = params["w1"].shape[1]

    h = gat_layer(x_pad, params["w1"], params["a_dst1"], params["a_src1"],
                  params["b1"], mask, apply_relu=True,
                  block_q=block_q, block_k=block_k)
    h = gat_layer(h, params["w2"], params["a_dst2"], params["a_src2"],
                  params["b2"], mask, apply_relu=False,
                  block_q=block_q, block_k=block_k)
    # F.dropout(p=0.6) is identity in eval mode.

    # Lane-dense classifier weights (padded to 128 output columns).
    c = params["w_lin"].shape[1]
    w_pad = jnp.zeros((hdim, PAD_CLASSES), jnp.float32).at[:, :c].set(
        params["w_lin"])
    b_pad = jnp.zeros((1, PAD_CLASSES), jnp.float32).at[:, :c].set(
        params["b_lin"])

    logits = pool_linear(pmat, h, w_pad, b_pad, block_k=block_k)
    return logits[:, :NUM_CLASSES]


def init_params(key, in_dim, hidden, num_classes):
    ks = jax.random.split(key, 8)
    s = 0.1
    return {
        "w1": s * jax.random.normal(ks[0], (in_dim, hidden), jnp.float32),
        "a_dst1": s * jax.random.normal(ks[1], (1, hidden), jnp.float32),
        "a_src1": s * jax.random.normal(ks[2], (1, hidden), jnp.float32),
        "b1": jnp.zeros((1, hidden), jnp.float32),
        "w2": s * jax.random.normal(ks[3], (hidden, hidden), jnp.float32),
        "a_dst2": s * jax.random.normal(ks[4], (1, hidden), jnp.float32),
        "a_src2": s * jax.random.normal(ks[5], (1, hidden), jnp.float32),
        "b2": jnp.zeros((1, hidden), jnp.float32),
        "w_lin": s * jax.random.normal(ks[6], (hidden, num_classes), jnp.float32),
        "b_lin": jnp.zeros((1, num_classes), jnp.float32),
    }


if __name__ == "__main__":
    key = jax.random.PRNGKey(0)
    k_x, k_p = jax.random.split(key)

    # Small problem: 2 graphs of 128 nodes each, hidden/feature dim 128
    # (the module default hidden_channels=128 keeps the feature axis lane-dense).
    num_graphs = 2
    nodes_per_graph = 128
    n = num_graphs * nodes_per_graph
    hidden = 128

    x = jax.random.normal(k_x, (n, hidden), jnp.float32)

    # Ring edges within each graph (both directions).
    srcs, dsts = [], []
    for g in range(num_graphs):
        base = g * nodes_per_graph
        for i in range(nodes_per_graph):
            a = base + i
            b = base + (i + 1) % nodes_per_graph
            srcs += [a, b]
            dsts += [b, a]
    edge_index = jnp.array([srcs, dsts], dtype=jnp.int32)
    edge_attr = jnp.zeros((edge_index.shape[1], 4), jnp.float32)  # unused
    batch = jnp.repeat(jnp.arange(num_graphs, dtype=jnp.int32), nodes_per_graph)

    params = init_params(k_p, hidden, hidden, NUM_CLASSES)

    # Small tiles here so the demo actually exercises multi-block online
    # softmax; at scale use e.g. block_q=256, block_k=512 (fits v7x 64 MiB VMEM).
    x_pad, mask, pmat, bq, bk = prepare_graph(
        x, edge_index, batch, num_graphs, block_q=128, block_k=128)

    fwd = jax.jit(functools.partial(gcn_forward, block_q=bq, block_k=bk))
    out = fwd(params, x_pad, mask, pmat)
    out = jax.block_until_ready(out)

    assert out.shape == (num_graphs, NUM_CLASSES)
    assert bool(jnp.all(jnp.isfinite(out)))
    print("KERNEL_OK")
</pallas_src>

<mosaic_0001>
module attributes {stable_mosaic.version = 11 : i64} {
  func.func @_proj_scores_kernel(%arg0: i32, %arg1: memref<128x128xf32, #tpu.memory_space<vmem>>, %arg2: memref<128x128xf32, #tpu.memory_space<vmem>>, %arg3: memref<1x128xf32, #tpu.memory_space<vmem>>, %arg4: memref<1x128xf32, #tpu.memory_space<vmem>>, %arg5: memref<128x128xbf16, #tpu.memory_space<vmem>>, %arg6: memref<128x1xf32, #tpu.memory_space<vmem>>, %arg7: memref<128x1xf32, #tpu.memory_space<vmem>>) attributes {dimension_semantics = [#tpu.dimension_semantics<parallel>], iteration_bounds = array<i64: 2>, scalar_prefetch = 0 : i64, scratch_operands = 0 : i64, tpu.core_type = #tpu.core_type<tc>, window_params = [{transform_indices = @transform_0, window_bounds = array<i64: 128, 128>}, {pipeline_mode = #tpu.pipeline_mode<synchronous>, transform_indices = @transform_1, window_bounds = array<i64: 128, 128>}, {pipeline_mode = #tpu.pipeline_mode<synchronous>, transform_indices = @transform_2, window_bounds = array<i64: 1, 128>}, {pipeline_mode = #tpu.pipeline_mode<synchronous>, transform_indices = @transform_3, window_bounds = array<i64: 1, 128>}, {transform_indices = @transform_4, window_bounds = array<i64: 128, 128>}, {transform_indices = @transform_5, window_bounds = array<i64: 128, 1>}, {transform_indices = @transform_6, window_bounds = array<i64: 128, 1>}]} {
    %c0 = arith.constant 0 : index
    %c0_0 = arith.constant 0 : index
    %0 = vector.load %arg1[%c0, %c0_0] : memref<128x128xf32, #tpu.memory_space<vmem>>, vector<128x128xf32>
    %1 = arith.truncf %0 : vector<128x128xf32> to vector<128x128xbf16>
    %c0_1 = arith.constant 0 : index
    %c0_2 = arith.constant 0 : index
    %2 = vector.load %arg2[%c0_1, %c0_2] : memref<128x128xf32, #tpu.memory_space<vmem>>, vector<128x128xf32>
    %3 = arith.truncf %2 : vector<128x128xf32> to vector<128x128xbf16>
    %cst = arith.constant dense<0.000000e+00> : vector<128x128xf32>
    %4 = tpu.matmul %1, %3, %cst {dimension_numbers = #tpu.dot_dimension_numbers<[1], [0], [0], [1], [0, 0, 1, 1], [], []>} : vector<128x128xbf16>, vector<128x128xbf16>, vector<128x128xf32> -> vector<128x128xf32>
    %c0_3 = arith.constant 0 : index
    %c0_4 = arith.constant 0 : index
    %5 = vector.load %arg3[%c0_3, %c0_4] : memref<1x128xf32, #tpu.memory_space<vmem>>, vector<1x128xf32>
    %6 = vector.broadcast %5 : vector<1x128xf32> to vector<128x128xf32>
    %7 = arith.mulf %4, %6 : vector<128x128xf32>
    %cst_5 = arith.constant dense<0.000000e+00> : vector<128xf32>
    %8 = vector.multi_reduction <add>, %7, %cst_5 [1] : vector<128x128xf32> to vector<128xf32>
    %9 = vector.shape_cast %8 : vector<128xf32> to vector<128x1xf32>
    %c0_6 = arith.constant 0 : index
    %c0_7 = arith.constant 0 : index
    %10 = vector.load %arg6[%c0_6, %c0_7] : memref<128x1xf32, #tpu.memory_space<vmem>>, vector<128x1xf32>
    tpu.vector_store %arg6[%c0_6, %c0_7], %9 {strides = array<i32>} : memref<128x1xf32, #tpu.memory_space<vmem>>, vector<128x1xf32>,
    %c0_8 = arith.constant 0 : index
    %c0_9 = arith.constant 0 : index
    %11 = vector.load %arg4[%c0_8, %c0_9] : memref<1x128xf32, #tpu.memory_space<vmem>>, vector<1x128xf32>
    %12 = vector.broadcast %11 : vector<1x128xf32> to vector<128x128xf32>
    %13 = arith.mulf %4, %12 : vector<128x128xf32>
    %cst_10 = arith.constant dense<0.000000e+00> : vector<128xf32>
    %14 = vector.multi_reduction <add>, %13, %cst_10 [1] : vector<128x128xf32> to vector<128xf32>
    %15 = vector.shape_cast %14 : vector<128xf32> to vector<128x1xf32>
    %c0_11 = arith.constant 0 : index
    %c0_12 = arith.constant 0 : index
    %16 = vector.load %arg7[%c0_11, %c0_12] : memref<128x1xf32, #tpu.memory_space<vmem>>, vector<128x1xf32>
    tpu.vector_store %arg7[%c0_11, %c0_12], %15 {strides = array<i32>} : memref<128x1xf32, #tpu.memory_space<vmem>>, vector<128x1xf32>,
    %17 = arith.truncf %4 : vector<128x128xf32> to vector<128x128xbf16>
    %c0_13 = arith.constant 0 : index
    %c0_14 = arith.constant 0 : index
    %18 = vector.load %arg5[%c0_13, %c0_14] : memref<128x128xbf16, #tpu.memory_space<vmem>>, vector<128x128xbf16>
    tpu.vector_store %arg5[%c0_13, %c0_14], %17 {strides = array<i32>} : memref<128x128xbf16, #tpu.memory_space<vmem>>, vector<128x128xbf16>,
    return
  }
  func.func @transform_0(%arg0: i32) -> (i32, i32) {
    %c0_i32 = arith.constant 0 : i32
    %c0_i32_0 = arith.constant 0 : i32
    return %arg0, %c0_i32 : i32, i32
  }
  func.func @transform_1(%arg0: i32) -> (i32, i32) {
    %c0_i32 = arith.constant 0 : i32
    %c0_i32_0 = arith.constant 0 : i32
    %c0_i32_1 = arith.constant 0 : i32
    return %c0_i32, %c0_i32_0 : i32, i32
  }
  func.func @transform_2(%arg0: i32) -> (i32, i32) {
    %c0_i32 = arith.constant 0 : i32
    %c0_i32_0 = arith.constant 0 : i32
    %c0_i32_1 = arith.constant 0 : i32
    return %c0_i32, %c0_i32_0 : i32, i32
  }
  func.func @transform_3(%arg0: i32) -> (i32, i32) {
    %c0_i32 = arith.constant 0 : i32
    %c0_i32_0 = arith.constant 0 : i32
    %c0_i32_1 = arith.constant 0 : i32
    return %c0_i32, %c0_i32_0 : i32, i32
  }
  func.func @transform_4(%arg0: i32) -> (i32, i32) {
    %c0_i32 = arith.constant 0 : i32
    %c0_i32_0 = arith.constant 0 : i32
    return %arg0, %c0_i32 : i32, i32
  }
  func.func @transform_5(%arg0: i32) -> (i32, i32) {
    %c0_i32 = arith.constant 0 : i32
    %c0_i32_0 = arith.constant 0 : i32
    return %arg0, %c0_i32 : i32, i32
  }
  func.func @transform_6(%arg0: i32) -> (i32, i32) {
    %c0_i32 = arith.constant 0 : i32
    %c0_i32_0 = arith.constant 0 : i32
    return %arg0, %c0_i32 : i32, i32
  }
}

module attributes {stable_mosaic.version = 11 : i64} {
  func.func @_proj_scores_kernel(%arg0: i32, %arg1: memref<128x128xf32, #tpu.memory_space<vmem>>, %arg2: memref<128x128xf32, #tpu.memory_space<vmem>>, %arg3: memref<1x128xf32, #tpu.memory_space<vmem>>, %arg4: memref<1x128xf32, #tpu.memory_space<vmem>>, %arg5: memref<128x128xbf16, #tpu.memory_space<vmem>>, %arg6: memref<128x1xf32, #tpu.memory_space<vmem>>, %arg7: memref<128x1xf32, #tpu.memory_space<vmem>>) attributes {dimension_semantics = [#tpu.dimension_semantics<parallel>], iteration_bounds = array<i64: 2>, scalar_prefetch = 0 : i64, scratch_operands = 0 : i64, tpu.core_type = #tpu.core_type<tc>, window_params = [{transform_indices = @transform_0, window_bounds = array<i64: 128, 128>}, {pipeline_mode = #tpu.pipeline_mode<synchronous>, transform_indices = @transform_1, window_bounds = array<i64: 128, 128>}, {pipeline_mode = #tpu.pipeline_mode<synchronous>, transform_indices = @transform_2, window_bounds = array<i64: 1, 128>}, {pipeline_mode = #tpu.pipeline_mode<synchronous>, transform_indices = @transform_3, window_bounds = array<i64: 1, 128>}, {transform_indices = @transform_4, window_bounds = array<i64: 128, 128>}, {transform_indices = @transform_5, window_bounds = array<i64: 128, 1>}, {transform_indices = @transform_6, window_bounds = array<i64: 128, 1>}]} {
    %c0 = arith.constant 0 : index
    %c0_0 = arith.constant 0 : index
    %0 = vector.load %arg1[%c0, %c0_0] : memref<128x128xf32, #tpu.memory_space<vmem>>, vector<128x128xf32>
    %1 = arith.truncf %0 : vector<128x128xf32> to vector<128x128xbf16>
    %c0_1 = arith.constant 0 : index
    %c0_2 = arith.constant 0 : index
    %2 = vector.load %arg2[%c0_1, %c0_2] : memref<128x128xf32, #tpu.memory_space<vmem>>, vector<128x128xf32>
    %3 = arith.truncf %2 : vector<128x128xf32> to vector<128x128xbf16>
    %cst = arith.constant dense<0.000000e+00> : vector<128x128xf32>
    %4 = tpu.matmul %1, %3, %cst {dimension_numbers = #tpu.dot_dimension_numbers<[1], [0], [0], [1], [0, 0, 1, 1], [], []>} : vector<128x128xbf16>, vector<128x128xbf16>, vector<128x128xf32> -> vector<128x128xf32>
    %c0_3 = arith.constant 0 : index
    %c0_4 = arith.constant 0 : index
    %5 = vector.load %arg3[%c0_3, %c0_4] : memref<1x128xf32, #tpu.memory_space<vmem>>, vector<1x128xf32>
    %6 = vector.broadcast %5 : vector<1x128xf32> to vector<128x128xf32>
    %7 = arith.mulf %4, %6 : vector<128x128xf32>
    %cst_5 = arith.constant dense<0.000000e+00> : vector<128xf32>
    %8 = vector.multi_reduction <add>, %7, %cst_5 [1] : vector<128x128xf32> to vector<128xf32>
    %9 = vector.shape_cast %8 : vector<128xf32> to vector<128x1xf32>
    %c0_6 = arith.constant 0 : index
    %c0_7 = arith.constant 0 : index
    %10 = vector.load %arg6[%c0_6, %c0_7] : memref<128x1xf32, #tpu.memory_space<vmem>>, vector<128x1xf32>
    tpu.vector_store %arg6[%c0_6, %c0_7], %9 {strides = array<i32>} : memref<128x1xf32, #tpu.memory_space<vmem>>, vector<128x1xf32>,
    %c0_8 = arith.constant 0 : index
    %c0_9 = arith.constant 0 : index
    %11 = vector.load %arg4[%c0_8, %c0_9] : memref<1x128xf32, #tpu.memory_space<vmem>>, vector<1x128xf32>
    %12 = vector.broadcast %11 : vector<1x128xf32> to vector<128x128xf32>
    %13 = arith.mulf %4, %12 : vector<128x128xf32>
    %cst_10 = arith.constant dense<0.000000e+00> : vector<128xf32>
    %14 = vector.multi_reduction <add>, %13, %cst_10 [1] : vector<128x128xf32> to vector<128xf32>
    %15 = vector.shape_cast %14 : vector<128xf32> to vector<128x1xf32>
    %c0_11 = arith.constant 0 : index
    %c0_12 = arith.constant 0 : index
    %16 = vector.load %arg7[%c0_11, %c0_12] : memref<128x1xf32, #tpu.memory_space<vmem>>, vector<128x1xf32>
    tpu.vector_store %arg7[%c0_11, %c0_12], %15 {strides = array<i32>} : memref<128x1xf32, #tpu.memory_space<vmem>>, vector<128x1xf32>,
    %17 = arith.truncf %4 : vector<128x128xf32> to vector<128x128xbf16>
    %c0_13 = arith.constant 0 : index
    %c0_14 = arith.constant 0 : index
    %18 = vector.load %arg5[%c0_13, %c0_14] : memref<128x128xbf16, #tpu.memory_space<vmem>>, vector<128x128xbf16>
    tpu.vector_store %arg5[%c0_13, %c0_14], %17 {strides = array<i32>} : memref<128x128xbf16, #tpu.memory_space<vmem>>, vector<128x128xbf16>,
    return
  }
  func.func @transform_0(%arg0: i32) -> (i32, i32) {
    %c0_i32 = arith.constant 0 : i32
    %c0_i32_0 = arith.constant 0 : i32
    return %arg0, %c0_i32 : i32, i32
  }
  func.func @transform_1(%arg0: i32) -> (i32, i32) {
    %c0_i32 = arith.constant 0 : i32
    %c0_i32_0 = arith.constant 0 : i32
    %c0_i32_1 = arith.constant 0 : i32
    return %c0_i32, %c0_i32_0 : i32, i32
  }
  func.func @transform_2(%arg0: i32) -> (i32, i32) {
    %c0_i32 = arith.constant 0 : i32
    %c0_i32_0 = arith.constant 0 : i32
    %c0_i32_1 = arith.constant 0 : i32
    return %c0_i32, %c0_i32_0 : i32, i32
  }
  func.func @transform_3(%arg0: i32) -> (i32, i32) {
    %c0_i32 = arith.constant 0 : i32
    %c0_i32_0 = arith.constant 0 : i32
    %c0_i32_1 = arith.constant 0 : i32
    return %c0_i32, %c0_i32_0 : i32, i32
  }
  func.func @transform_4(%arg0: i32) -> (i32, i32) {
    %c0_i32 = arith.constant 0 : i32
    %c0_i32_0 = arith.constant 0 : i32
    return %arg0, %c0_i32 : i32, i32
  }
  func.func @transform_5(%arg0: i32) -> (i32, i32) {
    %c0_i32 = arith.constant 0 : i32
    %c0_i32_0 = arith.constant 0 : i32
    return %arg0, %c0_i32 : i32, i32
  }
  func.func @transform_6(%arg0: i32) -> (i32, i32) {
    %c0_i32 = arith.constant 0 : i32
    %c0_i32_0 = arith.constant 0 : i32
    return %arg0, %c0_i32 : i32, i32
  }
}

module attributes {stable_mosaic.version = 11 : i64} {
  func.func @_gat_attn_kernel(%arg0: i32, %arg1: i32, %arg2: memref<128x1xf32, #tpu.memory_space<vmem>>, %arg3: memref<1x128xf32, #tpu.memory_space<vmem>>, %arg4: memref<128x128xbf16, #tpu.memory_space<vmem>>, %arg5: memref<128x128xbf16, #tpu.memory_space<vmem>>, %arg6: memref<1x128xf32, #tpu.memory_space<vmem>>, %arg7: memref<128x128xf32, #tpu.memory_space<vmem>>, %arg8: memref<128x1xf32, #tpu.memory_space<vmem>>, %arg9: memref<128x1xf32, #tpu.memory_space<vmem>>, %arg10: memref<128x128xf32, #tpu.memory_space<vmem>>) attributes {dimension_semantics = [#tpu.dimension_semantics<parallel>, #tpu.dimension_semantics<arbitrary>], iteration_bounds = array<i64: 2, 2>, scalar_prefetch = 0 : i64, scratch_operands = 3 : i64, tpu.core_type = #tpu.core_type<tc>, window_params = [{transform_indices = @transform_0, window_bounds = array<i64: 128, 1>}, {transform_indices = @transform_1, window_bounds = array<i64: 1, 128>}, {transform_indices = @transform_2, window_bounds = array<i64: 128, 128>}, {transform_indices = @transform_3, window_bounds = array<i64: 128, 128>}, {pipeline_mode = #tpu.pipeline_mode<synchronous>, transform_indices = @transform_4, window_bounds = array<i64: 1, 128>}, {transform_indices = @transform_5, window_bounds = array<i64: 128, 128>}]} {
    %c0_i32 = arith.constant 0 : i32
    %0 = arith.cmpi eq, %arg1, %c0_i32 : i32
    %1 = arith.extui %0 : i1 to i32
    %c0_i32_0 = arith.constant 0 : i32
    %2 = arith.cmpi ne, %1, %c0_i32_0 : i32
    scf.if %2 {
      %cst_27 = arith.constant -1.000000e+30 : f32
      %45 = vector.broadcast %cst_27 : f32 to vector<128x1xf32>
      %c0_28 = arith.constant 0 : index
      %c0_29 = arith.constant 0 : index
      %46 = vector.load %arg8[%c0_28, %c0_29] : memref<128x1xf32, #tpu.memory_space<vmem>>, vector<128x1xf32>
      tpu.vector_store %arg8[%c0_28, %c0_29], %45 {strides = array<i32>} : memref<128x1xf32, #tpu.memory_space<vmem>>, vector<128x1xf32>,
      %cst_30 = arith.constant 0.000000e+00 : f32
      %47 = vector.broadcast %cst_30 : f32 to vector<128x1xf32>
      %c0_31 = arith.constant 0 : index
      %c0_32 = arith.constant 0 : index
      %48 = vector.load %arg9[%c0_31, %c0_32] : memref<128x1xf32, #tpu.memory_space<vmem>>, vector<128x1xf32>
      tpu.vector_store %arg9[%c0_31, %c0_32], %47 {strides = array<i32>} : memref<128x1xf32, #tpu.memory_space<vmem>>, vector<128x1xf32>,
      %cst_33 = arith.constant 0.000000e+00 : f32
      %49 = vector.broadcast %cst_33 : f32 to vector<128x128xf32>
      %c0_34 = arith.constant 0 : index
      %c0_35 = arith.constant 0 : index
      %50 = vector.load %arg10[%c0_34, %c0_35] : memref<128x128xf32, #tpu.memory_space<vmem>>, vector<128x128xf32>
      tpu.vector_store %arg10[%c0_34, %c0_35], %49 {strides = array<i32>} : memref<128x128xf32, #tpu.memory_space<vmem>>, vector<128x128xf32>,
    } else {
    }
    %c0 = arith.constant 0 : index
    %c0_1 = arith.constant 0 : index
    %3 = vector.load %arg2[%c0, %c0_1] : memref<128x1xf32, #tpu.memory_space<vmem>>, vector<128x1xf32>
    %c0_2 = arith.constant 0 : index
    %c0_3 = arith.constant 0 : index
    %4 = vector.load %arg3[%c0_2, %c0_3] : memref<1x128xf32, #tpu.memory_space<vmem>>, vector<1x128xf32>
    %5 = vector.broadcast %3 : vector<128x1xf32> to vector<128x128xf32>
    %6 = vector.broadcast %4 : vector<1x128xf32> to vector<128x128xf32>
    %7 = arith.addf %5, %6 : vector<128x128xf32>
    %c0_4 = arith.constant 0 : index
    %c0_5 = arith.constant 0 : index
    %8 = vector.load %arg4[%c0_4, %c0_5] : memref<128x128xbf16, #tpu.memory_space<vmem>>, vector<128x128xbf16>
    %cst = arith.constant 0.000000e+00 : bf16
    %9 = vector.broadcast %cst : bf16 to vector<128x128xbf16>
    %10 = arith.cmpf ogt, %8, %9 : vector<128x128xbf16>
    %cst_6 = arith.constant 0.000000e+00 : f32
    %11 = vector.broadcast %cst_6 : f32 to vector<128x128xf32>
    %12 = arith.cmpf ogt, %7, %11 : vector<128x128xf32>
    %cst_7 = arith.constant 2.000000e-01 : f32
    %13 = vector.broadcast %cst_7 : f32 to vector<128x128xf32>
    %14 = arith.mulf %13, %7 : vector<128x128xf32>
    %15 = arith.select %12, %7, %14 : vector<128x128xi1>, vector<128x128xf32>
    %cst_8 = arith.constant 0xFF800000 : f32
    %16 = vector.broadcast %cst_8 : f32 to vector<128x128xf32>
    %17 = arith.select %10, %15, %16 : vector<128x128xi1>, vector<128x128xf32>
    %c0_9 = arith.constant 0 : index
    %c0_10 = arith.constant 0 : index
    %18 = vector.load %arg8[%c0_9, %c0_10] : memref<128x1xf32, #tpu.memory_space<vmem>>, vector<128x1xf32>
    %cst_11 = arith.constant dense<0xFF800000> : vector<128xf32>
    %19 = vector.multi_reduction <maximumf>, %17, %cst_11 [1] : vector<128x128xf32> to vector<128xf32>
    %20 = vector.shape_cast %19 : vector<128xf32> to vector<128x1xf32>
    %21 = arith.maximumf %18, %20 : vector<128x1xf32>
    %22 = arith.subf %18, %21 : vector<128x1xf32>
    %23 = math.exp %22 : vector<128x1xf32>
    %24 = vector.broadcast %21 : vector<128x1xf32> to vector<128x128xf32>
    %25 = arith.subf %17, %24 : vector<128x128xf32>
    %26 = math.exp %25 : vector<128x128xf32>
    %c0_12 = arith.constant 0 : index
    %c0_13 = arith.constant 0 : index
    %27 = vector.load %arg9[%c0_12, %c0_13] : memref<128x1xf32, #tpu.memory_space<vmem>>, vector<128x1xf32>
    %28 = arith.mulf %23, %27 : vector<128x1xf32>
    %cst_14 = arith.constant dense<0.000000e+00> : vector<128xf32>
    %29 = vector.multi_reduction <add>, %26, %cst_14 [1] : vector<128x128xf32> to vector<128xf32>
    %30 = vector.shape_cast %29 : vector<128xf32> to vector<128x1xf32>
    %31 = arith.addf %28, %30 : vector<128x1xf32>
    %c0_15 = arith.constant 0 : index
    %c0_16 = arith.constant 0 : index
    %32 = vector.load %arg9[%c0_15, %c0_16] : memref<128x1xf32, #tpu.memory_space<vmem>>, vector<128x1xf32>
    tpu.vector_store %arg9[%c0_15, %c0_16], %31 {strides = array<i32>} : memref<128x1xf32, #tpu.memory_space<vmem>>, vector<128x1xf32>,
    %c0_17 = arith.constant 0 : index
    %c0_18 = arith.constant 0 : index
    %33 = vector.load %arg10[%c0_17, %c0_18] : memref<128x128xf32, #tpu.memory_space<vmem>>, vector<128x128xf32>
    %34 = vector.broadcast %23 : vector<128x1xf32> to vector<128x128xf32>
    %35 = arith.mulf %34, %33 : vector<128x128xf32>
    %36 = arith.truncf %26 : vector<128x128xf32> to vector<128x128xbf16>
    %c0_19 = arith.constant 0 : index
    %c0_20 = arith.constant 0 : index
    %37 = vector.load %arg5[%c0_19, %c0_20] : memref<128x128xbf16, #tpu.memory_space<vmem>>, vector<128x128xbf16>
    %cst_21 = arith.constant dense<0.000000e+00> : vector<128x128xf32>
    %38 = tpu.matmul %36, %37, %cst_21 {dimension_numbers = #tpu.dot_dimension_numbers<[1], [0], [0], [1], [0, 0, 1, 1], [], []>} : vector<128x128xbf16>, vector<128x128xbf16>, vector<128x128xf32> -> vector<128x128xf32>
    %39 = arith.addf %35, %38 : vector<128x128xf32>
    %c0_22 = arith.constant 0 : index
    %c0_23 = arith.constant 0 : index
    %40 = vector.load %arg10[%c0_22, %c0_23] : memref<128x128xf32, #tpu.memory_space<vmem>>, vector<128x128xf32>
    tpu.vector_store %arg10[%c0_22, %c0_23], %39 {strides = array<i32>} : memref<128x128xf32, #tpu.memory_space<vmem>>, vector<128x128xf32>,
    %c0_24 = arith.constant 0 : index
    %c0_25 = arith.constant 0 : index
    %41 = vector.load %arg8[%c0_24, %c0_25] : memref<128x1xf32, #tpu.memory_space<vmem>>, vector<128x1xf32>
    tpu.vector_store %arg8[%c0_24, %c0_25], %21 {strides = array<i32>} : memref<128x1xf32, #tpu.memory_space<vmem>>, vector<128x1xf32>,
    %c1_i32 = arith.constant 1 : i32
    %42 = arith.cmpi eq, %arg1, %c1_i32 : i32
    %43 = arith.extui %42 : i1 to i32
    %c0_i32_26 = arith.constant 0 : i32
    %44 = arith.cmpi ne, %43, %c0_i32_26 : i32
    scf.if %44 {
      %c0_27 = arith.constant 0 : index
      %c0_28 = arith.constant 0 : index
      %45 = vector.load %arg9[%c0_27, %c0_28] : memref<128x1xf32, #tpu.memory_space<vmem>>, vector<128x1xf32>
      %cst_29 = arith.constant 1.000000e-30 : f32
      %46 = vector.broadcast %cst_29 : f32 to vector<128x1xf32>
      %47 = arith.maximumf %45, %46 : vector<128x1xf32>
      %c0_30 = arith.constant 0 : index
      %c0_31 = arith.constant 0 : index
      %48 = vector.load %arg10[%c0_30, %c0_31] : memref<128x128xf32, #tpu.memory_space<vmem>>, vector<128x128xf32>
      %49 = tpu.reciprocal %47 {approx = true} : vector<128x1xf32> -> vector<128x1xf32>
      %50 = vector.broadcast %49 : vector<128x1xf32> to vector<128x128xf32>
      %51 = arith.mulf %48, %50 : vector<128x128xf32>
      %c0_32 = arith.constant 0 : index
      %c0_33 = arith.constant 0 : index
      %52 = vector.load %arg6[%c0_32, %c0_33] : memref<1x128xf32, #tpu.memory_space<vmem>>, vector<1x128xf32>
      %53 = vector.broadcast %52 : vector<1x128xf32> to vector<128x128xf32>
      %54 = arith.addf %51, %53 : vector<128x128xf32>
      %cst_34 = arith.constant 0.000000e+00 : f32
      %55 = vector.broadcast %cst_34 : f32 to vector<128x128xf32>
      %56 = arith.maximumf %54, %55 : vector<128x128xf32>
      %c0_35 = arith.constant 0 : index
      %c0_36 = arith.constant 0 : index
      %57 = vector.load %arg7[%c0_35, %c0_36] : memref<128x128xf32, #tpu.memory_space<vmem>>, vector<128x128xf32>
      tpu.vector_store %arg7[%c0_35, %c0_36], %56 {strides = array<i32>} : memref<128x128xf32, #tpu.memory_space<vmem>>, vector<128x128xf32>,
    } else {
    }
    return
  }
  func.func @transform_0(%arg0: i32, %arg1: i32) -> (i32, i32) {
    %c0_i32 = arith.constant 0 : i32
    %c0_i32_0 = arith.constant 0 : i32
    return %arg0, %c0_i32 : i32, i32
  }
  func.func @transform_1(%arg0: i32, %arg1: i32) -> (i32, i32) {
    %c0_i32 = arith.constant 0 : i32
    %c0_i32_0 = arith.constant 0 : i32
    return %c0_i32, %arg1 : i32, i32
  }
  func.func @transform_2(%arg0: i32, %arg1: i32) -> (i32, i32) {
    %c0_i32 = arith.constant 0 : i32
    return %arg0, %arg1 : i32, i32
  }
  func.func @transform_3(%arg0: i32, %arg1: i32) -> (i32, i32) {
    %c0_i32 = arith.constant 0 : i32
    %c0_i32_0 = arith.constant 0 : i32
    return %arg1, %c0_i32 : i32, i32
  }
  func.func @transform_4(%arg0: i32, %arg1: i32) -> (i32, i32) {
    %c0_i32 = arith.constant 0 : i32
    %c0_i32_0 = arith.constant 0 : i32
    %c0_i32_1 = arith.constant 0 : i32
    return %c0_i32, %c0_i32_0 : i32, i32
  }
  func.func @transform_5(%arg0: i32, %arg1: i32) -> (i32, i32) {
    %c0_i32 = arith.constant 0 : i32
    %c0_i32_0 = arith.constant 0 : i32
    return %arg0, %c0_i32 : i32, i32
  }
}

module attributes {stable_mosaic.version = 11 : i64} {
  func.func @_gat_attn_kernel(%arg0: i32, %arg1: i32, %arg2: memref<128x1xf32, #tpu.memory_space<vmem>>, %arg3: memref<1x128xf32, #tpu.memory_space<vmem>>, %arg4: memref<128x128xbf16, #tpu.memory_space<vmem>>, %arg5: memref<128x128xbf16, #tpu.memory_space<vmem>>, %arg6: memref<1x128xf32, #tpu.memory_space<vmem>>, %arg7: memref<128x128xf32, #tpu.memory_space<vmem>>, %arg8: memref<128x1xf32, #tpu.memory_space<vmem>>, %arg9: memref<128x1xf32, #tpu.memory_space<vmem>>, %arg10: memref<128x128xf32, #tpu.memory_space<vmem>>) attributes {dimension_semantics = [#tpu.dimension_semantics<parallel>, #tpu.dimension_semantics<arbitrary>], iteration_bounds = array<i64: 2, 2>, scalar_prefetch = 0 : i64, scratch_operands = 3 : i64, tpu.core_type = #tpu.core_type<tc>, window_params = [{transform_indices = @transform_0, window_bounds = array<i64: 128, 1>}, {transform_indices = @transform_1, window_bounds = array<i64: 1, 128>}, {transform_indices = @transform_2, window_bounds = array<i64: 128, 128>}, {transform_indices = @transform_3, window_bounds = array<i64: 128, 128>}, {pipeline_mode = #tpu.pipeline_mode<synchronous>, transform_indices = @transform_4, window_bounds = array<i64: 1, 128>}, {transform_indices = @transform_5, window_bounds = array<i64: 128, 128>}]} {
    %c0_i32 = arith.constant 0 : i32
    %0 = arith.cmpi eq, %arg1, %c0_i32 : i32
    %1 = arith.extui %0 : i1 to i32
    %c0_i32_0 = arith.constant 0 : i32
    %2 = arith.cmpi ne, %1, %c0_i32_0 : i32
    scf.if %2 {
      %cst_27 = arith.constant -1.000000e+30 : f32
      %45 = vector.broadcast %cst_27 : f32 to vector<128x1xf32>
      %c0_28 = arith.constant 0 : index
      %c0_29 = arith.constant 0 : index
      %46 = vector.load %arg8[%c0_28, %c0_29] : memref<128x1xf32, #tpu.memory_space<vmem>>, vector<128x1xf32>
      tpu.vector_store %arg8[%c0_28, %c0_29], %45 {strides = array<i32>} : memref<128x1xf32, #tpu.memory_space<vmem>>, vector<128x1xf32>,
      %cst_30 = arith.constant 0.000000e+00 : f32
      %47 = vector.broadcast %cst_30 : f32 to vector<128x1xf32>
      %c0_31 = arith.constant 0 : index
      %c0_32 = arith.constant 0 : index
      %48 = vector.load %arg9[%c0_31, %c0_32] : memref<128x1xf32, #tpu.memory_space<vmem>>, vector<128x1xf32>
      tpu.vector_store %arg9[%c0_31, %c0_32], %47 {strides = array<i32>} : memref<128x1xf32, #tpu.memory_space<vmem>>, vector<128x1xf32>,
      %cst_33 = arith.constant 0.000000e+00 : f32
      %49 = vector.broadcast %cst_33 : f32 to vector<128x128xf32>
      %c0_34 = arith.constant 0 : index
      %c0_35 = arith.constant 0 : index
      %50 = vector.load %arg10[%c0_34, %c0_35] : memref<128x128xf32, #tpu.memory_space<vmem>>, vector<128x128xf32>
      tpu.vector_store %arg10[%c0_34, %c0_35], %49 {strides = array<i32>} : memref<128x128xf32, #tpu.memory_space<vmem>>, vector<128x128xf32>,
    } else {
    }
    %c0 = arith.constant 0 : index
    %c0_1 = arith.constant 0 : index
    %3 = vector.load %arg2[%c0, %c0_1] : memref<128x1xf32, #tpu.memory_space<vmem>>, vector<128x1xf32>
    %c0_2 = arith.constant 0 : index
    %c0_3 = arith.constant 0 : index
    %4 = vector.load %arg3[%c0_2, %c0_3] : memref<1x128xf32, #tpu.memory_space<vmem>>, vector<1x128xf32>
    %5 = vector.broadcast %3 : vector<128x1xf32> to vector<128x128xf32>
    %6 = vector.broadcast %4 : vector<1x128xf32> to vector<128x128xf32>
    %7 = arith.addf %5, %6 : vector<128x128xf32>
    %c0_4 = arith.constant 0 : index
    %c0_5 = arith.constant 0 : index
    %8 = vector.load %arg4[%c0_4, %c0_5] : memref<128x128xbf16, #tpu.memory_space<vmem>>, vector<128x128xbf16>
    %cst = arith.constant 0.000000e+00 : bf16
    %9 = vector.broadcast %cst : bf16 to vector<128x128xbf16>
    %10 = arith.cmpf ogt, %8, %9 : vector<128x128xbf16>
    %cst_6 = arith.constant 0.000000e+00 : f32
    %11 = vector.broadcast %cst_6 : f32 to vector<128x128xf32>
    %12 = arith.cmpf ogt, %7, %11 : vector<128x128xf32>
    %cst_7 = arith.constant 2.000000e-01 : f32
    %13 = vector.broadcast %cst_7 : f32 to vector<128x128xf32>
    %14 = arith.mulf %13, %7 : vector<128x128xf32>
    %15 = arith.select %12, %7, %14 : vector<128x128xi1>, vector<128x128xf32>
    %cst_8 = arith.constant 0xFF800000 : f32
    %16 = vector.broadcast %cst_8 : f32 to vector<128x128xf32>
    %17 = arith.select %10, %15, %16 : vector<128x128xi1>, vector<128x128xf32>
    %c0_9 = arith.constant 0 : index
    %c0_10 = arith.constant 0 : index
    %18 = vector.load %arg8[%c0_9, %c0_10] : memref<128x1xf32, #tpu.memory_space<vmem>>, vector<128x1xf32>
    %cst_11 = arith.constant dense<0xFF800000> : vector<128xf32>
    %19 = vector.multi_reduction <maximumf>, %17, %cst_11 [1] : vector<128x128xf32> to vector<128xf32>
    %20 = vector.shape_cast %19 : vector<128xf32> to vector<128x1xf32>
    %21 = arith.maximumf %18, %20 : vector<128x1xf32>
    %22 = arith.subf %18, %21 : vector<128x1xf32>
    %23 = math.exp %22 : vector<128x1xf32>
    %24 = vector.broadcast %21 : vector<128x1xf32> to vector<128x128xf32>
    %25 = arith.subf %17, %24 : vector<128x128xf32>
    %26 = math.exp %25 : vector<128x128xf32>
    %c0_12 = arith.constant 0 : index
    %c0_13 = arith.constant 0 : index
    %27 = vector.load %arg9[%c0_12, %c0_13] : memref<128x1xf32, #tpu.memory_space<vmem>>, vector<128x1xf32>
    %28 = arith.mulf %23, %27 : vector<128x1xf32>
    %cst_14 = arith.constant dense<0.000000e+00> : vector<128xf32>
    %29 = vector.multi_reduction <add>, %26, %cst_14 [1] : vector<128x128xf32> to vector<128xf32>
    %30 = vector.shape_cast %29 : vector<128xf32> to vector<128x1xf32>
    %31 = arith.addf %28, %30 : vector<128x1xf32>
    %c0_15 = arith.constant 0 : index
    %c0_16 = arith.constant 0 : index
    %32 = vector.load %arg9[%c0_15, %c0_16] : memref<128x1xf32, #tpu.memory_space<vmem>>, vector<128x1xf32>
    tpu.vector_store %arg9[%c0_15, %c0_16], %31 {strides = array<i32>} : memref<128x1xf32, #tpu.memory_space<vmem>>, vector<128x1xf32>,
    %c0_17 = arith.constant 0 : index
    %c0_18 = arith.constant 0 : index
    %33 = vector.load %arg10[%c0_17, %c0_18] : memref<128x128xf32, #tpu.memory_space<vmem>>, vector<128x128xf32>
    %34 = vector.broadcast %23 : vector<128x1xf32> to vector<128x128xf32>
    %35 = arith.mulf %34, %33 : vector<128x128xf32>
    %36 = arith.truncf %26 : vector<128x128xf32> to vector<128x128xbf16>
    %c0_19 = arith.constant 0 : index
    %c0_20 = arith.constant 0 : index
    %37 = vector.load %arg5[%c0_19, %c0_20] : memref<128x128xbf16, #tpu.memory_space<vmem>>, vector<128x128xbf16>
    %cst_21 = arith.constant dense<0.000000e+00> : vector<128x128xf32>
    %38 = tpu.matmul %36, %37, %cst_21 {dimension_numbers = #tpu.dot_dimension_numbers<[1], [0], [0], [1], [0, 0, 1, 1], [], []>} : vector<128x128xbf16>, vector<128x128xbf16>, vector<128x128xf32> -> vector<128x128xf32>
    %39 = arith.addf %35, %38 : vector<128x128xf32>
    %c0_22 = arith.constant 0 : index
    %c0_23 = arith.constant 0 : index
    %40 = vector.load %arg10[%c0_22, %c0_23] : memref<128x128xf32, #tpu.memory_space<vmem>>, vector<128x128xf32>
    tpu.vector_store %arg10[%c0_22, %c0_23], %39 {strides = array<i32>} : memref<128x128xf32, #tpu.memory_space<vmem>>, vector<128x128xf32>,
    %c0_24 = arith.constant 0 : index
    %c0_25 = arith.constant 0 : index
    %41 = vector.load %arg8[%c0_24, %c0_25] : memref<128x1xf32, #tpu.memory_space<vmem>>, vector<128x1xf32>
    tpu.vector_store %arg8[%c0_24, %c0_25], %21 {strides = array<i32>} : memref<128x1xf32, #tpu.memory_space<vmem>>, vector<128x1xf32>,
    %c1_i32 = arith.constant 1 : i32
    %42 = arith.cmpi eq, %arg1, %c1_i32 : i32
    %43 = arith.extui %42 : i1 to i32
    %c0_i32_26 = arith.constant 0 : i32
    %44 = arith.cmpi ne, %43, %c0_i32_26 : i32
    scf.if %44 {
      %c0_27 = arith.constant 0 : index
      %c0_28 = arith.constant 0 : index
      %45 = vector.load %arg9[%c0_27, %c0_28] : memref<128x1xf32, #tpu.memory_space<vmem>>, vector<128x1xf32>
      %cst_29 = arith.constant 1.000000e-30 : f32
      %46 = vector.broadcast %cst_29 : f32 to vector<128x1xf32>
      %47 = arith.maximumf %45, %46 : vector<128x1xf32>
      %c0_30 = arith.constant 0 : index
      %c0_31 = arith.constant 0 : index
      %48 = vector.load %arg10[%c0_30, %c0_31] : memref<128x128xf32, #tpu.memory_space<vmem>>, vector<128x128xf32>
      %49 = tpu.reciprocal %47 {approx = true} : vector<128x1xf32> -> vector<128x1xf32>
      %50 = vector.broadcast %49 : vector<128x1xf32> to vector<128x128xf32>
      %51 = arith.mulf %48, %50 : vector<128x128xf32>
      %c0_32 = arith.constant 0 : index
      %c0_33 = arith.constant 0 : index
      %52 = vector.load %arg6[%c0_32, %c0_33] : memref<1x128xf32, #tpu.memory_space<vmem>>, vector<1x128xf32>
      %53 = vector.broadcast %52 : vector<1x128xf32> to vector<128x128xf32>
      %54 = arith.addf %51, %53 : vector<128x128xf32>
      %c0_34 = arith.constant 0 : index
      %c0_35 = arith.constant 0 : index
      %55 = vector.load %arg7[%c0_34, %c0_35] : memref<128x128xf32, #tpu.memory_space<vmem>>, vector<128x128xf32>
      tpu.vector_store %arg7[%c0_34, %c0_35], %54 {strides = array<i32>} : memref<128x128xf32, #tpu.memory_space<vmem>>, vector<128x128xf32>,
    } else {
    }
    return
  }
  func.func @transform_0(%arg0: i32, %arg1: i32) -> (i32, i32) {
    %c0_i32 = arith.constant 0 : i32
    %c0_i32_0 = arith.constant 0 : i32
    return %arg0, %c0_i32 : i32, i32
  }
  func.func @transform_1(%arg0: i32, %arg1: i32) -> (i32, i32) {
    %c0_i32 = arith.constant 0 : i32
    %c0_i32_0 = arith.constant 0 : i32
    return %c0_i32, %arg1 : i32, i32
  }
  func.func @transform_2(%arg0: i32, %arg1: i32) -> (i32, i32) {
    %c0_i32 = arith.constant 0 : i32
    return %arg0, %arg1 : i32, i32
  }
  func.func @transform_3(%arg0: i32, %arg1: i32) -> (i32, i32) {
    %c0_i32 = arith.constant 0 : i32
    %c0_i32_0 = arith.constant 0 : i32
    return %arg1, %c0_i32 : i32, i32
  }
  func.func @transform_4(%arg0: i32, %arg1: i32) -> (i32, i32) {
    %c0_i32 = arith.constant 0 : i32
    %c0_i32_0 = arith.constant 0 : i32
    %c0_i32_1 = arith.constant 0 : i32
    return %c0_i32, %c0_i32_0 : i32, i32
  }
  func.func @transform_5(%arg0: i32, %arg1: i32) -> (i32, i32) {
    %c0_i32 = arith.constant 0 : i32
    %c0_i32_0 = arith.constant 0 : i32
    return %arg0, %c0_i32 : i32, i32
  }
}

module attributes {stable_mosaic.version = 11 : i64} {
  func.func @_pool_linear_kernel(%arg0: i32, %arg1: memref<2x128xf32, #tpu.memory_space<vmem>>, %arg2: memref<128x128xf32, #tpu.memory_space<vmem>>, %arg3: memref<128x128xf32, #tpu.memory_space<vmem>>, %arg4: memref<1x128xf32, #tpu.memory_space<vmem>>, %arg5: memref<2x128xf32, #tpu.memory_space<vmem>>, %arg6: memref<2x128xf32, #tpu.memory_space<vmem>>) attributes {dimension_semantics = [#tpu.dimension_semantics<arbitrary>], iteration_bounds = array<i64: 2>, scalar_prefetch = 0 : i64, scratch_operands = 1 : i64, tpu.core_type = #tpu.core_type<tc>, window_params = [{transform_indices = @transform_0, window_bounds = array<i64: 2, 128>}, {transform_indices = @transform_1, window_bounds = array<i64: 128, 128>}, {pipeline_mode = #tpu.pipeline_mode<synchronous>, transform_indices = @transform_2, window_bounds = array<i64: 128, 128>}, {pipeline_mode = #tpu.pipeline_mode<synchronous>, transform_indices = @transform_3, window_bounds = array<i64: 1, 128>}, {pipeline_mode = #tpu.pipeline_mode<synchronous>, transform_indices = @transform_4, window_bounds = array<i64: 2, 128>}]} {
    %c0_i32 = arith.constant 0 : i32
    %0 = arith.cmpi eq, %arg0, %c0_i32 : i32
    %1 = arith.extui %0 : i1 to i32
    %c0_i32_0 = arith.constant 0 : i32
    %2 = arith.cmpi ne, %1, %c0_i32_0 : i32
    scf.if %2 {
      %cst_9 = arith.constant 0.000000e+00 : f32
      %14 = vector.broadcast %cst_9 : f32 to vector<2x128xf32>
      %c0_10 = arith.constant 0 : index
      %c0_11 = arith.constant 0 : index
      %15 = vector.load %arg6[%c0_10, %c0_11] : memref<2x128xf32, #tpu.memory_space<vmem>>, vector<2x128xf32>
      tpu.vector_store %arg6[%c0_10, %c0_11], %14 {strides = array<i32>} : memref<2x128xf32, #tpu.memory_space<vmem>>, vector<2x128xf32>,
    } else {
    }
    %c0 = arith.constant 0 : index
    %c0_1 = arith.constant 0 : index
    %3 = vector.load %arg6[%c0, %c0_1] : memref<2x128xf32, #tpu.memory_space<vmem>>, vector<2x128xf32>
    %c0_2 = arith.constant 0 : index
    %c0_3 = arith.constant 0 : index
    %4 = vector.load %arg1[%c0_2, %c0_3] : memref<2x128xf32, #tpu.memory_space<vmem>>, vector<2x128xf32>
    %5 = arith.truncf %4 : vector<2x128xf32> to vector<2x128xbf16>
    %c0_4 = arith.constant 0 : index
    %c0_5 = arith.constant 0 : index
    %6 = vector.load %arg2[%c0_4, %c0_5] : memref<128x128xf32, #tpu.memory_space<vmem>>, vector<128x128xf32>
    %7 = arith.truncf %6 : vector<128x128xf32> to vector<128x128xbf16>
    %cst = arith.constant dense<0.000000e+00> : vector<2x128xf32>
    %8 = tpu.matmul %5, %7, %cst {dimension_numbers = #tpu.dot_dimension_numbers<[1], [0], [0], [1], [0, 0, 1, 1], [], []>} : vector<2x128xbf16>, vector<128x128xbf16>, vector<2x128xf32> -> vector<2x128xf32>
    %9 = arith.addf %3, %8 : vector<2x128xf32>
    %c0_6 = arith.constant 0 : index
    %c0_7 = arith.constant 0 : index
    %10 = vector.load %arg6[%c0_6, %c0_7] : memref<2x128xf32, #tpu.memory_space<vmem>>, vector<2x128xf32>
    tpu.vector_store %arg6[%c0_6, %c0_7], %9 {strides = array<i32>} : memref<2x128xf32, #tpu.memory_space<vmem>>, vector<2x128xf32>,
    %c1_i32 = arith.constant 1 : i32
    %11 = arith.cmpi eq, %arg0, %c1_i32 : i32
    %12 = arith.extui %11 : i1 to i32
    %c0_i32_8 = arith.constant 0 : i32
    %13 = arith.cmpi ne, %12, %c0_i32_8 : i32
    scf.if %13 {
      %c0_9 = arith.constant 0 : index
      %c0_10 = arith.constant 0 : index
      %14 = vector.load %arg6[%c0_9, %c0_10] : memref<2x128xf32, #tpu.memory_space<vmem>>, vector<2x128xf32>
      %15 = arith.truncf %14 : vector<2x128xf32> to vector<2x128xbf16>
      %c0_11 = arith.constant 0 : index
      %c0_12 = arith.constant 0 : index
      %16 = vector.load %arg3[%c0_11, %c0_12] : memref<128x128xf32, #tpu.memory_space<vmem>>, vector<128x128xf32>
      %17 = arith.truncf %16 : vector<128x128xf32> to vector<128x128xbf16>
      %cst_13 = arith.constant dense<0.000000e+00> : vector<2x128xf32>
      %18 = tpu.matmul %15, %17, %cst_13 {dimension_numbers = #tpu.dot_dimension_numbers<[1], [0], [0], [1], [0, 0, 1, 1], [], []>} : vector<2x128xbf16>, vector<128x128xbf16>, vector<2x128xf32> -> vector<2x128xf32>
      %c0_14 = arith.constant 0 : index
      %c0_15 = arith.constant 0 : index
      %19 = vector.load %arg4[%c0_14, %c0_15] : memref<1x128xf32, #tpu.memory_space<vmem>>, vector<1x128xf32>
      %20 = vector.broadcast %19 : vector<1x128xf32> to vector<2x128xf32>
      %21 = arith.addf %18, %20 : vector<2x128xf32>
      %c0_16 = arith.constant 0 : index
      %c0_17 = arith.constant 0 : index
      %22 = vector.load %arg5[%c0_16, %c0_17] : memref<2x128xf32, #tpu.memory_space<vmem>>, vector<2x128xf32>
      tpu.vector_store %arg5[%c0_16, %c0_17], %21 {strides = array<i32>} : memref<2x128xf32, #tpu.memory_space<vmem>>, vector<2x128xf32>,
    } else {
    }
    return
  }
  func.func @transform_0(%arg0: i32) -> (i32, i32) {
    %c0_i32 = arith.constant 0 : i32
    %c0_i32_0 = arith.constant 0 : i32
    return %c0_i32, %arg0 : i32, i32
  }
  func.func @transform_1(%arg0: i32) -> (i32, i32) {
    %c0_i32 = arith.constant 0 : i32
    %c0_i32_0 = arith.constant 0 : i32
    return %arg0, %c0_i32 : i32, i32
  }
  func.func @transform_2(%arg0: i32) -> (i32, i32) {
    %c0_i32 = arith.constant 0 : i32
    %c0_i32_0 = arith.constant 0 : i32
    %c0_i32_1 = arith.constant 0 : i32
    return %c0_i32, %c0_i32_0 : i32, i32
  }
  func.func @transform_3(%arg0: i32) -> (i32, i32) {
    %c0_i32 = arith.constant 0 : i32
    %c0_i32_0 = arith.constant 0 : i32
    %c0_i32_1 = arith.constant 0 : i32
    return %c0_i32, %c0_i32_0 : i32, i32
  }
  func.func @transform_4(%arg0: i32) -> (i32, i32) {
    %c0_i32 = arith.constant 0 : i32
    %c0_i32_0 = arith.constant 0 : i32
    %c0_i32_1 = arith.constant 0 : i32
    return %c0_i32, %c0_i32_0 : i32, i32
  }
}

</mosaic_0001>

<bundles_post_ra>
// kernel: gcn_forward.7
= control target key start
LH: loop header
LB: loop body
LE: loop exit
PB: predicated region body
PF: predicated region fallthrough
CT: control target
= control target key end

     0   :  { %s986_s21 = smov 0   ;;  %s1209_s0 = inlined_call_operand.vmem [shape: f32[256,128], index: 0, kind: input, shape index: {}]   ;;  %s1210_s1 = inlined_call_operand.vmem [shape: f32[128,128], index: 1, kind: input, shape index: {}]   ;;  %s1211_s2 = inlined_call_operand.vmem [shape: f32[1,128], index: 2, kind: input, shape index: {}]   ;;  %s1212_s3 = inlined_call_operand.vmem [shape: f32[1,128], index: 3, kind: input, shape index: {}]   ;;  %s1213_s4 = inlined_call_operand.vmem [shape: bf16[256,128], index: 4, kind: output, shape index: {0}]   ;;  %s1214_s5 = inlined_call_operand.vmem [shape: f32[256,1], index: 5, kind: output, shape index: {1}]   ;;  %s1215_s6 = inlined_call_operand.vmem [shape: f32[256,1], index: 6, kind: output, shape index: {2}]  }
   0x1 LB: > { %s775_s22 = sadd.s32 4294967295, %s949_s21   ;;  %p779_p0 = scmp.ge.s32.totalorder %s949_s21, 1  ;;  %s949_s21 = sphi %s986_s21, %s17_s21  }
   0x2   : > { %p218_p1 = scmp.lt.s32.totalorder %s949_s21, 3 }
   0x4   : > { %p219_p2 = pnand %p779_p0, %p218_p1 }
   0x5   : > { %v307_v0 = vld [vmem:[%s1210_s1] sm:$0xff] (!%p219_p2)  ;;  %v308_v1 = vld [vmem:[%s1210_s1 + $0x8] sm:$0xff] (!%p219_p2)  ;;  %v309_v2 = vld [vmem:[%s1210_s1 + $0x10] sm:$0xff] (!%p219_p2)  ;;  %s780_s29 = sshll.u32 (!%p219_p2), %s775_s22, 4  ;;  %vm483_vm0 = vcmask (!%p219_p2), 7168  }
   0x6   : > { %222 = sbr.rel (%p219_p2) target bundleno = 457 (0x1c9), region = 36  ;;  %v323_v3 = vpack.c.bf16 (!%p219_p2), %v308_v1, %v307_v0  ;;  %v310_v4 = vld [vmem:[%s1210_s1 + $0x18] sm:$0xff] (!%p219_p2)  ;;  %p259_p3 = scmp.lt.s32.totalorder (!%p219_p2), %s780_s29, 31  ;;  %v311_v6 = vld [vmem:[%s1210_s1 + $0x20] sm:$0xff] (!%p219_p2)  ;;  %v312_v7 = vld [vmem:[%s1210_s1 + $0x28] sm:$0xff] (!%p219_p2) }
   0x7   : > { %v324_v5 = vpack.c.bf16 (!%p219_p2), %v310_v4, %v309_v2  ;;  %v325_v8 = vpack.c.bf16 (!%p219_p2), %v312_v7, %v311_v6  ;;  %v313_v9 = vld [vmem:[%s1210_s1 + $0x30] sm:$0xff] (!%p219_p2)  ;;  %v314_v10 = vld [vmem:[%s1210_s1 + $0x38] sm:$0xff] (!%p219_p2)  ;;  %v315_v18 = vld [vmem:[%s1210_s1 + $0x40] sm:$0xff] (!%p219_p2) }
   0x8   : > { %887 = vmatprep.subr.bf16.mxu0 (!%p219_p2), %v323_v3  ;;  %919 = vmatprep.subr.bf16.mxu1 (!%p219_p2), %v323_v3  ;;  %v326_v16 = vpack.c.bf16 (!%p219_p2), %v314_v10, %v313_v9  ;;  %v316_v19 = vld [vmem:[%s1210_s1 + $0x48] sm:$0xff] (!%p219_p2)  ;;  %v317_v21 = vld [vmem:[%s1210_s1 + $0x50] sm:$0xff] (!%p219_p2)  ;;  %v318_v22 = vld [vmem:[%s1210_s1 + $0x58] sm:$0xff] (!%p219_p2) }
   0x9   : > { %888 = vmatpush3.bf16.msra.mxu0 (!%p219_p2), %v323_v3  ;;  %927 = vmatpush3.bf16.msra.mxu1 (!%p219_p2), %v323_v3  ;;  %v327_v20 = vpack.c.bf16 (!%p219_p2), %v316_v19, %v315_v18  ;;  %v328_v23 = vpack.c.bf16 (!%p219_p2), %v318_v22, %v317_v21  ;;  %v319_v24 = vld [vmem:[%s1210_s1 + $0x60] sm:$0xff] (!%p219_p2)  ;;  %v320_v25 = vld [vmem:[%s1210_s1 + $0x68] sm:$0xff] (!%p219_p2)  ;;  %v321_v27 = vld [vmem:[%s1210_s1 + $0x70] sm:$0xff] (!%p219_p2) }
   0xa   : > { %889 = vmatprep.subr.bf16.mxu0 (!%p219_p2), %v324_v5  ;;  %920 = vmatprep.subr.bf16.mxu1 (!%p219_p2), %v324_v5  ;;  %v329_v26 = vpack.c.bf16 (!%p219_p2), %v320_v25, %v319_v24  ;;  %v322_v28 = vld [vmem:[%s1210_s1 + $0x78] sm:$0xff] (!%p219_p2)  ;;  %v1072_v48 = vld [vmem:[%s1211_s2] ss:$0 sm:$0xff] (!%p219_p2) }
   0xb   : > { %v330_v29 = vpack.c.bf16 (!%p219_p2), %v322_v28, %v321_v27  ;;  %v1085_v57 = vld [vmem:[%s1212_s3] ss:$0 sm:$0xff] (!%p219_p2) }
   0xd   : > { %s1217_s29 = smov (!%p259_p3, %s780_s29), 31  ;;  %890 = vmatpush3.bf16.msra.mxu0 %v324_v5  ;;  %928 = vmatpush3.bf16.msra.mxu1 %v324_v5 }
   0xe   : > { %s1015_s12 = sshll.u32 %s1217_s29, 3  ;;  %891 = vmatprep.subr.bf16.mxu0 %v325_v8  ;;  %921 = vmatprep.subr.bf16.mxu1 %v325_v8  ;;  %s783_s17 = sshll.u32 %s1217_s29, 2 }
   0xf   : > { %s1027_s19 = scalar_lea.vmem %s1209_s0, %s1015_s12  ;;  %s1080_s20 = scalar_lea.vmem %s1213_s4, %s783_s17 }
  0x10   : > { %v283_v11 = vld [vmem:[%s1027_s19] sm:$0xff]  ;;  %v284_v12 = vld [vmem:[%s1027_s19 + $0x8] sm:$0xff]  ;;  %v285_v30 = vld [vmem:[%s1027_s19 + $0x10] sm:$0xff]  ;;  %s1134_s25 = scalar_lea.vmem %s1214_s5, %s1015_s12  ;;  %s1144_s28 = scalar_lea.vmem %s1215_s6, %s1015_s12 }
  0x11   : > { %v291_v13 = vld [vmem:[%s1027_s19 + $0x40] sm:$0xff]  ;;  %v299_v14 = vpack.c.bf16 %v284_v12, %v283_v11  ;;  %v292_v15 = vld [vmem:[%s1027_s19 + $0x48] sm:$0xff]  ;;  %892 = vmatpush3.bf16.msra.mxu0 %v325_v8  ;;  %929 = vmatpush3.bf16.msra.mxu1 %v325_v8  ;;  %v286_v31 = vld [vmem:[%s1027_s19 + $0x18] sm:$0xff] }
  0x12   : > { %v303_v17 = vpack.c.bf16 %v292_v15, %v291_v13  ;;  %893 = vmatprep.subr.bf16.mxu0 %v326_v16  ;;  %922 = vmatprep.subr.bf16.mxu1 %v326_v16  ;;  %v293_v32 = vld [vmem:[%s1027_s19 + $0x50] sm:$0xff]  ;;  %v294_v33 = vld [vmem:[%s1027_s19 + $0x58] sm:$0xff]  ;;  %v287_v34 = vld [vmem:[%s1027_s19 + $0x20] sm:$0xff]  ;;  %v300_v38 = vpack.c.bf16 %v286_v31, %v285_v30 }
  0x13   : > { %903 = vmatprep.mubr.bf16.mxu0 %v299_v14  ;;  %v288_v35 = vld [vmem:[%s1027_s19 + $0x28] sm:$0xff]  ;;  %v295_v36 = vld [vmem:[%s1027_s19 + $0x60] sm:$0xff]  ;;  %v304_v39 = vpack.c.bf16 %v294_v33, %v293_v32  ;;  %v289_v42 = vld [vmem:[%s1027_s19 + $0x30] sm:$0xff] }
  0x14   : > { %911 = vmatprep.mubr.bf16.mxu1 %v303_v17  ;;  %v296_v37 = vld [vmem:[%s1027_s19 + $0x68] sm:$0xff]  ;;  %v301_v40 = vpack.c.bf16 %v288_v35, %v287_v34  ;;  %v290_v43 = vld [vmem:[%s1027_s19 + $0x38] sm:$0xff]  ;;  %v297_v44 = vld [vmem:[%s1027_s19 + $0x70] sm:$0xff] }
  0x15   : > { %894 = vmatpush3.bf16.msra.mxu0 %v326_v16  ;;  %930 = vmatpush3.bf16.msra.mxu1 %v326_v16  ;;  %v305_v41 = vpack.c.bf16 %v296_v37, %v295_v36  ;;  %v298_v45 = vld [vmem:[%s1027_s19 + $0x78] sm:$0xff]  ;;  %v302_v46 = vpack.c.bf16 %v290_v43, %v289_v42 }
  0x16   : > { %895 = vmatprep.subr.bf16.mxu0 %v327_v20  ;;  %923 = vmatprep.subr.bf16.mxu1 %v327_v20  ;;  %v306_v47 = vpack.c.bf16 %v298_v45, %v297_v44 }
  0x19   : > { %896 = vmatpush3.bf16.msra.mxu0 %v327_v20  ;;  %931 = vmatpush3.bf16.msra.mxu1 %v327_v20 }
  0x1a   : > { %897 = vmatprep.subr.bf16.mxu0 %v328_v23  ;;  %924 = vmatprep.subr.bf16.mxu1 %v328_v23 }
  0x1d   : > { %898 = vmatpush3.bf16.msra.mxu0 %v328_v23  ;;  %932 = vmatpush3.bf16.msra.mxu1 %v328_v23 }
  0x1e   : > { %899 = vmatprep.subr.bf16.mxu0 %v329_v26  ;;  %925 = vmatprep.subr.bf16.mxu1 %v329_v26 }
  0x21   : > { %900 = vmatpush3.bf16.msra.mxu0 %v329_v26  ;;  %933 = vmatpush3.bf16.msra.mxu1 %v329_v26 }
  0x22   : > { %901 = vmatprep.subr.bf16.mxu0 %v330_v29  ;;  %926 = vmatprep.subr.bf16.mxu1 %v330_v29 }
  0x25   : > { %902 = vmatpush3.bf16.msra.mxu0 %v330_v29  ;;  %934 = vmatpush3.bf16.msra.mxu1 %v330_v29 }
  0x28   : > { %904 = vmatmul.mubr.bf16.vlgmr.msra.gmra.mrb[0].mxu0 %v300_v38  ;;  %912 = vmatmul.mubr.bf16.vlgmr.msra.gmra.mrb[0].mxu1 %v304_v39 }
  0x29   : > { %907 = vmatprep.mubr.bf16.mxu0 %v301_v40  ;;  %915 = vmatprep.mubr.bf16.mxu1 %v305_v41 }
  0x30   : > { %908 = vmatmul.mubr.bf16.gmra.mrb[4].mxu0 %v302_v46  ;;  %916 = vmatmul.mubr.bf16.gmra.mrb[4].mxu1 %v306_v47 }
  0xfb   : > { %v905_v49 = vpop.f32.mrb[0].mxu0  ;;  %v913_v50 = vpop.f32.mrb[0].mxu1 }
  0xfc   : > { %v365_v51 = vpop.f32.mrb[1].mxu0  ;;  %v397_v52 = vpop.f32.mrb[1].mxu1  ;;  %v445_v53 = vmul.f32 %v913_v50, %v1072_v48  ;;  %v437_v54 = vmul.f32 %v905_v49, %v1072_v48  ;;  %v509_v0 = vmul.f32 %v905_v49, %v1085_v57  ;;  %v517_v4 = vmul.f32 %v913_v50, %v1085_v57 }
  0xfd   : > { %v906_v55 = vpop.f32.mrb[2].mxu0  ;;  %v914_v56 = vpop.f32.mrb[2].mxu1  ;;  %v435_v16 = vmul.f32 %v1072_v48, %v365_v51  ;;  %v443_v18 = vmul.f32 %v1072_v48, %v397_v52  ;;  %v507_v20 = vmul.f32 %v1085_v57, %v365_v51  ;;  %v515_v22 = vmul.f32 %v1085_v57, %v397_v52 }
  0xfe   : > { %v832_v58 = vpack.c.bf16 %v906_v55, %v905_v49  ;;  %v852_v59 = vpack.c.bf16 %v914_v56, %v913_v50  ;;  %471 = vadd.xlane.f32.xlu0 %v445_v53  ;;  %v400_v60 = vpop.f32.mrb[3].mxu1  ;;  %455 = vadd.xlane.f32.xlu1 %v437_v54  ;;  %v368_v61 = vpop.f32.mrb[3].mxu0  ;;  %v438_v1 = vmul.f32 %v906_v55, %v1072_v48 }
  0xff   : > { %v847_v62 = vpack.c.bf16 %v400_v60, %v397_v52  ;;  %v827_v63 = vpack.c.bf16 %v368_v61, %v365_v51  ;;  %v446_v5 = vmul.f32 %v914_v56, %v1072_v48  ;;  %v510_v17 = vmul.f32 %v906_v55, %v1085_v57 }
 0x100   : > { %864 = vst [vmem:[%s1080_s20 + $0x8] sm:$0xff] %v832_v58   ;;  %868 = vst [vmem:[%s1080_s20 + $0x28] sm:$0xff] %v852_v59   ;;  %v518_v19 = vmul.f32 %v914_v56, %v1085_v57  ;;  %v444_v21 = vmul.f32 %v1072_v48, %v400_v60  ;;  %v508_v23 = vmul.f32 %v1085_v57, %v368_v61 }
 0x101   : > { %867 = vst [vmem:[%s1080_s20 + $0x20] sm:$0xff] %v847_v62   ;;  %828 = vst [vmem:[%s1080_s20] sm:$0xff] %v827_v63   ;;  %v516_v24 = vmul.f32 %v1085_v57, %v400_v60  ;;  %v436_v25 = vmul.f32 %v1072_v48, %v368_v61 }
 0x102   : > { %527 = vadd.xlane.f32.xlu0 %v509_v0  ;;  %457 = vadd.xlane.f32.xlu1 %v438_v1 }
 0x103   : > { %v909_v2 = vpop.f32.mrb[4].mxu0  ;;  %v1093_v3 = vpop.f32.mrb[4].mxu1 }
 0x104   : > { %v381_v6 = vpop.f32.mrb[5].mxu0  ;;  %v413_v7 = vpop.f32.mrb[5].mxu1  ;;  %v441_v26 = vmul.f32 %v909_v2, %v1072_v48  ;;  %v449_v28 = vmul.f32 %v1093_v3, %v1072_v48  ;;  %v513_v30 = vmul.f32 %v909_v2, %v1085_v57  ;;  %v521_v40 = vmul.f32 %v1093_v3, %v1085_v57 }
 0x105   : > { %v910_v8 = vpop.f32.mrb[6].mxu0  ;;  %v918_v9 = vpop.f32.mrb[6].mxu1  ;;  %v439_v32 = vmul.f32 %v1072_v48, %v381_v6  ;;  %v447_v34 = vmul.f32 %v1072_v48, %v413_v7  ;;  %v511_v36 = vmul.f32 %v1085_v57, %v381_v6  ;;  %v519_v38 = vmul.f32 %v1085_v57, %v413_v7 }
 0x106   : > { %543 = vadd.xlane.f32.xlu0 %v517_v4  ;;  %473 = vadd.xlane.f32.xlu1 %v446_v5  ;;  %v842_v10 = vpack.c.bf16 %v910_v8, %v909_v2  ;;  %v384_v11 = vpop.f32.mrb[7].mxu0  ;;  %v862_v12 = vpack.c.bf16 %v918_v9, %v1093_v3  ;;  %v416_v13 = vpop.f32.mrb[7].mxu1  ;;  %v442_v27 = vmul.f32 %v910_v8, %v1072_v48 }
 0x107   : > { %v837_v14 = vpack.c.bf16 %v384_v11, %v381_v6  ;;  %v857_v15 = vpack.c.bf16 %v416_v13, %v413_v7  ;;  %v450_v29 = vmul.f32 %v918_v9, %v1072_v48  ;;  %v514_v31 = vmul.f32 %v910_v8, %v1085_v57 }
 0x108   : > { %866 = vst [vmem:[%s1080_s20 + $0x18] sm:$0xff] %v842_v10   ;;  %870 = vst [vmem:[%s1080_s20 + $0x38] sm:$0xff] %v862_v12   ;;  %v440_v33 = vmul.f32 %v1072_v48, %v384_v11  ;;  %v448_v35 = vmul.f32 %v1072_v48, %v416_v13  ;;  %v512_v37 = vmul.f32 %v1085_v57, %v384_v11 }
 0x109   : > { %865 = vst [vmem:[%s1080_s20 + $0x10] sm:$0xff] %v837_v14   ;;  %869 = vst [vmem:[%s1080_s20 + $0x30] sm:$0xff] %v857_v15   ;;  %v520_v39 = vmul.f32 %v1085_v57, %v416_v13  ;;  %v522_v41 = vmul.f32 %v918_v9, %v1085_v57 }
 0x10a   : > { %451 = vadd.xlane.f32.xlu0 %v435_v16  ;;  %529 = vadd.xlane.f32.xlu1 %v510_v17 }
 0x10e   : > { %467 = vadd.xlane.f32.xlu0 %v443_v18  ;;  %545 = vadd.xlane.f32.xlu1 %v518_v19 }
 0x112   : > { %523 = vadd.xlane.f32.xlu0 %v507_v20  ;;  %469 = vadd.xlane.f32.xlu1 %v444_v21 }
 0x116   : > { %539 = vadd.xlane.f32.xlu0 %v515_v22  ;;  %525 = vadd.xlane.f32.xlu1 %v508_v23 }
 0x11a   : > { %541 = vadd.xlane.f32.xlu1 %v516_v24  ;;  %453 = vadd.xlane.f32.xlu0 %v436_v25 }
 0x11e   : > { %463 = vadd.xlane.f32.xlu0 %v441_v26  ;;  %465 = vadd.xlane.f32.xlu1 %v442_v27 }
 0x122   : > { %479 = vadd.xlane.f32.xlu0 %v449_v28  ;;  %481 = vadd.xlane.f32.xlu1 %v450_v29 }
 0x126   : > { %535 = vadd.xlane.f32.xlu0 %v513_v30  ;;  %537 = vadd.xlane.f32.xlu1 %v514_v31 }
 0x12a   : > { %459 = vadd.xlane.f32.xlu0 %v439_v32  ;;  %461 = vadd.xlane.f32.xlu1 %v440_v33 }
 0x12e   : > { %475 = vadd.xlane.f32.xlu0 %v447_v34  ;;  %477 = vadd.xlane.f32.xlu1 %v448_v35 }
 0x132   : > { %531 = vadd.xlane.f32.xlu0 %v511_v36  ;;  %533 = vadd.xlane.f32.xlu1 %v512_v37 }
 0x136   : > { %547 = vadd.xlane.f32.xlu0 %v519_v38  ;;  %549 = vadd.xlane.f32.xlu1 %v520_v39 }
 0x13a   : > { %551 = vadd.xlane.f32.xlu0 %v521_v40  ;;  %553 = vadd.xlane.f32.xlu1 %v522_v41 }
 0x18b   : > { %v472_v42 = vpop.xlane.xlu0 %471  ;;  %v456_v43 = vpop.xlane.xlu1 %455 }
 0x18c   : > { %494 = vst.msk [vmem:[%s1134_s25 + $0x50] sm:$0xff] %vm483_vm0, %v472_v42  ;;  %486 = vst.msk [vmem:[%s1134_s25 + $0x10] sm:$0xff] %vm483_vm0, %v456_v43 }
 0x18f   : > { %v528_v44 = vpop.xlane.xlu0 %527  ;;  %v458_v45 = vpop.xlane.xlu1 %457 }
 0x190   : > { %557 = vst.msk [vmem:[%s1144_s28 + $0x10] sm:$0xff] %vm483_vm0, %v528_v44  ;;  %487 = vst.msk [vmem:[%s1134_s25 + $0x18] sm:$0xff] %vm483_vm0, %v458_v45 }
 0x193   : > { %v544_v46 = vpop.xlane.xlu0 %543  ;;  %v474_v47 = vpop.xlane.xlu1 %473 }
 0x194   : > { %565 = vst.msk [vmem:[%s1144_s28 + $0x50] sm:$0xff] %vm483_vm0, %v544_v46  ;;  %495 = vst.msk [vmem:[%s1134_s25 + $0x58] sm:$0xff] %vm483_vm0, %v474_v47 }
 0x197   : > { %v452_v48 = vpop.xlane.xlu0 %451  ;;  %v530_v49 = vpop.xlane.xlu1 %529 }
 0x198   : > { %484 = vst.msk [vmem:[%s1134_s25] sm:$0xff] %vm483_vm0, %v452_v48  ;;  %558 = vst.msk [vmem:[%s1144_s28 + $0x18] sm:$0xff] %vm483_vm0, %v530_v49 }
 0x19b   : > { %v468_v50 = vpop.xlane.xlu0 %467  ;;  %v546_v51 = vpop.xlane.xlu1 %545 }
 0x19c   : > { %492 = vst.msk [vmem:[%s1134_s25 + $0x40] sm:$0xff] %vm483_vm0, %v468_v50  ;;  %566 = vst.msk [vmem:[%s1144_s28 + $0x58] sm:$0xff] %vm483_vm0, %v546_v51 }
 0x19f   : > { %v524_v52 = vpop.xlane.xlu0 %523  ;;  %v470_v53 = vpop.xlane.xlu1 %469 }
 0x1a0   : > { %555 = vst.msk [vmem:[%s1144_s28] sm:$0xff] %vm483_vm0, %v524_v52  ;;  %493 = vst.msk [vmem:[%s1134_s25 + $0x48] sm:$0xff] %vm483_vm0, %v470_v53 }
 0x1a3   : > { %v540_v54 = vpop.xlane.xlu0 %539  ;;  %v526_v55 = vpop.xlane.xlu1 %525 }
 0x1a4   : > { %563 = vst.msk [vmem:[%s1144_s28 + $0x40] sm:$0xff] %vm483_vm0, %v540_v54  ;;  %556 = vst.msk [vmem:[%s1144_s28 + $0x8] sm:$0xff] %vm483_vm0, %v526_v55 }
 0x1a7   : > { %v542_v56 = vpop.xlane.xlu1 %541  ;;  %v454_v57 = vpop.xlane.xlu0 %453 }
 0x1a8   : > { %564 = vst.msk [vmem:[%s1144_s28 + $0x48] sm:$0xff] %vm483_vm0, %v542_v56  ;;  %485 = vst.msk [vmem:[%s1134_s25 + $0x8] sm:$0xff] %vm483_vm0, %v454_v57 }
 0x1ab   : > { %v464_v58 = vpop.xlane.xlu0 %463  ;;  %v466_v59 = vpop.xlane.xlu1 %465 }
 0x1ac   : > { %490 = vst.msk [vmem:[%s1134_s25 + $0x30] sm:$0xff] %vm483_vm0, %v464_v58  ;;  %491 = vst.msk [vmem:[%s1134_s25 + $0x38] sm:$0xff] %vm483_vm0, %v466_v59 }
 0x1af   : > { %v480_v60 = vpop.xlane.xlu0 %479  ;;  %v482_v61 = vpop.xlane.xlu1 %481 }
 0x1b0   : > { %498 = vst.msk [vmem:[%s1134_s25 + $0x70] sm:$0xff] %vm483_vm0, %v480_v60  ;;  %499 = vst.msk [vmem:[%s1134_s25 + $0x78] sm:$0xff] %vm483_vm0, %v482_v61 }
 0x1b3   : > { %v536_v62 = vpop.xlane.xlu0 %535  ;;  %v538_v63 = vpop.xlane.xlu1 %537 }
 0x1b4   : > { %561 = vst.msk [vmem:[%s1144_s28 + $0x30] sm:$0xff] %vm483_vm0, %v536_v62  ;;  %562 = vst.msk [vmem:[%s1144_s28 + $0x38] sm:$0xff] %vm483_vm0, %v538_v63 }
 0x1b7   : > { %v460_v0 = vpop.xlane.xlu0 %459  ;;  %v462_v1 = vpop.xlane.xlu1 %461 }
 0x1b8   : > { %488 = vst.msk [vmem:[%s1134_s25 + $0x20] sm:$0xff] %vm483_vm0, %v460_v0  ;;  %489 = vst.msk [vmem:[%s1134_s25 + $0x28] sm:$0xff] %vm483_vm0, %v462_v1 }
 0x1bb   : > { %v476_v2 = vpop.xlane.xlu0 %475  ;;  %v478_v3 = vpop.xlane.xlu1 %477 }
 0x1bc   : > { %496 = vst.msk [vmem:[%s1134_s25 + $0x60] sm:$0xff] %vm483_vm0, %v476_v2  ;;  %497 = vst.msk [vmem:[%s1134_s25 + $0x68] sm:$0xff] %vm483_vm0, %v478_v3 }
 0x1bf   : > { %v532_v4 = vpop.xlane.xlu0 %531  ;;  %v534_v5 = vpop.xlane.xlu1 %533 }
 0x1c0   : > { %559 = vst.msk [vmem:[%s1144_s28 + $0x20] sm:$0xff] %vm483_vm0, %v532_v4  ;;  %560 = vst.msk [vmem:[%s1144_s28 + $0x28] sm:$0xff] %vm483_vm0, %v534_v5 }
 0x1c3   : > { %v548_v6 = vpop.xlane.xlu0 %547  ;;  %v550_v7 = vpop.xlane.xlu1 %549 }
 0x1c4   : > { %567 = vst.msk [vmem:[%s1144_s28 + $0x60] sm:$0xff] %vm483_vm0, %v548_v6  ;;  %568 = vst.msk [vmem:[%s1144_s28 + $0x68] sm:$0xff] %vm483_vm0, %v550_v7 }
 0x1c7   : > { %v552_v8 = vpop.xlane.xlu0 %551  ;;  %v554_v9 = vpop.xlane.xlu1 %553 }
 0x1c8   : > { %569 = vst.msk [vmem:[%s1144_s28 + $0x70] sm:$0xff] %vm483_vm0, %v552_v8  ;;  %570 = vst.msk [vmem:[%s1144_s28 + $0x78] sm:$0xff] %vm483_vm0, %v554_v9 }
 0x1c9 PF: > { %s17_s21 = sadd.s32 1, %s949_s21  }
 0x1ca   : > { %p14_p4 = scmp.ge.s32.totalorder %s17_s21, 4  }
 0x1cc   :  { %16 = sbr.rel (!%p14_p4) target bundleno = 1 (0x1), region = 90 }

// kernel: gcn_forward.5
= control target key start
LH: loop header
LB: loop body
LE: loop exit
PB: predicated region body
PF: predicated region fallthrough
CT: control target
= control target key end

     0   :  { %12 = vsyncpa [#allocation3], 0  ;;  %s1488_s0 = inlined_call_operand.hbm [shape: f32[256,128], index: 0, kind: input, shape index: {}]   ;;  %s1489_s1 = inlined_call_operand.hbm [shape: f32[128,128], index: 1, kind: input, shape index: {}]   ;;  %s1490_s2 = inlined_call_operand.vmem [shape: f32[1,128], index: 2, kind: input, shape index: {}]   ;;  %s1491_s3 = inlined_call_operand.vmem [shape: f32[1,128], index: 3, kind: input, shape index: {}]   ;;  %s1492_s4 = inlined_call_operand.vmem [shape: bf16[256,128], index: 4, kind: output, shape index: {0}]   ;;  %s1493_s5 = inlined_call_operand.vmem [shape: f32[256,1], index: 5, kind: output, shape index: {1}]   ;;  %s1494_s6 = inlined_call_operand.vmem [shape: f32[256,1], index: 6, kind: output, shape index: {2}]  }
   0x1   :  { %14 = vsyncpa [#allocation3 + $0x1], 0 }
   0x2   :  { %15 = vsyncpa [#allocation5], 0  ;;  %s1184_s21 = smov 0   ;;  %s1186_s22 = smov 0  }
   0x3   :  { %s1188_s23 = smov 0   ;;  %s1190_s24 = smov 0  }
   0x4 LB: > { %s830_s25 = sadd.s32 4294967295, %s1143_s24   ;;  %p41_p0 = scmp.ne.s32.totalorder %s1135_s22, %s1131_s21  ;;  %s1143_s24 = sphi %s1190_s24, %s1510_s24   ;;  %s1139_s23 = sphi %s1188_s23, %s1509_s23   ;;  %s1135_s22 = sphi %s1186_s22, %s1508_s22   ;;  %s1131_s21 = sphi %s1184_s21, %s1507_s21  }
   0x5   : > { %p1206_p1 = scmp.eq.s32.totalorder %s830_s25, 0  ;;  %p832_p2 = scmp.ge.s32.totalorder %s1143_s24, 1 }
   0x6   : > { %p193_p3 = scmp.lt.s32.totalorder %s1143_s24, 3  ;;  %s1145_s29 = smov [#allocation4]  }
   0x7   : > { %s1499_s26 = scalar_select %p1206_p1, 1, 0 }
   0x8   : > { %p1214_p4 = por %p1206_p1, %p41_p0  ;;  %p1218_p5 = pnand %p832_p2, %p193_p3 }
   0x9   : > { %s205_s30 = sshll.u32 %s1145_s29, 4  ;;  %s1231_s8 = sadd.s32 1, %s1143_s24   ;;  %s206_s30 = int_to_ptr.vmem [resolvable:$true] %s205_s30 }
   0xa   : > { %s1500_s27 = scalar_select %p1214_p4, 1, 0 }
   0xb   : > { %s1501_s28 = scalar_select %p1218_p5, 1, 0 }
   0xc   : > { %p1001_p6 = pneg %p1218_p5  ;;  %s28_s9 = sadd.s32 1, %s1139_s23 }
   0xd   : > { %s25_s10 = ssub.s32 %s1143_s24, %s1231_s8  ;;  %s1047_s13 = scalar_lea.hbm %s1489_s1, 2048 }
   0xe   : > { %p1226_p7 = pnand %p1001_p6, %p1206_p1  ;;  %p1048_p8 = scmp.ne.s32.totalorder %s1489_s1, %s1047_s13 }
   0xf   : > { %p1054_p12 = scmp.lt.u32.totalorder %s1047_s13, %s1489_s1 }
  0x10   : > { %p1049_p9 = pneg %p1226_p7 }
  0x12   : > { %p1050_p10 = pnand %p1049_p9, %p1048_p8 }
  0x14   : > { %p1051_p11 = pneg %p1050_p10 }
  0x16   : > { %p1056_p13 = pnand %p1054_p12, %p1051_p11 }
  0x18   : > { %1059 = shalt.err (!%p1056_p13)
}
  0x19   : > { %s1060_s18 = scalar_lea.vmem %s206_s30, 2048  ;;  %p1068_p6 = scmp.lt.s32.totalorder %s206_s30, %s206_s30 }
  0x1a   : > { %p1061_p0 = scmp.ne.s32.totalorder %s206_s30, %s1060_s18  ;;  %p1069_p1 = scmp.lt.s32.totalorder %s1060_s18, %s1060_s18 }
  0x1c   : > { %p1063_p2 = pnand %p1061_p0, %p1049_p9  ;;  %p1070_p4 = por %p1069_p1, %p1068_p6 }
  0x1e   : > { %p1064_p3 = pneg %p1063_p2 }
  0x20   : > { %p1071_p5 = pnand %p1070_p4, %p1064_p3 }
  0x22   : > { %1074 = shalt.err (!%p1071_p5)
}
  0x23   : > { %s1146_s19 = smov 128   ;;  %s1147_s20 = smov 8  }
  0x24   : > { %1004 = dma.hbm_to_vmem [thread:$0]  (!%p1226_p7), %s1489_s1, 2048, %s206_s30, [#allocation5], %s1146_s19, %s1146_s19, %s1147_s20  }
  0x25   : > { %p26_p1 = scmp.eq.s32.totalorder %s25_s10, 0  ;;  %p35_p4 = scmp.ne.s32.totalorder %s1139_s23, %s1135_s22 }
  0x26   : > { %p36_p5 = scmp.eq.s32.totalorder %s1143_s24, 0  ;;  %p1010_p8 = scmp.lt.s32.totalorder %s1143_s24, 2 }
  0x27   : > { %s1260_s11 = scalar_select %p26_p1, %s1139_s23, %s28_s9  }
  0x28   : > { %p37_p9 = por %p36_p5, %p35_p4  ;;  %s225_s12 = sand.u32 1, %s1139_s23  }
  0x29   : > { %s835_s13 = sshll.u32 %s225_s12, 7  ;;  %s867_s14 = sshll.u32 %s1143_s24, 11 }
  0x2a   : > { %s1267_s7 = scalar_lea.hbm %s1488_s0, %s867_s14  ;;  %s229_s30 = scalar_lea.vmem [#allocation2], %s835_s13 }
  0x2b   : > { %s236_s10 = sshll.u32 %s229_s30, 4  ;;  %p1271_p7 = pnand %p1010_p8, %p37_p9  ;;  %s1269_s10 = int_to_ptr.vmem [resolvable:$true] %s236_s10 }
  0x2c   : > { %s1275_s17 = scalar_lea.sflag [#allocation3], %s225_s12  ;;  %s1075_s18 = scalar_lea.hbm %s1267_s7, 2048 }
  0x2d   : > { %p1076_p10 = scmp.ne.s32.totalorder %s1267_s7, %s1075_s18  ;;  %p1077_p11 = pneg %p1271_p7 }
  0x2e   : > { %s1080_s13 = scalar_lea.hbm %s1488_s0, 4096  ;;  %p1081_p0 = scmp.lt.u32.totalorder %s1267_s7, %s1488_s0 }
  0x2f   : > { %p1078_p12 = pnand %p1077_p11, %p1076_p10  ;;  %p1082_p2 = scmp.lt.u32.totalorder %s1080_s13, %s1075_s18 }
  0x30   : > { %p1084_p6 = scmp.lt.u32.totalorder %s1075_s18, %s1267_s7 }
  0x31   : > { %p1079_p13 = pneg %p1078_p12  ;;  %p1083_p3 = por %p1082_p2, %p1081_p0 }
  0x33   : > { %p1085_p1 = por %p1084_p6, %p1083_p3 }
  0x35   : > { %p1086_p4 = pnand %p1085_p1, %p1079_p13 }
  0x37   : > { %1089 = shalt.err (!%p1086_p4)
}
  0x38   : > { %s1090_s12 = scalar_lea.vmem %s1269_s10, 2048  ;;  %s1148_s16 = smov [#allocation2]  }
  0x39   : > { %p1091_p5 = scmp.ne.s32.totalorder %s1269_s10, %s1090_s12  ;;  %s1095_s30 = sshll.u32 %s1148_s16, 4  ;;  %s1096_s30 = int_to_ptr.vmem [resolvable:$false] %s1095_s30 }
  0x3a   : > { %s1097_s21 = scalar_lea.vmem %s1096_s30, 4096  ;;  %p1098_p10 = scmp.lt.s32.totalorder %s1269_s10, %s1096_s30 }
  0x3b   : > { %p1093_p8 = pnand %p1091_p5, %p1077_p11  ;;  %p1099_p12 = scmp.lt.s32.totalorder %s1097_s21, %s1090_s12 }
  0x3d   : > { %p1094_p9 = pneg %p1093_p8  ;;  %p1100_p0 = por %p1099_p12, %p1098_p10 }
  0x3f   : > { %p1101_p2 = pnand %p1100_p0, %p1094_p9 }
  0x41   : > { %1104 = shalt.err (!%p1101_p2)
}
  0x42   : > { %1008 = dma.hbm_to_vmem [thread:$0]  (!%p1271_p7), %s1267_s7, 2048, %s1269_s10, %s1275_s17, %s1146_s19, %s1146_s19, %s1147_s20  }
  0x43   : > { %p1504_p11 = scmp.ne.s32.totalorder %s1501_s28, 0 }
  0x44   : > { %s250_s18 = sand.u32 (!%p1504_p11), 1, %s1135_s22   ;;  %p1505_p13 = scmp.ne.s32.totalorder (!%p1504_p11), %s1500_s27, 0 }
  0x45   : > { %248 = sbr.rel (%p1504_p11) target bundleno = 532 (0x214), region = 36  ;;  %s839_s29 = sshll.u32 (!%p1504_p11), %s250_s18, 7 }
  0x46   : > { %s251_s13 = scalar_lea.sflag (!%p1504_p11), [#allocation3], %s250_s18  ;;  %s1309_s14 = scalar_lea.vmem (!%p1504_p11), [#allocation2], %s839_s29 }
  0x4c   : > { %1122 = dma.done.wait (%p1505_p13), %s251_s13, 2048  }
  0x4d   : > { %1124 = vsyncadd (%p1505_p13), %s251_s13, 4294965248  ;;  %p1506_p3 = scmp.ne.s32.totalorder %s1499_s26, 0 }
  0x4f   : > { %1126 = dma.done.wait (%p1506_p3), [#allocation5], 2048  }
  0x50   : > { %1128 = vsyncadd (%p1506_p3), [#allocation5], 4294965248  ;;  %v341_v0 = vld [vmem:[#allocation4] sm:$0xff]  ;;  %v342_v1 = vld [vmem:[#allocation4 + $0x8] sm:$0xff]  ;;  %s841_s26 = sshll.u32 %s830_s25, 4  ;;  %vm517_vm0 = vcmask 7168  }
  0x51   : > { %v343_v2 = vld [vmem:[#allocation4 + $0x10] sm:$0xff]  ;;  %v357_v3 = vpack.c.bf16 %v342_v1, %v341_v0  ;;  %v344_v4 = vld [vmem:[#allocation4 + $0x18] sm:$0xff]  ;;  %v345_v6 = vld [vmem:[#allocation4 + $0x20] sm:$0xff]  ;;  %p299_p7 = scmp.lt.s32.totalorder %s841_s26, 31 }
  0x52   : > { %v358_v5 = vpack.c.bf16 %v344_v4, %v343_v2  ;;  %v346_v7 = vld [vmem:[#allocation4 + $0x28] sm:$0xff]  ;;  %v347_v9 = vld [vmem:[#allocation4 + $0x30] sm:$0xff]  ;;  %v317_v10 = vld [vmem:[%s1309_s14] sm:$0xff] }
  0x53   : > { %947 = vmatprep.subr.bf16.mxu0 %v357_v3  ;;  %979 = vmatprep.subr.bf16.mxu1 %v357_v3  ;;  %v359_v8 = vpack.c.bf16 %v346_v7, %v345_v6  ;;  %v318_v11 = vld [vmem:[%s1309_s14 + $0x8] sm:$0xff]  ;;  %v348_v12 = vld [vmem:[#allocation4 + $0x38] sm:$0xff]  ;;  %v325_v14 = vld [vmem:[%s1309_s14 + $0x40] sm:$0xff]  ;;  %s1512_s26 = smov (!%p299_p7, %s841_s26), 31 }
  0x54   : > { %948 = vmatpush3.bf16.msra.mxu0 %v357_v3  ;;  %987 = vmatpush3.bf16.msra.mxu1 %v357_v3  ;;  %v333_v13 = vpack.c.bf16 %v318_v11, %v317_v10  ;;  %v326_v15 = vld [vmem:[%s1309_s14 + $0x48] sm:$0xff]  ;;  %v360_v17 = vpack.c.bf16 %v348_v12, %v347_v9  ;;  %v349_v18 = vld [vmem:[#allocation4 + $0x40] sm:$0xff]  ;;  %v351_v21 = vld [vmem:[#allocation4 + $0x50] sm:$0xff]  ;;  %s842_s19 = sshll.u32 %s1512_s26, 2  ;;  %s844_s9 = sshll.u32 %s1512_s26, 3 }
  0x55   : > { %949 = vmatprep.subr.bf16.mxu0 %v358_v5  ;;  %980 = vmatprep.subr.bf16.mxu1 %v358_v5  ;;  %v337_v16 = vpack.c.bf16 %v326_v15, %v325_v14  ;;  %v350_v19 = vld [vmem:[#allocation4 + $0x48] sm:$0xff]  ;;  %v352_v22 = vld [vmem:[#allocation4 + $0x58] sm:$0xff]  ;;  %v353_v24 = vld [vmem:[#allocation4 + $0x60] sm:$0xff]  ;;  %s1350_s20 = scalar_lea.vmem %s1492_s4, %s842_s19  ;;  %s1404_s12 = scalar_lea.vmem %s1493_s5, %s844_s9 }
  0x56   : > { %963 = vmatprep.mubr.bf16.mxu0 %v333_v13  ;;  %v361_v20 = vpack.c.bf16 %v350_v19, %v349_v18  ;;  %v362_v23 = vpack.c.bf16 %v352_v22, %v351_v21  ;;  %v354_v25 = vld [vmem:[#allocation4 + $0x68] sm:$0xff]  ;;  %v355_v27 = vld [vmem:[#allocation4 + $0x70] sm:$0xff]  ;;  %v356_v28 = vld [vmem:[#allocation4 + $0x78] sm:$0xff]  ;;  %s1413_s21 = scalar_lea.vmem %s1494_s6, %s844_s9 }
  0x57   : > { %971 = vmatprep.mubr.bf16.mxu1 %v337_v16  ;;  %v363_v26 = vpack.c.bf16 %v354_v25, %v353_v24  ;;  %v364_v29 = vpack.c.bf16 %v356_v28, %v355_v27  ;;  %v319_v30 = vld [vmem:[%s1309_s14 + $0x10] sm:$0xff]  ;;  %v320_v31 = vld [vmem:[%s1309_s14 + $0x18] sm:$0xff]  ;;  %v321_v34 = vld [vmem:[%s1309_s14 + $0x20] sm:$0xff] }
  0x58   : > { %950 = vmatpush3.bf16.msra.mxu0 %v358_v5  ;;  %988 = vmatpush3.bf16.msra.mxu1 %v358_v5  ;;  %v327_v32 = vld [vmem:[%s1309_s14 + $0x50] sm:$0xff]  ;;  %v328_v33 = vld [vmem:[%s1309_s14 + $0x58] sm:$0xff]  ;;  %v322_v35 = vld [vmem:[%s1309_s14 + $0x28] sm:$0xff]  ;;  %v334_v38 = vpack.c.bf16 %v320_v31, %v319_v30 }
  0x59   : > { %951 = vmatprep.subr.bf16.mxu0 %v359_v8  ;;  %981 = vmatprep.subr.bf16.mxu1 %v359_v8  ;;  %v329_v36 = vld [vmem:[%s1309_s14 + $0x60] sm:$0xff]  ;;  %v330_v37 = vld [vmem:[%s1309_s14 + $0x68] sm:$0xff]  ;;  %v338_v39 = vpack.c.bf16 %v328_v33, %v327_v32  ;;  %v335_v40 = vpack.c.bf16 %v322_v35, %v321_v34  ;;  %v323_v42 = vld [vmem:[%s1309_s14 + $0x30] sm:$0xff] }
  0x5a   : > { %v339_v41 = vpack.c.bf16 %v330_v37, %v329_v36  ;;  %v324_v43 = vld [vmem:[%s1309_s14 + $0x38] sm:$0xff]  ;;  %v331_v44 = vld [vmem:[%s1309_s14 + $0x70] sm:$0xff]  ;;  %v1342_v48 = vld [vmem:[%s1490_s2] ss:$0 sm:$0xff] }
  0x5b   : > { %v332_v45 = vld [vmem:[%s1309_s14 + $0x78] sm:$0xff]  ;;  %v336_v46 = vpack.c.bf16 %v324_v43, %v323_v42  ;;  %v1355_v57 = vld [vmem:[%s1491_s3] ss:$0 sm:$0xff] }
  0x5c   : > { %952 = vmatpush3.bf16.msra.mxu0 %v359_v8  ;;  %989 = vmatpush3.bf16.msra.mxu1 %v359_v8  ;;  %v340_v47 = vpack.c.bf16 %v332_v45, %v331_v44 }
  0x5d   : > { %953 = vmatprep.subr.bf16.mxu0 %v360_v17  ;;  %982 = vmatprep.subr.bf16.mxu1 %v360_v17 }
  0x60   : > { %954 = vmatpush3.bf16.msra.mxu0 %v360_v17  ;;  %990 = vmatpush3.bf16.msra.mxu1 %v360_v17 }
  0x61   : > { %955 = vmatprep.subr.bf16.mxu0 %v361_v20  ;;  %983 = vmatprep.subr.bf16.mxu1 %v361_v20 }
  0x64   : > { %956 = vmatpush3.bf16.msra.mxu0 %v361_v20  ;;  %991 = vmatpush3.bf16.msra.mxu1 %v361_v20 }
  0x65   : > { %957 = vmatprep.subr.bf16.mxu0 %v362_v23  ;;  %984 = vmatprep.subr.bf16.mxu1 %v362_v23 }
  0x68   : > { %958 = vmatpush3.bf16.msra.mxu0 %v362_v23  ;;  %992 = vmatpush3.bf16.msra.mxu1 %v362_v23 }
  0x69   : > { %959 = vmatprep.subr.bf16.mxu0 %v363_v26  ;;  %985 = vmatprep.subr.bf16.mxu1 %v363_v26 }
  0x6c   : > { %960 = vmatpush3.bf16.msra.mxu0 %v363_v26  ;;  %993 = vmatpush3.bf16.msra.mxu1 %v363_v26 }
  0x6d   : > { %961 = vmatprep.subr.bf16.mxu0 %v364_v29  ;;  %986 = vmatprep.subr.bf16.mxu1 %v364_v29 }
  0x70   : > { %962 = vmatpush3.bf16.msra.mxu0 %v364_v29  ;;  %994 = vmatpush3.bf16.msra.mxu1 %v364_v29 }
  0x73   : > { %964 = vmatmul.mubr.bf16.vlgmr.msra.gmra.mrb[0].mxu0 %v334_v38  ;;  %972 = vmatmul.mubr.bf16.vlgmr.msra.gmra.mrb[0].mxu1 %v338_v39 }
  0x74   : > { %967 = vmatprep.mubr.bf16.mxu0 %v335_v40  ;;  %975 = vmatprep.mubr.bf16.mxu1 %v339_v41 }
  0x7b   : > { %968 = vmatmul.mubr.bf16.gmra.mrb[4].mxu0 %v336_v46  ;;  %976 = vmatmul.mubr.bf16.gmra.mrb[4].mxu1 %v340_v47 }
 0x146   : > { %v965_v49 = vpop.f32.mrb[0].mxu0  ;;  %v973_v50 = vpop.f32.mrb[0].mxu1 }
 0x147   : > { %v399_v51 = vpop.f32.mrb[1].mxu0  ;;  %v431_v52 = vpop.f32.mrb[1].mxu1  ;;  %v479_v53 = vmul.f32 %v973_v50, %v1342_v48  ;;  %v471_v54 = vmul.f32 %v965_v49, %v1342_v48  ;;  %v543_v0 = vmul.f32 %v965_v49, %v1355_v57  ;;  %v551_v4 = vmul.f32 %v973_v50, %v1355_v57 }
 0x148   : > { %v966_v55 = vpop.f32.mrb[2].mxu0  ;;  %v974_v56 = vpop.f32.mrb[2].mxu1  ;;  %v469_v16 = vmul.f32 %v1342_v48, %v399_v51  ;;  %v477_v18 = vmul.f32 %v1342_v48, %v431_v52  ;;  %v541_v20 = vmul.f32 %v1355_v57, %v399_v51  ;;  %v549_v22 = vmul.f32 %v1355_v57, %v431_v52 }
 0x149   : > { %v892_v58 = vpack.c.bf16 %v966_v55, %v965_v49  ;;  %v912_v59 = vpack.c.bf16 %v974_v56, %v973_v50  ;;  %505 = vadd.xlane.f32.xlu0 %v479_v53  ;;  %v434_v60 = vpop.f32.mrb[3].mxu1  ;;  %489 = vadd.xlane.f32.xlu1 %v471_v54  ;;  %v402_v61 = vpop.f32.mrb[3].mxu0  ;;  %v472_v1 = vmul.f32 %v966_v55, %v1342_v48 }
 0x14a   : > { %v907_v62 = vpack.c.bf16 %v434_v60, %v431_v52  ;;  %v887_v63 = vpack.c.bf16 %v402_v61, %v399_v51  ;;  %v480_v5 = vmul.f32 %v974_v56, %v1342_v48  ;;  %v544_v17 = vmul.f32 %v966_v55, %v1355_v57 }
 0x14b   : > { %924 = vst [vmem:[%s1350_s20 + $0x8] sm:$0xff] %v892_v58   ;;  %928 = vst [vmem:[%s1350_s20 + $0x28] sm:$0xff] %v912_v59   ;;  %v552_v19 = vmul.f32 %v974_v56, %v1355_v57  ;;  %v478_v21 = vmul.f32 %v1342_v48, %v434_v60  ;;  %v542_v23 = vmul.f32 %v1355_v57, %v402_v61 }
 0x14c   : > { %927 = vst [vmem:[%s1350_s20 + $0x20] sm:$0xff] %v907_v62   ;;  %888 = vst [vmem:[%s1350_s20] sm:$0xff] %v887_v63   ;;  %v550_v24 = vmul.f32 %v1355_v57, %v434_v60  ;;  %v470_v25 = vmul.f32 %v1342_v48, %v402_v61 }
 0x14d   : > { %561 = vadd.xlane.f32.xlu0 %v543_v0  ;;  %491 = vadd.xlane.f32.xlu1 %v472_v1 }
 0x14e   : > { %v969_v2 = vpop.f32.mrb[4].mxu0  ;;  %v1363_v3 = vpop.f32.mrb[4].mxu1 }
 0x14f   : > { %v415_v6 = vpop.f32.mrb[5].mxu0  ;;  %v447_v7 = vpop.f32.mrb[5].mxu1  ;;  %v475_v26 = vmul.f32 %v969_v2, %v1342_v48  ;;  %v483_v28 = vmul.f32 %v1363_v3, %v1342_v48  ;;  %v547_v30 = vmul.f32 %v969_v2, %v1355_v57  ;;  %v555_v40 = vmul.f32 %v1363_v3, %v1355_v57 }
 0x150   : > { %v970_v8 = vpop.f32.mrb[6].mxu0  ;;  %v978_v9 = vpop.f32.mrb[6].mxu1  ;;  %v473_v32 = vmul.f32 %v1342_v48, %v415_v6  ;;  %v481_v34 = vmul.f32 %v1342_v48, %v447_v7  ;;  %v545_v36 = vmul.f32 %v1355_v57, %v415_v6  ;;  %v553_v38 = vmul.f32 %v1355_v57, %v447_v7 }
 0x151   : > { %577 = vadd.xlane.f32.xlu0 %v551_v4  ;;  %507 = vadd.xlane.f32.xlu1 %v480_v5  ;;  %v902_v10 = vpack.c.bf16 %v970_v8, %v969_v2  ;;  %v418_v11 = vpop.f32.mrb[7].mxu0  ;;  %v922_v12 = vpack.c.bf16 %v978_v9, %v1363_v3  ;;  %v450_v13 = vpop.f32.mrb[7].mxu1  ;;  %v476_v27 = vmul.f32 %v970_v8, %v1342_v48 }
 0x152   : > { %v897_v14 = vpack.c.bf16 %v418_v11, %v415_v6  ;;  %v917_v15 = vpack.c.bf16 %v450_v13, %v447_v7  ;;  %v484_v29 = vmul.f32 %v978_v9, %v1342_v48  ;;  %v548_v31 = vmul.f32 %v970_v8, %v1355_v57 }
 0x153   : > { %926 = vst [vmem:[%s1350_s20 + $0x18] sm:$0xff] %v902_v10   ;;  %930 = vst [vmem:[%s1350_s20 + $0x38] sm:$0xff] %v922_v12   ;;  %v474_v33 = vmul.f32 %v1342_v48, %v418_v11  ;;  %v482_v35 = vmul.f32 %v1342_v48, %v450_v13  ;;  %v546_v37 = vmul.f32 %v1355_v57, %v418_v11 }
 0x154   : > { %925 = vst [vmem:[%s1350_s20 + $0x10] sm:$0xff] %v897_v14   ;;  %929 = vst [vmem:[%s1350_s20 + $0x30] sm:$0xff] %v917_v15   ;;  %v554_v39 = vmul.f32 %v1355_v57, %v450_v13  ;;  %v556_v41 = vmul.f32 %v978_v9, %v1355_v57 }
 0x155   : > { %485 = vadd.xlane.f32.xlu0 %v469_v16  ;;  %563 = vadd.xlane.f32.xlu1 %v544_v17 }
 0x159   : > { %501 = vadd.xlane.f32.xlu0 %v477_v18  ;;  %579 = vadd.xlane.f32.xlu1 %v552_v19 }
 0x15d   : > { %557 = vadd.xlane.f32.xlu0 %v541_v20  ;;  %503 = vadd.xlane.f32.xlu1 %v478_v21 }
 0x161   : > { %573 = vadd.xlane.f32.xlu0 %v549_v22  ;;  %559 = vadd.xlane.f32.xlu1 %v542_v23 }
 0x165   : > { %575 = vadd.xlane.f32.xlu1 %v550_v24  ;;  %487 = vadd.xlane.f32.xlu0 %v470_v25 }
 0x169   : > { %497 = vadd.xlane.f32.xlu0 %v475_v26  ;;  %499 = vadd.xlane.f32.xlu1 %v476_v27 }
 0x16d   : > { %513 = vadd.xlane.f32.xlu0 %v483_v28  ;;  %515 = vadd.xlane.f32.xlu1 %v484_v29 }
 0x171   : > { %569 = vadd.xlane.f32.xlu0 %v547_v30  ;;  %571 = vadd.xlane.f32.xlu1 %v548_v31 }
 0x175   : > { %493 = vadd.xlane.f32.xlu0 %v473_v32  ;;  %495 = vadd.xlane.f32.xlu1 %v474_v33 }
 0x179   : > { %509 = vadd.xlane.f32.xlu0 %v481_v34  ;;  %511 = vadd.xlane.f32.xlu1 %v482_v35 }
 0x17d   : > { %565 = vadd.xlane.f32.xlu0 %v545_v36  ;;  %567 = vadd.xlane.f32.xlu1 %v546_v37 }
 0x181   : > { %581 = vadd.xlane.f32.xlu0 %v553_v38  ;;  %583 = vadd.xlane.f32.xlu1 %v554_v39 }
 0x185   : > { %585 = vadd.xlane.f32.xlu0 %v555_v40  ;;  %587 = vadd.xlane.f32.xlu1 %v556_v41 }
 0x1d6   : > { %v506_v42 = vpop.xlane.xlu0 %505  ;;  %v490_v43 = vpop.xlane.xlu1 %489 }
 0x1d7   : > { %528 = vst.msk [vmem:[%s1404_s12 + $0x50] sm:$0xff] %vm517_vm0, %v506_v42  ;;  %520 = vst.msk [vmem:[%s1404_s12 + $0x10] sm:$0xff] %vm517_vm0, %v490_v43 }
 0x1da   : > { %v562_v44 = vpop.xlane.xlu0 %561  ;;  %v492_v45 = vpop.xlane.xlu1 %491 }
 0x1db   : > { %591 = vst.msk [vmem:[%s1413_s21 + $0x10] sm:$0xff] %vm517_vm0, %v562_v44  ;;  %521 = vst.msk [vmem:[%s1404_s12 + $0x18] sm:$0xff] %vm517_vm0, %v492_v45 }
 0x1de   : > { %v578_v46 = vpop.xlane.xlu0 %577  ;;  %v508_v47 = vpop.xlane.xlu1 %507 }
 0x1df   : > { %599 = vst.msk [vmem:[%s1413_s21 + $0x50] sm:$0xff] %vm517_vm0, %v578_v46  ;;  %529 = vst.msk [vmem:[%s1404_s12 + $0x58] sm:$0xff] %vm517_vm0, %v508_v47 }
 0x1e2   : > { %v486_v48 = vpop.xlane.xlu0 %485  ;;  %v564_v49 = vpop.xlane.xlu1 %563 }
 0x1e3   : > { %518 = vst.msk [vmem:[%s1404_s12] sm:$0xff] %vm517_vm0, %v486_v48  ;;  %592 = vst.msk [vmem:[%s1413_s21 + $0x18] sm:$0xff] %vm517_vm0, %v564_v49 }
 0x1e6   : > { %v502_v50 = vpop.xlane.xlu0 %501  ;;  %v580_v51 = vpop.xlane.xlu1 %579 }
 0x1e7   : > { %526 = vst.msk [vmem:[%s1404_s12 + $0x40] sm:$0xff] %vm517_vm0, %v502_v50  ;;  %600 = vst.msk [vmem:[%s1413_s21 + $0x58] sm:$0xff] %vm517_vm0, %v580_v51 }
 0x1ea   : > { %v558_v52 = vpop.xlane.xlu0 %557  ;;  %v504_v53 = vpop.xlane.xlu1 %503 }
 0x1eb   : > { %589 = vst.msk [vmem:[%s1413_s21] sm:$0xff] %vm517_vm0, %v558_v52  ;;  %527 = vst.msk [vmem:[%s1404_s12 + $0x48] sm:$0xff] %vm517_vm0, %v504_v53 }
 0x1ee   : > { %v574_v54 = vpop.xlane.xlu0 %573  ;;  %v560_v55 = vpop.xlane.xlu1 %559 }
 0x1ef   : > { %597 = vst.msk [vmem:[%s1413_s21 + $0x40] sm:$0xff] %vm517_vm0, %v574_v54  ;;  %590 = vst.msk [vmem:[%s1413_s21 + $0x8] sm:$0xff] %vm517_vm0, %v560_v55 }
 0x1f2   : > { %v576_v56 = vpop.xlane.xlu1 %575  ;;  %v488_v57 = vpop.xlane.xlu0 %487 }
 0x1f3   : > { %598 = vst.msk [vmem:[%s1413_s21 + $0x48] sm:$0xff] %vm517_vm0, %v576_v56  ;;  %519 = vst.msk [vmem:[%s1404_s12 + $0x8] sm:$0xff] %vm517_vm0, %v488_v57 }
 0x1f6   : > { %v498_v58 = vpop.xlane.xlu0 %497  ;;  %v500_v59 = vpop.xlane.xlu1 %499 }
 0x1f7   : > { %524 = vst.msk [vmem:[%s1404_s12 + $0x30] sm:$0xff] %vm517_vm0, %v498_v58  ;;  %525 = vst.msk [vmem:[%s1404_s12 + $0x38] sm:$0xff] %vm517_vm0, %v500_v59 }
 0x1fa   : > { %v514_v60 = vpop.xlane.xlu0 %513  ;;  %v516_v61 = vpop.xlane.xlu1 %515 }
 0x1fb   : > { %532 = vst.msk [vmem:[%s1404_s12 + $0x70] sm:$0xff] %vm517_vm0, %v514_v60  ;;  %533 = vst.msk [vmem:[%s1404_s12 + $0x78] sm:$0xff] %vm517_vm0, %v516_v61 }
 0x1fe   : > { %v570_v62 = vpop.xlane.xlu0 %569  ;;  %v572_v63 = vpop.xlane.xlu1 %571 }
 0x1ff   : > { %595 = vst.msk [vmem:[%s1413_s21 + $0x30] sm:$0xff] %vm517_vm0, %v570_v62  ;;  %596 = vst.msk [vmem:[%s1413_s21 + $0x38] sm:$0xff] %vm517_vm0, %v572_v63 }
 0x202   : > { %v494_v0 = vpop.xlane.xlu0 %493  ;;  %v496_v1 = vpop.xlane.xlu1 %495 }
 0x203   : > { %522 = vst.msk [vmem:[%s1404_s12 + $0x20] sm:$0xff] %vm517_vm0, %v494_v0  ;;  %523 = vst.msk [vmem:[%s1404_s12 + $0x28] sm:$0xff] %vm517_vm0, %v496_v1 }
 0x206   : > { %v510_v2 = vpop.xlane.xlu0 %509  ;;  %v512_v3 = vpop.xlane.xlu1 %511 }
 0x207   : > { %530 = vst.msk [vmem:[%s1404_s12 + $0x60] sm:$0xff] %vm517_vm0, %v510_v2  ;;  %531 = vst.msk [vmem:[%s1404_s12 + $0x68] sm:$0xff] %vm517_vm0, %v512_v3 }
 0x20a   : > { %v566_v4 = vpop.xlane.xlu0 %565  ;;  %v568_v5 = vpop.xlane.xlu1 %567 }
 0x20b   : > { %593 = vst.msk [vmem:[%s1413_s21 + $0x20] sm:$0xff] %vm517_vm0, %v566_v4  ;;  %594 = vst.msk [vmem:[%s1413_s21 + $0x28] sm:$0xff] %vm517_vm0, %v568_v5 }
 0x20e   : > { %v582_v6 = vpop.xlane.xlu0 %581  ;;  %v584_v7 = vpop.xlane.xlu1 %583 }
 0x20f   : > { %601 = vst.msk [vmem:[%s1413_s21 + $0x60] sm:$0xff] %vm517_vm0, %v582_v6  ;;  %602 = vst.msk [vmem:[%s1413_s21 + $0x68] sm:$0xff] %vm517_vm0, %v584_v7 }
 0x212   : > { %v586_v8 = vpop.xlane.xlu0 %585  ;;  %v588_v9 = vpop.xlane.xlu1 %587 }
 0x213   : > { %603 = vst.msk [vmem:[%s1413_s21 + $0x70] sm:$0xff] %vm517_vm0, %v586_v8  ;;  %604 = vst.msk [vmem:[%s1413_s21 + $0x78] sm:$0xff] %vm517_vm0, %v588_v9 }
 0x214 PF: > { %p18_p6 = scmp.ge.s32.totalorder %s1231_s8, 4   ;;  %s1507_s21 = smov %s1135_s22 }
 0x215   : > { %s1508_s22 = smov %s1139_s23  ;;  %s1509_s23 = smov %s1260_s11 }
 0x216   : > { %s1510_s24 = smov %s1231_s8  ;;  %20 = sbr.rel (!%p18_p6) target bundleno = 4 (0x4), region = 104 }
 0x21d   :  { %741 = vsyncpa [#allocation3], 1 }
 0x21e   :  { %743 = vsyncpa [#allocation3 + $0x1], 1 }
 0x21f   :  { %744 = vsyncpa [#allocation5], 1 }

// kernel: gcn_forward.6
= control target key start
LH: loop header
LB: loop body
LE: loop exit
PB: predicated region body
PF: predicated region fallthrough
CT: control target
= control target key end

     0   :  { %s2069_s18 = smov 0   ;;  %s2071_s19 = smov 0   ;;  %s2760_s0 = inlined_call_operand.vmem [shape: f32[256,1], index: 0, kind: input, shape index: {}]   ;;  %s2761_s1 = inlined_call_operand.vmem [shape: f32[1,256], index: 1, kind: input, shape index: {}]   ;;  %s2762_s2 = inlined_call_operand.vmem [shape: bf16[256,256], index: 2, kind: input, shape index: {}]   ;;  %s2763_s3 = inlined_call_operand.vmem [shape: bf16[256,128], index: 3, kind: input, shape index: {}]   ;;  %s2764_s4 = inlined_call_operand.vmem [shape: f32[1,128], index: 4, kind: input, shape index: {}]   ;;  %s2765_s5 = inlined_call_operand.vmem [shape: f32[256,128], index: 5, kind: output, shape index: {}]  }
   0x1   :  { %s2073_s20 = smov 0   ;;  %s2075_s21 = smov 0  }
   0x2   :  { %s2077_s22 = smov 0   ;;  %s2079_s23 = smov 0  }
   0x3   :  { %s2081_s24 = smov 0  }
   0x4 LB: > { %s24_s25 = sadd.s32 1, %s2025_s22  ;;  %s27_s26 = sadd.s32 1, %s2029_s23  ;;  %s2033_s24 = sphi %s2081_s24, %s15_s24   ;;  %s2029_s23 = sphi %s2079_s23, %s2797_s23   ;;  %s2025_s22 = sphi %s2077_s22, %s2796_s22   ;;  %s2021_s21 = sphi %s2075_s21, %s2795_s21   ;;  %s2017_s20 = sphi %s2073_s20, %s2794_s20   ;;  %s2013_s19 = sphi %s2071_s19, %s2793_s19   ;;  %s2009_s18 = sphi %s2069_s18, %s2792_s18  }
   0x5   : > { %p25_p0 = scmp.ge.s32.totalorder %s24_s25, 2  ;;  %p95_p1 = scmp.ne.s32.totalorder %s2013_s19, %s2009_s18 }
   0x6   : > { %p96_p2 = scmp.eq.s32.totalorder %s2033_s24, 0  ;;  %s88_s30 = sadd.s32 1, %s2013_s19 }
   0x7   : > { %s2799_s25 = smov (%p25_p0, %s24_s25), 0  ;;  %s2801_s26 = smov (!%p25_p0, %s27_s26), %s2029_s23 }
   0x8   : > { %p97_p3 = por %p96_p2, %p95_p1  ;;  %p29_p4 = scmp.ge.s32.totalorder %s2801_s26, 2 }
   0x9   : > { %s84_s27 = ssub.s32 %s2025_s22, %s2799_s25  ;;  %p1719_p6 = scmp.ge.s32.totalorder %s2033_s24, 4 }
   0xa   : > { %s2803_s26 = smov (%p29_p4, %s2801_s26), 0 }
   0xb   : > { %s83_s28 = ssub.s32 %s2029_s23, %s2803_s26  ;;  %197 = sbr.rel (%p1719_p6) target bundleno = 34 (0x22), region = 20 }
   0xc   : > { %s85_s29 = sor.u32 %s84_s27, %s83_s28 }
   0xd   : > { %p86_p5 = scmp.eq.s32.totalorder %s85_s29, 0 }
   0xf   : > { %s2120_s6 = scalar_select %p86_p5, %s2013_s19, %s88_s30  }
  0x12   : > { %215 = sbr.rel (!%p97_p3) target bundleno = 34 (0x22), region = 32  ;;  %s217_s7 = sand.u32 (%p97_p3), 1, %s2013_s19  }
  0x13   : > { %s1746_s8 = sshll.u32 (%p97_p3), %s2029_s23, 5  ;;  %s1720_s9 = sshll.u32 (%p97_p3), %s217_s7, 6 }
  0x14   : > { %s222_s10 = sadd.s32 (%p97_p3), %s2025_s22, %s1746_s8  ;;  %s219_s15 = scalar_lea.vmem (%p97_p3), [#allocation5], %s1720_s9 }
  0x15   : > { %s1723_s11 = sshll.u32 (%p97_p3), %s222_s10, 2 }
  0x16   : > { %s2129_s14 = scalar_lea.vmem (%p97_p3), %s2762_s2, %s1723_s11 }
  0x17   : > { %v240_v0 = vld [vmem:[%s2129_s14] sm:$0xf] (%p97_p3)  ;;  %v242_v1 = vld [vmem:[%s2129_s14 + $0x8] sm:$0xf] (%p97_p3)  ;;  %v244_v2 = vld [vmem:[%s2129_s14 + $0x10] sm:$0xf] (%p97_p3) }
  0x18   : > { %241 = vst [vmem:[%s219_s15] sm:$0xf] (%p97_p3), %v240_v0  ;;  %243 = vst [vmem:[%s219_s15 + $0x4] sm:$0xf] (%p97_p3), %v242_v1  ;;  %v246_v3 = vld [vmem:[%s2129_s14 + $0x18] sm:$0xf] (%p97_p3) }
  0x19   : > { %245 = vst [vmem:[%s219_s15 + $0x8] sm:$0xf] %v244_v2  ;;  %v248_v4 = vld [vmem:[%s2129_s14 + $0x20] sm:$0xf]  ;;  %v250_v5 = vld [vmem:[%s2129_s14 + $0x28] sm:$0xf] }
  0x1a   : > { %247 = vst [vmem:[%s219_s15 + $0xc] sm:$0xf] %v246_v3  ;;  %249 = vst [vmem:[%s219_s15 + $0x10] sm:$0xf] %v248_v4  ;;  %v252_v6 = vld [vmem:[%s2129_s14 + $0x30] sm:$0xf] }
  0x1b   : > { %251 = vst [vmem:[%s219_s15 + $0x14] sm:$0xf] %v250_v5  ;;  %v254_v7 = vld [vmem:[%s2129_s14 + $0x38] sm:$0xf]  ;;  %v256_v8 = vld [vmem:[%s2129_s14 + $0x40] sm:$0xf] }
  0x1c   : > { %253 = vst [vmem:[%s219_s15 + $0x18] sm:$0xf] %v252_v6  ;;  %255 = vst [vmem:[%s219_s15 + $0x1c] sm:$0xf] %v254_v7  ;;  %v258_v9 = vld [vmem:[%s2129_s14 + $0x48] sm:$0xf] }
  0x1d   : > { %257 = vst [vmem:[%s219_s15 + $0x20] sm:$0xf] %v256_v8  ;;  %v260_v10 = vld [vmem:[%s2129_s14 + $0x50] sm:$0xf]  ;;  %v262_v11 = vld [vmem:[%s2129_s14 + $0x58] sm:$0xf] }
  0x1e   : > { %259 = vst [vmem:[%s219_s15 + $0x24] sm:$0xf] %v258_v9  ;;  %261 = vst [vmem:[%s219_s15 + $0x28] sm:$0xf] %v260_v10  ;;  %v264_v12 = vld [vmem:[%s2129_s14 + $0x60] sm:$0xf] }
  0x1f   : > { %263 = vst [vmem:[%s219_s15 + $0x2c] sm:$0xf] %v262_v11  ;;  %v266_v13 = vld [vmem:[%s2129_s14 + $0x68] sm:$0xf]  ;;  %v268_v14 = vld [vmem:[%s2129_s14 + $0x70] sm:$0xf] }
  0x20   : > { %265 = vst [vmem:[%s219_s15 + $0x30] sm:$0xf] %v264_v12  ;;  %267 = vst [vmem:[%s219_s15 + $0x34] sm:$0xf] %v266_v13  ;;  %v270_v15 = vld [vmem:[%s2129_s14 + $0x78] sm:$0xf] }
  0x21   : > { %269 = vst [vmem:[%s219_s15 + $0x38] sm:$0xf] %v268_v14  ;;  %271 = vst [vmem:[%s219_s15 + $0x3c] sm:$0xf] %v270_v15 }
  0x22 PF: > { %p1724_p7 = scmp.ge.s32.totalorder %s2033_s24, 1  ;;  %p334_p8 = scmp.lt.s32.totalorder %s2033_s24, 5 }
  0x24   : > { %p335_p9 = pnand %p1724_p7, %p334_p8 }
  0x25   : > { %s341_s16 = sand.u32 (!%p335_p9), 1, %s2009_s18   ;;  %s1726_s17 = sshll.u32 (!%p335_p9), %s2021_s21, 4 }
  0x26   : > { %338 = sbr.rel (%p335_p9) target bundleno = 898 (0x382), region = 77  ;;  %s1725_s27 = sshll.u32 (!%p335_p9), %s341_s16, 6 }
  0x27   : > { %p382_p10 = scmp.lt.s32.totalorder (!%p335_p9), %s1726_s17, 31  ;;  %p387_p11 = scmp.lt.s32.totalorder (!%p335_p9), %s2017_s20, 1 }
  0x28   : > { %s1728_s30 = sshll.u32 (!%p335_p9), %s2017_s20, 4  ;;  %s2175_s7 = scalar_lea.vmem (!%p335_p9), [#allocation5], %s1725_s27 }
  0x29   : > { %p392_p12 = scmp.lt.s32.totalorder (!%p335_p9), %s1728_s30, 31  ;;  %p1732_p13 = scmp.ne.s32.totalorder (!%p335_p9), %s2017_s20, 0 }
  0x2d   : > { %s2805_s17 = smov (!%p382_p10, %s1726_s17), 31  ;;  %s2807_s30 = smov (!%p392_p12, %s1728_s30), 31 }
  0x2e   : > { %s2153_s28 = scalar_select %p387_p11, %s2017_s20, 1 }
  0x2f   : > { %s1727_s29 = sshll.u32 %s2805_s17, 3  ;;  %s1729_s14 = sshll.u32 %s2807_s30, 2  ;;  %vm410_vm0 = vcmask (!%p1732_p13), 7168   ;;  %v2035_v16 = vmov (!%p1732_p13), -1e+30   ;;  %v2036_v17 = vmov (!%p1732_p13), 0.0  }
  0x30   : > { %s2159_s9 = scalar_lea.vmem %s2760_s0, %s1727_s29  ;;  %s389_s12 = scalar_lea.vmem %s2761_s1, %s2153_s28  ;;  %411 = vst.msk [vmem:[#allocation2] sm:$0xff] (!%p1732_p13), %vm410_vm0, %v2035_v16  ;;  %412 = vst.msk [vmem:[#allocation2 + $0x8] sm:$0xff] (!%p1732_p13), %vm410_vm0, %v2035_v16 }
  0x31   : > { %s2168_s13 = scalar_lea.vmem %s2765_s5, %s1727_s29  ;;  %s2173_s17 = scalar_lea.vmem %s2763_s3, %s1729_s14  ;;  %413 = vst.msk [vmem:[#allocation2 + $0x10] sm:$0xff] (!%p1732_p13), %vm410_vm0, %v2035_v16  ;;  %414 = vst.msk [vmem:[#allocation2 + $0x18] sm:$0xff] (!%p1732_p13), %vm410_vm0, %v2035_v16 }
  0x32   : > { %409 = sbr.rel (%p1732_p13) target bundleno = 72 (0x48), region = 85  ;;  %415 = vst.msk [vmem:[#allocation2 + $0x20] sm:$0xff] (!%p1732_p13), %vm410_vm0, %v2035_v16  ;;  %416 = vst.msk [vmem:[#allocation2 + $0x28] sm:$0xff] (!%p1732_p13), %vm410_vm0, %v2035_v16 }
  0x33   : > { %417 = vst.msk [vmem:[#allocation2 + $0x30] sm:$0xff] (!%p1732_p13), %vm410_vm0, %v2035_v16  ;;  %418 = vst.msk [vmem:[#allocation2 + $0x38] sm:$0xff] (!%p1732_p13), %vm410_vm0, %v2035_v16 }
  0x34   : > { %419 = vst.msk [vmem:[#allocation2 + $0x40] sm:$0xff] (!%p1732_p13), %vm410_vm0, %v2035_v16  ;;  %420 = vst.msk [vmem:[#allocation2 + $0x48] sm:$0xff] (!%p1732_p13), %vm410_vm0, %v2035_v16 }
  0x35   : > { %421 = vst.msk [vmem:[#allocation2 + $0x50] sm:$0xff] (!%p1732_p13), %vm410_vm0, %v2035_v16  ;;  %422 = vst.msk [vmem:[#allocation2 + $0x58] sm:$0xff] (!%p1732_p13), %vm410_vm0, %v2035_v16 }
  0x36   : > { %423 = vst.msk [vmem:[#allocation2 + $0x60] sm:$0xff] (!%p1732_p13), %vm410_vm0, %v2035_v16  ;;  %424 = vst.msk [vmem:[#allocation2 + $0x68] sm:$0xff] (!%p1732_p13), %vm410_vm0, %v2035_v16 }
  0x37   : > { %425 = vst.msk [vmem:[#allocation2 + $0x70] sm:$0xff] (!%p1732_p13), %vm410_vm0, %v2035_v16  ;;  %426 = vst.msk [vmem:[#allocation2 + $0x78] sm:$0xff] (!%p1732_p13), %vm410_vm0, %v2035_v16 }
  0x38   : > { %427 = vst.msk [vmem:[#allocation3] sm:$0xff] (!%p1732_p13), %vm410_vm0, %v2036_v17  ;;  %428 = vst.msk [vmem:[#allocation3 + $0x8] sm:$0xff] (!%p1732_p13), %vm410_vm0, %v2036_v17 }
  0x39   : > { %429 = vst.msk [vmem:[#allocation3 + $0x10] sm:$0xff] %vm410_vm0, %v2036_v17  ;;  %430 = vst.msk [vmem:[#allocation3 + $0x18] sm:$0xff] %vm410_vm0, %v2036_v17 }
  0x3a   : > { %431 = vst.msk [vmem:[#allocation3 + $0x20] sm:$0xff] %vm410_vm0, %v2036_v17  ;;  %432 = vst.msk [vmem:[#allocation3 + $0x28] sm:$0xff] %vm410_vm0, %v2036_v17 }
  0x3b   : > { %433 = vst.msk [vmem:[#allocation3 + $0x30] sm:$0xff] %vm410_vm0, %v2036_v17  ;;  %434 = vst.msk [vmem:[#allocation3 + $0x38] sm:$0xff] %vm410_vm0, %v2036_v17 }
  0x3c   : > { %435 = vst.msk [vmem:[#allocation3 + $0x40] sm:$0xff] %vm410_vm0, %v2036_v17  ;;  %436 = vst.msk [vmem:[#allocation3 + $0x48] sm:$0xff] %vm410_vm0, %v2036_v17 }
  0x3d   : > { %437 = vst.msk [vmem:[#allocation3 + $0x50] sm:$0xff] %vm410_vm0, %v2036_v17  ;;  %438 = vst.msk [vmem:[#allocation3 + $0x58] sm:$0xff] %vm410_vm0, %v2036_v17 }
  0x3e   : > { %439 = vst.msk [vmem:[#allocation3 + $0x60] sm:$0xff] %vm410_vm0, %v2036_v17  ;;  %440 = vst.msk [vmem:[#allocation3 + $0x68] sm:$0xff] %vm410_vm0, %v2036_v17 }
  0x3f   : > { %441 = vst.msk [vmem:[#allocation3 + $0x70] sm:$0xff] %vm410_vm0, %v2036_v17  ;;  %442 = vst.msk [vmem:[#allocation3 + $0x78] sm:$0xff] %vm410_vm0, %v2036_v17 }
  0x40   : > { %443 = vst [vmem:[#allocation4] sm:$0xff] %v2036_v17  ;;  %444 = vst [vmem:[#allocation4 + $0x8] sm:$0xff] %v2036_v17 }
  0x41   : > { %445 = vst [vmem:[#allocation4 + $0x10] sm:$0xff] %v2036_v17  ;;  %446 = vst [vmem:[#allocation4 + $0x18] sm:$0xff] %v2036_v17 }
  0x42   : > { %447 = vst [vmem:[#allocation4 + $0x20] sm:$0xff] %v2036_v17  ;;  %448 = vst [vmem:[#allocation4 + $0x28] sm:$0xff] %v2036_v17 }
  0x43   : > { %449 = vst [vmem:[#allocation4 + $0x30] sm:$0xff] %v2036_v17  ;;  %450 = vst [vmem:[#allocation4 + $0x38] sm:$0xff] %v2036_v17 }
  0x44   : > { %451 = vst [vmem:[#allocation4 + $0x40] sm:$0xff] %v2036_v17  ;;  %452 = vst [vmem:[#allocation4 + $0x48] sm:$0xff] %v2036_v17 }
  0x45   : > { %453 = vst [vmem:[#allocation4 + $0x50] sm:$0xff] %v2036_v17  ;;  %454 = vst [vmem:[#allocation4 + $0x58] sm:$0xff] %v2036_v17 }
  0x46   : > { %455 = vst [vmem:[#allocation4 + $0x60] sm:$0xff] %v2036_v17  ;;  %456 = vst [vmem:[#allocation4 + $0x68] sm:$0xff] %v2036_v17 }
  0x47   : > { %457 = vst [vmem:[#allocation4 + $0x70] sm:$0xff] %v2036_v17  ;;  %458 = vst [vmem:[#allocation4 + $0x78] sm:$0xff] %v2036_v17 }
  0x48 PF: > { %v467_v18 = vld [vmem:[%s2159_s9 + $0x40] sm:$0xff]  ;;  %v2037_v20 = vmov 0   ;;  %v468_v21 = vld [vmem:[%s2159_s9 + $0x48] sm:$0xff]  ;;  %v462_v23 = vld [vmem:[%s2159_s9 + $0x18] sm:$0xff]  ;;  %p1742_p0 = scmp.ne.s32.totalorder %s2017_s20, 1 }
  0x49   : > { %v459_v19 = vld [vmem:[%s2159_s9] sm:$0xff]  ;;  %1872 = vset.pattern.permute.xlu1 %v2037_v20  ;;  %1871 = vset.pattern.permute.xlu0 %v2037_v20  ;;  %v460_v22 = vld [vmem:[%s2159_s9 + $0x8] sm:$0xff]  ;;  %v461_v24 = vld [vmem:[%s2159_s9 + $0x10] sm:$0xff] }
  0x4a   : > { %518 = vperm.xlu1 %1872, %v467_v18   ;;  %478 = vperm.xlu0 %1871, %v459_v19   ;;  %v470_v25 = vld [vmem:[%s2159_s9 + $0x58] sm:$0xff]  ;;  %v469_v26 = vld [vmem:[%s2159_s9 + $0x50] sm:$0xff]  ;;  %v464_v27 = vld [vmem:[%s2159_s9 + $0x28] sm:$0xff] }
  0x4b   : > { %v463_v28 = vld [vmem:[%s2159_s9 + $0x20] sm:$0xff]  ;;  %v472_v29 = vld [vmem:[%s2159_s9 + $0x68] sm:$0xff]  ;;  %v466_v31 = vld [vmem:[%s2159_s9 + $0x38] sm:$0xff] }
  0x4c   : > { %v471_v30 = vld [vmem:[%s2159_s9 + $0x60] sm:$0xff]  ;;  %v465_v32 = vld [vmem:[%s2159_s9 + $0x30] sm:$0xff]  ;;  %v474_v33 = vld [vmem:[%s2159_s9 + $0x78] sm:$0xff] }
  0x4d   : > { %v473_v34 = vld [vmem:[%s2159_s9 + $0x70] sm:$0xff]  ;;  %v578_v35 = vld [vmem:[%s2175_s7] sm:$0xf]  ;;  %v579_v37 = vld [vmem:[%s2175_s7 + $0x4] sm:$0xf] }
  0x4e   : > { %523 = vperm.xlu1 %1872, %v468_v21   ;;  %483 = vperm.xlu0 %1871, %v460_v22   ;;  %v586_v36 = vld [vmem:[%s2175_s7 + $0x20] sm:$0xf]  ;;  %vm594_vm1 = vcmp.gt.bf16.partialorder %v578_v35, 0  ;;  %v587_v38 = vld [vmem:[%s2175_s7 + $0x24] sm:$0xf]  ;;  %vm595_vm3 = vcmp.gt.bf16.partialorder %v579_v37, 0 }
  0x4f   : > { %vm602_vm2 = vcmp.gt.bf16.partialorder %v586_v36, 0  ;;  %v658_v39 = vsel %vm594_vm1, 65537, %v2037_v20  ;;  %v580_v40 = vld [vmem:[%s2175_s7 + $0x8] sm:$0xf]  ;;  %vm603_vm4 = vcmp.gt.bf16.partialorder %v587_v38, 0  ;;  %v659_v42 = vsel %vm595_vm3, 65537, %v2037_v20 }
  0x50   : > { %v666_v41 = vsel %vm602_vm2, 65537, %v2037_v20  ;;  %v581_v43 = vld [vmem:[%s2175_s7 + $0xc] sm:$0xf]  ;;  %v588_v44 = vld [vmem:[%s2175_s7 + $0x28] sm:$0xf]  ;;  %v674_v45 = vunpack.c.l.b16 %v658_v39  ;;  %vm596_vm5 = vcmp.gt.bf16.partialorder %v580_v40, 0  ;;  %v675_v49 = vunpack.c.l.b16 %v659_v42 }
  0x51   : > { %v667_v46 = vsel %vm603_vm4, 65537, %v2037_v20  ;;  %v2244_v47 = vld [vmem:[%s389_s12] ss:$0 sm:$0xff]  ;;  %v682_v48 = vunpack.c.l.b16 %v666_v41  ;;  %vm597_vm6 = vcmp.gt.bf16.partialorder %v581_v43, 0  ;;  %vm604_vm7 = vcmp.gt.bf16.partialorder %v588_v44, 0 }
  0x52   : > { %493 = vperm.xlu1 %1872, %v462_v23   ;;  %488 = vperm.xlu0 %1871, %v461_v24   ;;  %v660_v50 = vsel %vm596_vm5, 65537, %v2037_v20  ;;  %v589_v51 = vld [vmem:[%s2175_s7 + $0x2c] sm:$0xf]  ;;  %vm2248_vm8 = vcmp.ne.s32.totalorder %v674_v45, 0  ;;  %v683_v55 = vunpack.c.l.b16 %v667_v46  ;;  %v582_v56 = vld [vmem:[%s2175_s7 + $0x10] sm:$0xf] }
  0x53   : > { %v661_v59 = vsel %vm597_vm6, 65537, %v2037_v20  ;;  %v668_v60 = vsel %vm604_vm7, 65537, %v2037_v20  ;;  %vm2257_vm9 = vcmp.ne.s32.totalorder %v682_v48, 0  ;;  %vm2261_vm10 = vcmp.ne.s32.totalorder %v675_v49, 0  ;;  %v583_v0 = vld [vmem:[%s2175_s7 + $0x14] sm:$0xf] }
  0x54   : > { %v676_v63 = vunpack.c.l.b16 %v660_v50  ;;  %vm605_vm11 = vcmp.gt.bf16.partialorder %v589_v51, 0  ;;  %vm598_vm13 = vcmp.gt.bf16.partialorder %v582_v56, 0  ;;  %vm2266_vm15 = vcmp.ne.s32.totalorder %v683_v55, 0  ;;  %v590_v15 = vld [vmem:[%s2175_s7 + $0x30] sm:$0xf]  ;;  %v1873_v56 = vld [vmem:[%s2173_s17] sm:$0xff]  }
  0x55   : > { %v677_v6 = vunpack.c.l.b16 %v661_v59  ;;  %v684_v7 = vunpack.c.l.b16 %v668_v60  ;;  %v669_v11 = vsel %vm605_vm11, 65537, %v2037_v20  ;;  %v662_v14 = vsel %vm598_vm13, 65537, %v2037_v20  ;;  %v585_v45 = vld [vmem:[%s2175_s7 + $0x1c] sm:$0xf]  ;;  %v592_v50 = vld [vmem:[%s2175_s7 + $0x38] sm:$0xf]  ;;  %1763 = vmatprep.subr.bf16.mxu0 %v1873_v56  ;;  %1795 = vmatprep.subr.bf16.mxu1 %v1873_v56 }
  0x56   : > { %533 = vperm.xlu1 %1872, %v470_v25   ;;  %528 = vperm.xlu0 %1871, %v469_v26   ;;  %vm2277_vm0 = vcmp.ne.s32.totalorder %v676_v63, 0  ;;  %vm599_vm1 = vcmp.gt.bf16.partialorder %v583_v0, 0  ;;  %v685_v24 = vunpack.c.l.b16 %v669_v11  ;;  %vm606_vm6 = vcmp.gt.bf16.partialorder %v590_v15, 0 }
  0x57   : > { %vm2285_vm4 = vcmp.ne.s32.totalorder %v677_v6, 0  ;;  %vm2289_vm5 = vcmp.ne.s32.totalorder %v684_v7, 0  ;;  %v670_v44 = vsel %vm606_vm6, 65537, %v2037_v20  ;;  %1764 = vmatpush3.bf16.msra.mxu0 %v1873_v56  ;;  %1803 = vmatpush3.bf16.msra.mxu1 %v1873_v56  ;;  %v1875_v7 = vld [vmem:[%s2173_s17 + $0x10] sm:$0xff]  }
  0x5a   : > { %503 = vperm.xlu1 %1872, %v464_v27   ;;  %498 = vperm.xlu0 %1871, %v463_v28   ;;  %v663_v28 = vsel %vm599_vm1, 65537, %v2037_v20  ;;  %vm608_vm1 = vcmp.gt.bf16.partialorder %v592_v50, 0 }
  0x5b   : > { %v679_v40 = vunpack.c.l.b16 %v663_v28 }
  0x5e   : > { %543 = vperm.xlu1 %1872, %v472_v29   ;;  %538 = vperm.xlu0 %1871, %v471_v30   ;;  %v591_v29 = vld [vmem:[%s2175_s7 + $0x34] sm:$0xf] }
  0x62   : > { %513 = vperm.xlu1 %1872, %v466_v31   ;;  %508 = vperm.xlu0 %1871, %v465_v32   ;;  %v678_v32 = vunpack.c.l.b16 %v662_v14 }
  0x64   : > { %vm2327_vm11 = vcmp.ne.s32.totalorder %v678_v32, 0 }
  0x66   : > { %553 = vperm.xlu1 %1872, %v474_v33   ;;  %548 = vperm.xlu0 %1871, %v473_v34   ;;  %v584_v33 = vld [vmem:[%s2175_s7 + $0x18] sm:$0xf] }
  0xc9   : > { %v519_v52 = vpop.permute.xlu1 %518  ;;  %v479_v53 = vpop.permute.xlu0 %478 }
  0xca   : > { %v570_v57 = vadd.f32 %v2244_v47, %v519_v52  ;;  %v562_v58 = vadd.f32 %v2244_v47, %v479_v53 }
  0xcc   : > { %v634_v1 = vmul.f32 0.2, %v570_v57  ;;  %v626_v2 = vmul.f32 0.2, %v562_v58  ;;  %vm610_vm12 = vcmp.gt.f32.partialorder %v562_v58, 0.0  ;;  %vm618_vm14 = vcmp.gt.f32.partialorder %v570_v57, 0.0 }
  0xcd   : > { %v524_v3 = vpop.permute.xlu1 %523  ;;  %v484_v4 = vpop.permute.xlu0 %483 }
  0xce   : > { %v571_v8 = vadd.f32 %v2244_v47, %v524_v3  ;;  %v563_v9 = vadd.f32 %v2244_v47, %v484_v4  ;;  %v642_v10 = vsel %vm610_vm12, %v562_v58, %v626_v2  ;;  %v650_v18 = vsel %vm618_vm14, %v570_v57, %v634_v1  ;;  %v593_v1 = vld [vmem:[%s2175_s7 + $0x3c] sm:$0xf] }
  0xcf   : > { %v2275_v12 = vsel %vm2248_vm8, %v642_v10, -inf  ;;  %v2300_v30 = vsel %vm2257_vm9, %v650_v18, -inf  ;;  %vm2310_vm9 = vcmp.ne.s32.totalorder %v685_v24, 0  ;;  %vm600_vm12 = vcmp.gt.bf16.partialorder %v584_v33, 0  ;;  %v2471_v24 = vld [vmem:[#allocation2 + $0x58] sm:$0xff] }
  0xd0   : > { %v635_v16 = vmul.f32 0.2, %v571_v8  ;;  %v627_v17 = vmul.f32 0.2, %v563_v9  ;;  %738 = vmax.xlane.f32.xlu0 %v2275_v12  ;;  %vm611_vm2 = vcmp.gt.f32.partialorder %v563_v9, 0.0  ;;  %vm619_vm3 = vcmp.gt.f32.partialorder %v571_v8, 0.0 }
  0xd1   : > { %v494_v19 = vpop.permute.xlu1 %493  ;;  %v489_v21 = vpop.permute.xlu0 %488  ;;  %v686_v57 = vunpack.c.l.b16 %v670_v44  ;;  %v664_v0 = vsel %vm600_vm12, 65537, %v2037_v20 }
  0xd2   : > { %v565_v25 = vadd.f32 %v2244_v47, %v494_v19  ;;  %v564_v26 = vadd.f32 %v2244_v47, %v489_v21  ;;  %v643_v27 = vsel %vm611_vm2, %v563_v9, %v627_v17  ;;  %v651_v36 = vsel %vm619_vm3, %v571_v8, %v635_v16 }
  0xd3   : > { %v2304_v31 = vsel %vm2261_vm10, %v643_v27, -inf  ;;  %vm607_vm10 = vcmp.gt.bf16.partialorder %v591_v29, 0  ;;  %v2321_v46 = vsel %vm2266_vm15, %v651_v36, -inf  ;;  %vm2335_vm15 = vcmp.ne.s32.totalorder %v679_v40, 0 }
  0xd4   : > { %v629_v34 = vmul.f32 0.2, %v565_v25  ;;  %v628_v35 = vmul.f32 0.2, %v564_v26  ;;  %754 = vmax.xlane.f32.xlu0 %v2300_v30  ;;  %740 = vmax.xlane.f32.xlu1 %v2304_v31  ;;  %vm612_vm7 = vcmp.gt.f32.partialorder %v564_v26, 0.0  ;;  %vm613_vm8 = vcmp.gt.f32.partialorder %v565_v25, 0.0 }
  0xd5   : > { %v534_v37 = vpop.permute.xlu1 %533  ;;  %v529_v38 = vpop.permute.xlu0 %528  ;;  %v671_v58 = vsel %vm607_vm10, 65537, %v2037_v20  ;;  %v680_v14 = vunpack.c.l.b16 %v664_v0  ;;  %v672_v17 = vsel %vm608_vm1, 65537, %v2037_v20  ;;  %vm1042_vm1 = vcmask 7168   ;;  %v1874_v0 = vld [vmem:[%s2173_s17 + $0x8] sm:$0xff]  }
  0xd6   : > { %v573_v41 = vadd.f32 %v2244_v47, %v534_v37  ;;  %v572_v42 = vadd.f32 %v2244_v47, %v529_v38  ;;  %v644_v43 = vsel %vm612_vm7, %v564_v26, %v628_v35  ;;  %v645_v53 = vsel %vm613_vm8, %v565_v25, %v629_v34  ;;  %1765 = vmatprep.subr.bf16.mxu0 %v1874_v0 }
  0xd7   : > { %v2325_v48 = vsel %vm2277_vm0, %v644_v43, -inf  ;;  %vm601_vm0 = vcmp.gt.bf16.partialorder %v585_v45, 0  ;;  %v2345_v62 = vsel %vm2285_vm4, %v645_v53, -inf  ;;  %vm2357_vm4 = vcmp.ne.s32.totalorder %v686_v57, 0  ;;  %v2422_v57 = vld [vmem:[#allocation2] sm:$0xff]  ;;  %1796 = vmatprep.subr.bf16.mxu1 %v1874_v0  ;;  %1766 = vmatpush3.bf16.msra.mxu0 %v1874_v0 }
  0xd8   : > { %v637_v51 = vmul.f32 0.2, %v573_v41  ;;  %v636_v52 = vmul.f32 0.2, %v572_v42  ;;  %756 = vmax.xlane.f32.xlu0 %v2321_v46  ;;  %742 = vmax.xlane.f32.xlu1 %v2325_v48  ;;  %vm620_vm13 = vcmp.gt.f32.partialorder %v572_v42, 0.0  ;;  %vm621_vm14 = vcmp.gt.f32.partialorder %v573_v41, 0.0 }
  0xd9   : > { %v504_v54 = vpop.permute.xlu1 %503  ;;  %v499_v55 = vpop.permute.xlu0 %498  ;;  %v687_v8 = vunpack.c.l.b16 %v671_v58  ;;  %v665_v9 = vsel %vm601_vm0, 65537, %v2037_v20  ;;  %v688_v34 = vunpack.c.l.b16 %v672_v17  ;;  %1804 = vmatpush3.bf16.msra.mxu1 %v1874_v0  ;;  %1767 = vmatprep.subr.bf16.mxu0 %v1875_v7  ;;  %v1876_v17 = vld [vmem:[%s2173_s17 + $0x18] sm:$0xff]   ;;  %v2515_v0 = vld [vmem:[#allocation2 + $0x70] sm:$0xff] }
  0xda   : > { %v567_v59 = vadd.f32 %v2244_v47, %v504_v54  ;;  %v566_v60 = vadd.f32 %v2244_v47, %v499_v55  ;;  %v652_v61 = vsel %vm620_vm13, %v572_v42, %v636_v52  ;;  %v653_v4 = vsel %vm621_vm14, %v573_v41, %v637_v51  ;;  %1797 = vmatprep.subr.bf16.mxu1 %v1875_v7 }
  0xdb   : > { %v2349_v63 = vsel %vm2289_vm5, %v652_v61, -inf  ;;  %v2367_v15 = vsel %vm2310_vm9, %v653_v4, -inf  ;;  %vm609_vm5 = vcmp.gt.bf16.partialorder %v593_v1, 0  ;;  %vm2378_vm8 = vcmp.ne.s32.totalorder %v687_v8, 0  ;;  %v2429_v61 = vld [vmem:[#allocation2 + $0x40] sm:$0xff]  ;;  %1768 = vmatpush3.bf16.msra.mxu0 %v1875_v7 }
  0xdc   : > { %v631_v2 = vmul.f32 0.2, %v567_v59  ;;  %v630_v3 = vmul.f32 0.2, %v566_v60  ;;  %744 = vmax.xlane.f32.xlu0 %v2345_v62  ;;  %758 = vmax.xlane.f32.xlu1 %v2349_v63  ;;  %vm614_vm2 = vcmp.gt.f32.partialorder %v566_v60, 0.0  ;;  %vm615_vm3 = vcmp.gt.f32.partialorder %v567_v59, 0.0 }
  0xdd   : > { %v544_v5 = vpop.permute.xlu1 %543  ;;  %v539_v6 = vpop.permute.xlu0 %538  ;;  %v681_v25 = vunpack.c.l.b16 %v665_v9  ;;  %vm2384_vm9 = vcmp.ne.s32.totalorder %v680_v14, 0  ;;  %v673_v35 = vsel %vm609_vm5, 65537, %v2037_v20  ;;  %vm704_vm13 = vcmp.ne.s32.totalorder %v688_v34, 0  ;;  %v2456_v14 = vld [vmem:[#allocation2 + $0x18] sm:$0xff]  ;;  %1805 = vmatpush3.bf16.msra.mxu1 %v1875_v7  ;;  %1769 = vmatprep.subr.bf16.mxu0 %v1876_v17 }
  0xde   : > { %v575_v10 = vadd.f32 %v2244_v47, %v544_v5  ;;  %v574_v11 = vadd.f32 %v2244_v47, %v539_v6  ;;  %v646_v13 = vsel %vm614_vm2, %v566_v60, %v630_v3  ;;  %v647_v21 = vsel %vm615_vm3, %v567_v59, %v631_v2  ;;  %v2427_v60 = vld [vmem:[#allocation2 + $0x8] sm:$0xff]  ;;  %v2439_v5 = vld [vmem:[#allocation2 + $0x10] sm:$0xff]  ;;  %1798 = vmatprep.subr.bf16.mxu1 %v1876_v17 }
  0xdf   : > { %v2371_v16 = vsel %vm2327_vm11, %v646_v13, -inf  ;;  %v2390_v32 = vsel %vm2335_vm15, %v647_v21, -inf  ;;  %vm697_vm12 = vcmp.ne.s32.totalorder %v681_v25, 0  ;;  %v689_v45 = vunpack.c.l.b16 %v673_v35  ;;  %v2441_v6 = vld [vmem:[#allocation2 + $0x48] sm:$0xff]  ;;  %v2454_v13 = vld [vmem:[#allocation2 + $0x50] sm:$0xff]  ;;  %1770 = vmatpush3.bf16.msra.mxu0 %v1876_v17  ;;  %v1877_v25 = vld [vmem:[%s2173_s17 + $0x20] sm:$0xff]  }
  0xe0   : > { %v639_v18 = vmul.f32 0.2, %v575_v10  ;;  %v638_v19 = vmul.f32 0.2, %v574_v11  ;;  %760 = vmax.xlane.f32.xlu0 %v2367_v15  ;;  %746 = vmax.xlane.f32.xlu1 %v2371_v16  ;;  %vm622_vm6 = vcmp.gt.f32.partialorder %v574_v11, 0.0  ;;  %vm623_vm7 = vcmp.gt.f32.partialorder %v575_v10, 0.0 }
  0xe1   : > { %v514_v22 = vpop.permute.xlu1 %513  ;;  %v509_v23 = vpop.permute.xlu0 %508  ;;  %vm705_vm0 = vcmp.ne.s32.totalorder %v689_v45, 0  ;;  %1806 = vmatpush3.bf16.msra.mxu1 %v1876_v17  ;;  %1771 = vmatprep.subr.bf16.mxu0 %v1877_v25  ;;  %v2484_v35 = vld [vmem:[#allocation2 + $0x60] sm:$0xff] }
  0xe2   : > { %v569_v26 = vadd.f32 %v2244_v47, %v514_v22  ;;  %v568_v27 = vadd.f32 %v2244_v47, %v509_v23  ;;  %v654_v28 = vsel %vm622_vm6, %v574_v11, %v638_v19  ;;  %v655_v38 = vsel %vm623_vm7, %v575_v10, %v639_v18  ;;  %v726_v23 = vld [vmem:[#allocation2 + $0x20] sm:$0xff]  ;;  %1799 = vmatprep.subr.bf16.mxu1 %v1877_v25 }
  0xe3   : > { %v2394_v33 = vsel %vm2357_vm4, %v654_v28, -inf  ;;  %v2404_v20 = vsel %vm2378_vm8, %v655_v38, -inf  ;;  %1772 = vmatpush3.bf16.msra.mxu0 %v1877_v25  ;;  %v1878_v38 = vld [vmem:[%s2173_s17 + $0x28] sm:$0xff]  }
  0xe4   : > { %v633_v36 = vmul.f32 0.2, %v569_v26  ;;  %v632_v37 = vmul.f32 0.2, %v568_v27  ;;  %748 = vmax.xlane.f32.xlu0 %v2390_v32  ;;  %762 = vmax.xlane.f32.xlu1 %v2394_v33  ;;  %vm616_vm10 = vcmp.gt.f32.partialorder %v568_v27, 0.0  ;;  %vm617_vm11 = vcmp.gt.f32.partialorder %v569_v26, 0.0 }
  0xe5   : > { %v554_v39 = vpop.permute.xlu1 %553  ;;  %v549_v40 = vpop.permute.xlu0 %548  ;;  %1807 = vmatpush3.bf16.msra.mxu1 %v1877_v25  ;;  %1773 = vmatprep.subr.bf16.mxu0 %v1878_v38 }
  0xe6   : > { %v577_v41 = vadd.f32 %v2244_v47, %v554_v39  ;;  %v576_v42 = vadd.f32 %v2244_v47, %v549_v40  ;;  %v648_v43 = vsel %vm616_vm10, %v568_v27, %v632_v37  ;;  %v649_v47 = vsel %vm617_vm11, %v569_v26, %v633_v36  ;;  %v2486_v36 = vld [vmem:[#allocation2 + $0x28] sm:$0xff]  ;;  %1800 = vmatprep.subr.bf16.mxu1 %v1878_v38 }
  0xe7   : > { %v2408_v44 = vsel %vm2384_vm9, %v648_v43, -inf  ;;  %v2412_v52 = vsel %vm697_vm12, %v649_v47, -inf  ;;  %1774 = vmatpush3.bf16.msra.mxu0 %v1878_v38 }
  0xe8   : > { %v641_v49 = vmul.f32 0.2, %v577_v41  ;;  %v640_v50 = vmul.f32 0.2, %v576_v42  ;;  %764 = vmax.xlane.f32.xlu0 %v2404_v20  ;;  %750 = vmax.xlane.f32.xlu1 %v2408_v44  ;;  %vm624_vm14 = vcmp.gt.f32.partialorder %v576_v42, 0.0  ;;  %vm625_vm15 = vcmp.gt.f32.partialorder %v577_v41, 0.0 }
  0xe9   : > { %1808 = vmatpush3.bf16.msra.mxu1 %v1878_v38 }
  0xea   : > { %v656_v51 = vsel %vm624_vm14, %v576_v42, %v640_v50  ;;  %v657_v54 = vsel %vm625_vm15, %v577_v41, %v641_v49  ;;  %v728_v49 = vld [vmem:[#allocation2 + $0x30] sm:$0xff]  ;;  %v2501_v50 = vld [vmem:[#allocation2 + $0x68] sm:$0xff] }
  0xeb   : > { %v2414_v53 = vsel %vm704_vm13, %v656_v51, -inf  ;;  %v2418_v55 = vsel %vm705_vm0, %v657_v54, -inf  ;;  %v1879_v51 = vld [vmem:[%s2173_s17 + $0x30] sm:$0xff]  }
  0xec   : > { %752 = vmax.xlane.f32.xlu0 %v2412_v52  ;;  %766 = vmax.xlane.f32.xlu1 %v2414_v53 }
  0xed   : > { %1775 = vmatprep.subr.bf16.mxu0 %v1879_v51  ;;  %1801 = vmatprep.subr.bf16.mxu1 %v1879_v51 }
  0xee   : > { %1776 = vmatpush3.bf16.msra.mxu0 %v1879_v51  ;;  %1809 = vmatpush3.bf16.msra.mxu1 %v1879_v51 }
  0xf0   : > { %768 = vmax.xlane.f32.xlu0 %v2418_v55 }
 0x15d   : > { %v739_v58 = vpop.xlane.xlu0 %738 }
 0x15e   : > { %v2425_v59 = vmax.f32 %v2422_v57, %v739_v58 }
 0x160   : > { %1372 = vst.msk [vmem:[#allocation2] sm:$0xff] %vm1042_vm1, %v2425_v59  ;;  %836 = vperm.xlu1 %1872, %v2425_v59   ;;  %v786_v37 = vsub.f32 %v2422_v57, %v2425_v59 }
 0x161   : > { %v741_v1 = vpop.xlane.xlu1 %740  ;;  %v755_v2 = vpop.xlane.xlu0 %754 }
 0x162   : > { %v771_v3 = vmax.f32 %v2427_v60, %v741_v1  ;;  %v2437_v4 = vmax.f32 %v2429_v61, %v755_v2  ;;  %v802_v47 = vmul.f32 1.442695, %v786_v37  ;;  %v729_v1 = vld [vmem:[#allocation2 + $0x38] sm:$0xff] }
 0x164   : > { %1373 = vst.msk [vmem:[#allocation2 + $0x8] sm:$0xff] %vm1042_vm1, %v771_v3  ;;  %1380 = vst.msk [vmem:[#allocation2 + $0x40] sm:$0xff] %vm1042_vm1, %v2437_v4  ;;  %841 = vperm.xlu0 %1871, %v771_v3   ;;  %876 = vperm.xlu1 %1872, %v2437_v4   ;;  %v787_v26 = vsub.f32 %v2427_v60, %v771_v3  ;;  %v794_v2 = vsub.f32 %v2429_v61, %v2437_v4 }
 0x165   : > { %v743_v8 = vpop.xlane.xlu1 %742  ;;  %v757_v9 = vpop.xlane.xlu0 %756 }
 0x166   : > { %v2449_v10 = vmax.f32 %v2439_v5, %v743_v8  ;;  %v2452_v11 = vmax.f32 %v2441_v6, %v757_v9  ;;  %v804_v39 = vmul.f32 1.442695, %v787_v26 }
 0x168   : > { %1374 = vst.msk [vmem:[#allocation2 + $0x10] sm:$0xff] %vm1042_vm1, %v2449_v10  ;;  %1381 = vst.msk [vmem:[#allocation2 + $0x48] sm:$0xff] %vm1042_vm1, %v2452_v11  ;;  %846 = vperm.xlu0 %1871, %v2449_v10   ;;  %881 = vperm.xlu1 %1872, %v2452_v11   ;;  %1881 = vpow2.f32 %v804_v39  ;;  %v788_v54 = vsub.f32 %v2439_v5, %v2449_v10  ;;  %v1880_v5 = vld [vmem:[%s2173_s17 + $0x38] sm:$0xff]  }
 0x169   : > { %v759_v18 = vpop.xlane.xlu1 %758  ;;  %v745_v19 = vpop.xlane.xlu0 %744  ;;  %1883 = vpow2.f32 %v802_v47  ;;  %1777 = vmatprep.subr.bf16.mxu0 %v1880_v5  ;;  %1802 = vmatprep.subr.bf16.mxu1 %v1880_v5 }
 0x16a   : > { %v2466_v21 = vmax.f32 %v2454_v13, %v759_v18  ;;  %v2469_v22 = vmax.f32 %v2456_v14, %v745_v19  ;;  %v806_v7 = vmul.f32 1.442695, %v788_v54  ;;  %v2529_v18 = vld [vmem:[#allocation2 + $0x78] sm:$0xff]  ;;  %1778 = vmatpush3.bf16.msra.mxu0 %v1880_v5  ;;  %1810 = vmatpush3.bf16.msra.mxu1 %v1880_v5  ;;  %v818_v19 = vmul.f32 1.442695, %v794_v2 }
 0x16c   : > { %1382 = vst.msk [vmem:[#allocation2 + $0x50] sm:$0xff] %vm1042_vm1, %v2466_v21  ;;  %1375 = vst.msk [vmem:[#allocation2 + $0x18] sm:$0xff] %vm1042_vm1, %v2469_v22  ;;  %886 = vperm.xlu0 %1871, %v2466_v21   ;;  %851 = vperm.xlu1 %1872, %v2469_v22   ;;  %v789_v8 = vsub.f32 %v2456_v14, %v2469_v22 }
 0x16d   : > { %v747_v27 = vpop.xlane.xlu1 %746  ;;  %v761_v28 = vpop.xlane.xlu0 %760 }
 0x16e   : > { %v774_v29 = vmax.f32 %v726_v23, %v747_v27  ;;  %v2482_v34 = vmax.f32 %v2471_v24, %v761_v28  ;;  %v808_v22 = vmul.f32 1.442695, %v789_v8 }
 0x170   : > { %1376 = vst.msk [vmem:[#allocation2 + $0x20] sm:$0xff] %vm1042_vm1, %v774_v29  ;;  %1383 = vst.msk [vmem:[#allocation2 + $0x58] sm:$0xff] %vm1042_vm1, %v2482_v34  ;;  %856 = vperm.xlu0 %1871, %v774_v29   ;;  %891 = vperm.xlu1 %1872, %v2482_v34   ;;  %v790_v40 = vsub.f32 %v726_v23, %v774_v29  ;;  %v796_v23 = vsub.f32 %v2454_v13, %v2466_v21 }
 0x171   : > { %v763_v41 = vpop.xlane.xlu1 %762  ;;  %v749_v42 = vpop.xlane.xlu0 %748 }
 0x172   : > { %v2496_v43 = vmax.f32 %v2484_v35, %v763_v41  ;;  %v2499_v45 = vmax.f32 %v2486_v36, %v749_v42  ;;  %v810_v56 = vmul.f32 1.442695, %v790_v40  ;;  %v2544_v21 = vpop.eup %1881  ;;  %v822_v27 = vmul.f32 1.442695, %v796_v23 }
 0x173   : > { %v2554_v38 = vpop.eup %1883 }
 0x174   : > { %1384 = vst.msk [vmem:[#allocation2 + $0x60] sm:$0xff] %vm1042_vm1, %v2496_v43  ;;  %1377 = vst.msk [vmem:[#allocation2 + $0x28] sm:$0xff] %vm1042_vm1, %v2499_v45  ;;  %896 = vperm.xlu0 %1871, %v2496_v43   ;;  %861 = vperm.xlu1 %1872, %v2499_v45   ;;  %1885 = vpow2.f32 %v810_v56  ;;  %v791_v25 = vsub.f32 %v2486_v36, %v2499_v45  ;;  %v798_v28 = vsub.f32 %v2484_v35, %v2496_v43 }
 0x175   : > { %v751_v57 = vpop.xlane.xlu1 %750  ;;  %v765_v58 = vpop.xlane.xlu0 %764  ;;  %v795_v35 = vsub.f32 %v2441_v6, %v2452_v11 }
 0x176   : > { %v776_v59 = vmax.f32 %v728_v49, %v751_v57  ;;  %v2513_v60 = vmax.f32 %v2501_v50, %v765_v58  ;;  %v812_v36 = vmul.f32 1.442695, %v791_v25  ;;  %v826_v40 = vmul.f32 1.442695, %v798_v28 }
 0x177   : > { %v820_v45 = vmul.f32 1.442695, %v795_v35 }
 0x178   : > { %v792_v3 = vsub.f32 %v728_v49, %v776_v59  ;;  %1378 = vst.msk [vmem:[#allocation2 + $0x30] sm:$0xff] %vm1042_vm1, %v776_v59  ;;  %1385 = vst.msk [vmem:[#allocation2 + $0x68] sm:$0xff] %vm1042_vm1, %v2513_v60  ;;  %866 = vperm.xlu0 %1871, %v776_v59   ;;  %901 = vperm.xlu1 %1872, %v2513_v60   ;;  %v797_v49 = vsub.f32 %v2471_v24, %v2482_v34 }
 0x179   : > { %v767_v9 = vpop.xlane.xlu1 %766  ;;  %v753_v10 = vpop.xlane.xlu0 %752  ;;  %v799_v11 = vsub.f32 %v2501_v50, %v2513_v60 }
 0x17a   : > { %v814_v17 = vmul.f32 1.442695, %v792_v3  ;;  %v2527_v61 = vmax.f32 %v2515_v0, %v767_v9  ;;  %v777_v4 = vmax.f32 %v729_v1, %v753_v10  ;;  %v824_v6 = vmul.f32 1.442695, %v797_v49 }
 0x17b   : > { %v828_v24 = vmul.f32 1.442695, %v799_v11 }
 0x17c   : > { %1887 = vpow2.f32 %v814_v17  ;;  %v800_v14 = vsub.f32 %v2515_v0, %v2527_v61  ;;  %1386 = vst.msk [vmem:[#allocation2 + $0x70] sm:$0xff] %vm1042_vm1, %v2527_v61  ;;  %1379 = vst.msk [vmem:[#allocation2 + $0x38] sm:$0xff] %vm1042_vm1, %v777_v4  ;;  %906 = vperm.xlu0 %1871, %v2527_v61   ;;  %871 = vperm.xlu1 %1872, %v777_v4   ;;  %v793_v37 = vsub.f32 %v729_v1, %v777_v4 }
 0x17d   : > { %1889 = vpow2.f32 %v806_v7  ;;  %v769_v26 = vpop.xlane.xlu0 %768 }
 0x17e   : > { %v2542_v13 = vmax.f32 %v2529_v18, %v769_v26  ;;  %1891 = vpow2.f32 %v818_v19  ;;  %v2556_v39 = vpop.eup %1885  ;;  %v816_v41 = vmul.f32 1.442695, %v793_v37 }
 0x17f   : > { %1893 = vpow2.f32 %v808_v22 }
 0x180   : > { %v801_v29 = vsub.f32 %v2529_v18, %v2542_v13  ;;  %1387 = vst.msk [vmem:[#allocation2 + $0x78] sm:$0xff] %vm1042_vm1, %v2542_v13  ;;  %1082 = vperm.xlu0 %1871, %v2544_v21   ;;  %911 = vperm.xlu1 %1872, %v2542_v13   ;;  %1895 = vpow2.f32 %v822_v27 }
 0x181   : > { %1897 = vpow2.f32 %v812_v36 }
 0x182   : > { %1899 = vpow2.f32 %v826_v40 }
 0x183   : > { %1901 = vpow2.f32 %v816_v41 }
 0x184   : > { %1097 = vperm.xlu0 %1871, %v2556_v39   ;;  %1077 = vperm.xlu1 %1872, %v2554_v38   ;;  %1903 = vpow2.f32 %v820_v45 }
 0x185   : > { %1905 = vpow2.f32 %v824_v6 }
 0x186   : > { %v2562_v42 = vpop.eup %1887  ;;  %1907 = vpow2.f32 %v828_v24 }
 0x187   : > { %v2564_v43 = vpop.eup %1889 }
 0x188   : > { %1107 = vperm.xlu0 %1871, %v2562_v42   ;;  %1087 = vperm.xlu1 %1872, %v2564_v43   ;;  %v2570_v47 = vpop.eup %1891 }
 0x189   : > { %v2572_v51 = vpop.eup %1893 }
 0x18a   : > { %v2578_v54 = vpop.eup %1895 }
 0x18b   : > { %v2580_v56 = vpop.eup %1897 }
 0x18c   : > { %1117 = vperm.xlu0 %1871, %v2570_v47   ;;  %1092 = vperm.xlu1 %1872, %v2572_v51   ;;  %v2584_v34 = vpop.eup %1899 }
 0x18d   : > { %v2586_v57 = vpop.eup %1901 }
 0x18e   : > { %v2590_v50 = vpop.eup %1903 }
 0x18f   : > { %v2593_v58 = vpop.eup %1905 }
 0x190   : > { %1127 = vperm.xlu0 %1871, %v2578_v54   ;;  %1102 = vperm.xlu1 %1872, %v2580_v56   ;;  %v2596_v59 = vpop.eup %1907 }
 0x194   : > { %1137 = vperm.xlu0 %1871, %v2584_v34   ;;  %1112 = vperm.xlu1 %1872, %v2586_v57  }
 0x198   : > { %1122 = vperm.xlu1 %1872, %v2590_v50  }
 0x19c   : > { %1132 = vperm.xlu1 %1872, %v2593_v58  }
 0x1a0   : > { %1142 = vperm.xlu1 %1872, %v2596_v59  }
 0x1df   : > { %v837_v60 = vpop.permute.xlu1 %836 }
 0x1e0   : > { %v914_v1 = vsub.f32 %v2275_v12, %v837_v60 }
 0x1e2   : > { %v930_v2 = vmul.f32 1.442695, %v914_v1 }
 0x1e3   : > { %v877_v3 = vpop.permute.xlu1 %876  ;;  %v842_v5 = vpop.permute.xlu0 %841 }
 0x1e4   : > { %1909 = vpow2.f32 %v930_v2  ;;  %v922_v7 = vsub.f32 %v2300_v30, %v877_v3  ;;  %v915_v8 = vsub.f32 %v2304_v31, %v842_v5 }
 0x1e6   : > { %v932_v9 = vmul.f32 1.442695, %v915_v8  ;;  %v946_v10 = vmul.f32 1.442695, %v922_v7 }
 0x1e7   : > { %v882_v17 = vpop.permute.xlu1 %881  ;;  %v847_v4 = vpop.permute.xlu0 %846 }
 0x1e8   : > { %v923_v19 = vsub.f32 %v2321_v46, %v882_v17  ;;  %v916_v23 = vsub.f32 %v2325_v48, %v847_v4  ;;  %1911 = vpow2.f32 %v932_v9 }
 0x1e9   : > { %1913 = vpow2.f32 %v946_v10 }
 0x1ea   : > { %v948_v22 = vmul.f32 1.442695, %v923_v19  ;;  %v934_v25 = vmul.f32 1.442695, %v916_v23 }
 0x1eb   : > { %v852_v12 = vpop.permute.xlu1 %851  ;;  %v887_v26 = vpop.permute.xlu0 %886 }
 0x1ec   : > { %1915 = vpow2.f32 %v948_v22  ;;  %v917_v27 = vsub.f32 %v2345_v62, %v852_v12  ;;  %v924_v30 = vsub.f32 %v2349_v63, %v887_v26 }
 0x1ed   : > { %1917 = vpow2.f32 %v934_v25 }
 0x1ee   : > { %v1910_v31 = vpop.eup %1909  ;;  %v936_v28 = vmul.f32 1.442695, %v917_v27  ;;  %v950_v36 = vmul.f32 1.442695, %v924_v30 }
 0x1ef   : > { %994 = vadd.xlane.f32.xlu0 %v1910_v31  ;;  %v892_v37 = vpop.permute.xlu1 %891  ;;  %v857_v46 = vpop.permute.xlu0 %856 }
 0x1f0   : > { %1919 = vpow2.f32 %v936_v28  ;;  %v925_v48 = vsub.f32 %v2367_v15, %v892_v37  ;;  %v918_v40 = vsub.f32 %v2371_v16, %v857_v46 }
 0x1f1   : > { %1921 = vpow2.f32 %v950_v36 }
 0x1f2   : > { %v952_v35 = vmul.f32 1.442695, %v925_v48  ;;  %v938_v41 = vmul.f32 1.442695, %v918_v40  ;;  %v1912_v45 = vpop.eup %1911 }
 0x1f3   : > { %v862_v49 = vpop.permute.xlu1 %861  ;;  %v897_v62 = vpop.permute.xlu0 %896  ;;  %996 = vadd.xlane.f32.xlu1 %v1912_v45  ;;  %v1171_v11 = vpack.c.bf16 %v1912_v45, %v1910_v31  ;;  %v832_v45 = vmul.f32 1.442695, %v801_v29 }
 0x1f4   : > { %1923 = vpow2.f32 %v952_v35  ;;  %v919_v63 = vsub.f32 %v2390_v32, %v862_v49  ;;  %v926_v6 = vsub.f32 %v2394_v33, %v897_v62  ;;  %v1914_v24 = vpop.eup %1913  ;;  %v830_v49 = vmul.f32 1.442695, %v800_v14 }
 0x1f5   : > { %1925 = vpow2.f32 %v938_v41  ;;  %1779 = vmatprep.mubr.bf16.mxu0 %v1171_v11 }
 0x1f6   : > { %v1916_v60 = vpop.eup %1915  ;;  %v940_v1 = vmul.f32 1.442695, %v919_v63  ;;  %v954_v16 = vmul.f32 1.442695, %v926_v6 }
 0x1f7   : > { %v1918_v15 = vpop.eup %1917  ;;  %v902_v2 = vpop.permute.xlu1 %901  ;;  %v1175_v5 = vpack.c.bf16 %v1916_v60, %v1914_v24 }
 0x1f8   : > { %v867_v3 = vpop.permute.xlu0 %866  ;;  %1927 = vpow2.f32 %v940_v1  ;;  %v927_v7 = vsub.f32 %v2404_v20, %v902_v2  ;;  %998 = vadd.xlane.f32.xlu0 %v1918_v15  ;;  %v962_v2 = vld [vmem:[#allocation3] sm:$0xff] }
 0x1f9   : > { %v920_v32 = vsub.f32 %v2408_v44, %v867_v3  ;;  %1787 = vmatprep.mubr.bf16.mxu1 %v1175_v5  ;;  %1929 = vpow2.f32 %v954_v16  ;;  %v978_v3 = vmul.f32 %v2554_v38, %v962_v2 }
 0x1fa   : > { %v1920_v8 = vpop.eup %1919  ;;  %v956_v33 = vmul.f32 1.442695, %v927_v7 }
 0x1fb   : > { %v942_v9 = vmul.f32 1.442695, %v920_v32  ;;  %v872_v10 = vpop.permute.xlu1 %871  ;;  %v1172_v4 = vpack.c.bf16 %v1920_v8, %v1918_v15  ;;  %v1922_v22 = vpop.eup %1921 }
 0x1fc   : > { %v907_v17 = vpop.permute.xlu0 %906  ;;  %1931 = vpow2.f32 %v956_v33  ;;  %v921_v19 = vsub.f32 %v2412_v52, %v872_v10  ;;  %1000 = vadd.xlane.f32.xlu0 %v1920_v8  ;;  %v963_v8 = vld [vmem:[#allocation3 + $0x8] sm:$0xff]  ;;  %v964_v10 = vld [vmem:[#allocation3 + $0x10] sm:$0xff] }
 0x1fd   : > { %v928_v23 = vsub.f32 %v2414_v53, %v907_v17  ;;  %1933 = vpow2.f32 %v942_v9  ;;  %1780 = vmatmul.mubr.bf16.vlgmr.msra.gmra.mrb[0].mxu0 %v1172_v4  ;;  %v979_v33 = vmul.f32 %v2544_v21, %v963_v8  ;;  %v980_v4 = vmul.f32 %v2564_v43, %v964_v10 }
 0x1fe   : > { %v1924_v20 = vpop.eup %1923  ;;  %v944_v25 = vmul.f32 1.442695, %v921_v19 }
 0x1ff   : > { %v1926_v44 = vpop.eup %1925  ;;  %v958_v12 = vmul.f32 1.442695, %v928_v23  ;;  %v912_v26 = vpop.permute.xlu1 %911  ;;  %v1176_v27 = vpack.c.bf16 %v1924_v20, %v1922_v22  ;;  %v965_v23 = vld [vmem:[#allocation3 + $0x18] sm:$0xff] }
 0x200   : > { %1935 = vpow2.f32 %v944_v25  ;;  %v929_v30 = vsub.f32 %v2418_v55, %v912_v26  ;;  %1002 = vadd.xlane.f32.xlu1 %v1926_v44  ;;  %v2631_v18 = vpop.permute.xlu0 %1082  ;;  %v981_v38 = vmul.f32 %v2572_v51, %v965_v23  ;;  %v966_v25 = vld [vmem:[#allocation3 + $0x20] sm:$0xff] }
 0x201   : > { %1788 = vmatmul.mubr.bf16.vlgmr.msra.gmra.mrb[0].mxu1 %v1176_v27  ;;  %1937 = vpow2.f32 %v958_v12  ;;  %v982_v21 = vmul.f32 %v2556_v39, %v966_v25  ;;  %v967_v12 = vld [vmem:[#allocation3 + $0x28] sm:$0xff] }
 0x202   : > { %v1928_v31 = vpop.eup %1927  ;;  %v960_v28 = vmul.f32 1.442695, %v929_v30  ;;  %v983_v30 = vmul.f32 %v2580_v56, %v967_v12  ;;  %v1062_v12 = vld [vmem:[#allocation4 + $0x18] sm:$0xff] }
 0x203   : > { %1004 = vadd.xlane.f32.xlu0 %v1928_v31  ;;  %v1173_v52 = vpack.c.bf16 %v1928_v31, %v1926_v44  ;;  %v1930_v53 = vpop.eup %1929  ;;  %v2627_v6 = vpop.permute.xlu1 %1077 }
 0x204   : > { %1939 = vpow2.f32 %v960_v28  ;;  %v2635_v29 = vpop.permute.xlu0 %1097  ;;  %v968_v28 = vld [vmem:[#allocation3 + $0x30] sm:$0xff] }
 0x205   : > { %1783 = vmatprep.mubr.bf16.mxu0 %v1173_v52  ;;  %1941 = vpow2.f32 %v832_v45  ;;  %v984_v51 = vmul.f32 %v2562_v42, %v968_v28  ;;  %v969_v52 = vld [vmem:[#allocation3 + $0x38] sm:$0xff]  ;;  %v1067_v28 = vld [vmem:[#allocation4 + $0x40] sm:$0xff] }
 0x206   : > { %v1932_v36 = vpop.eup %1931  ;;  %1943 = vpow2.f32 %v830_v49  ;;  %v985_v39 = vmul.f32 %v2586_v57, %v969_v52  ;;  %v973_v57 = vld [vmem:[#allocation3 + $0x58] sm:$0xff] }
 0x207   : > { %v1934_v37 = vpop.eup %1933  ;;  %v1177_v46 = vpack.c.bf16 %v1932_v36, %v1930_v53  ;;  %v2629_v11 = vpop.permute.xlu1 %1087 }
 0x208   : > { %1006 = vadd.xlane.f32.xlu1 %v1934_v37  ;;  %v2639_v61 = vpop.permute.xlu0 %1107 }
 0x209   : > { %1791 = vmatprep.mubr.bf16.mxu1 %v1177_v46 }
 0x20a   : > { %v1936_v48 = vpop.eup %1935 }
 0x20b   : > { %1008 = vadd.xlane.f32.xlu0 %v1936_v48  ;;  %v1174_v40 = vpack.c.bf16 %v1936_v48, %v1934_v37  ;;  %v1938_v55 = vpop.eup %1937  ;;  %v2633_v13 = vpop.permute.xlu1 %1092  ;;  %v971_v48 = vld [vmem:[#allocation3 + $0x48] sm:$0xff] }
 0x20c   : > { %1010 = vadd.xlane.f32.xlu1 %v1914_v24  ;;  %v2643_v24 = vpop.permute.xlu0 %1117  ;;  %v987_v42 = vmul.f32 %v2590_v50, %v971_v48  ;;  %v975_v50 = vld [vmem:[#allocation3 + $0x68] sm:$0xff] }
 0x20d   : > { %1784 = vmatmul.mubr.bf16.gmra.mrb[4].mxu0 %v1174_v40 }
 0x20e   : > { %v1940_v35 = vpop.eup %1939 }
 0x20f   : > { %1012 = vadd.xlane.f32.xlu0 %v1916_v60  ;;  %v1178_v41 = vpack.c.bf16 %v1940_v35, %v1938_v55  ;;  %v2621_v62 = vpop.eup %1941  ;;  %v2637_v0 = vpop.permute.xlu1 %1102 }
 0x210   : > { %1014 = vadd.xlane.f32.xlu1 %v1922_v22  ;;  %v2624_v63 = vpop.eup %1943  ;;  %v2647_v1 = vpop.permute.xlu0 %1127 }
 0x211   : > { %1792 = vmatmul.mubr.bf16.gmra.mrb[4].mxu1 %v1178_v41 }
 0x213   : > { %1016 = vadd.xlane.f32.xlu0 %v1924_v20  ;;  %v2641_v14 = vpop.permute.xlu1 %1112 }
 0x214   : > { %1018 = vadd.xlane.f32.xlu1 %v1930_v53  ;;  %v2651_v16 = vpop.permute.xlu0 %1137 }
 0x217   : > { %1020 = vadd.xlane.f32.xlu0 %v1932_v36  ;;  %v2645_v60 = vpop.permute.xlu1 %1122  ;;  %v970_v36 = vld [vmem:[#allocation3 + $0x40] sm:$0xff] }
 0x218   : > { %1022 = vadd.xlane.f32.xlu1 %v1938_v55  ;;  %v986_v46 = vmul.f32 %v2570_v47, %v970_v36 }
 0x21b   : > { %1024 = vadd.xlane.f32.xlu0 %v1940_v35  ;;  %v2649_v15 = vpop.permute.xlu1 %1132  ;;  %v972_v35 = vld [vmem:[#allocation3 + $0x50] sm:$0xff] }
 0x21c   : > { %v988_v45 = vmul.f32 %v2578_v54, %v972_v35 }
 0x21f   : > { %v2654_v7 = vpop.permute.xlu1 %1142 }
 0x229   : > { %1152 = vperm.xlu1 %1872, %v2621_v62  }
 0x231   : > { %1147 = vperm.xlu0 %1871, %v2624_v63  }
 0x27c   : > { %v995_v5 = vpop.xlane.xlu0 %994 }
 0x27d   : > { %v1026_v32 = vadd.f32 %v995_v5, %v978_v3  ;;  %v974_v5 = vld [vmem:[#allocation3 + $0x60] sm:$0xff] }
 0x27e   : > { %v990_v8 = vmul.f32 %v2584_v34, %v974_v5 }
 0x27f   : > { %1043 = vst.msk [vmem:[#allocation3] sm:$0xff] %vm1042_vm1, %v1026_v32  ;;  %v989_v32 = vmul.f32 %v2593_v58, %v973_v57  ;;  %v977_v58 = vld [vmem:[#allocation3 + $0x78] sm:$0xff]  ;;  %v1063_v57 = vld [vmem:[#allocation4 + $0x20] sm:$0xff] }
 0x280   : > { %v997_v9 = vpop.xlane.xlu1 %996  ;;  %v993_v34 = vmul.f32 %v2621_v62, %v977_v58  ;;  %v1159_v5 = vmul.f32 %v2635_v29, %v1063_v57 }
 0x281   : > { %v1027_v17 = vadd.f32 %v997_v9, %v979_v33 }
 0x283   : > { %1044 = vst.msk [vmem:[#allocation3 + $0x8] sm:$0xff] %vm1042_vm1, %v1027_v17  ;;  %v976_v17 = vld [vmem:[#allocation3 + $0x70] sm:$0xff] }
 0x285   : > { %v999_v19 = vpop.xlane.xlu0 %998 }
 0x286   : > { %v1028_v22 = vadd.f32 %v999_v19, %v980_v4  ;;  %v991_v4 = vmul.f32 %v2596_v59, %v975_v50  ;;  %v992_v19 = vmul.f32 %v2624_v63, %v976_v17  ;;  %v1061_v59 = vld [vmem:[#allocation4 + $0x10] sm:$0xff]  ;;  %v1074_v17 = vld [vmem:[#allocation4 + $0x78] sm:$0xff] }
 0x287   : > { %v1157_v63 = vmul.f32 %v2629_v11, %v1061_v59 }
 0x288   : > { %1045 = vst.msk [vmem:[#allocation3 + $0x10] sm:$0xff] %vm1042_vm1, %v1028_v22 }
 0x289   : > { %v1001_v20 = vpop.xlane.xlu0 %1000 }
 0x28a   : > { %v1029_v44 = vadd.f32 %v1001_v20, %v981_v38 }
 0x28c   : > { %1046 = vst.msk [vmem:[#allocation3 + $0x18] sm:$0xff] %vm1042_vm1, %v1029_v44 }
 0x28d   : > { %v1003_v26 = vpop.xlane.xlu1 %1002 }
 0x28e   : > { %v1030_v27 = vadd.f32 %v1003_v26, %v982_v21  ;;  %v1059_v21 = vld [vmem:[#allocation4] sm:$0xff]  ;;  %v1060_v26 = vld [vmem:[#allocation4 + $0x8] sm:$0xff] }
 0x28f   : > { %v1156_v52 = vmul.f32 %v2631_v18, %v1060_v26 }
 0x290   : > { %1047 = vst.msk [vmem:[#allocation3 + $0x20] sm:$0xff] %vm1042_vm1, %v1030_v27  ;;  %v1005_v43 = vpop.xlane.xlu0 %1004  ;;  %v1155_v27 = vmul.f32 %v2627_v6, %v1059_v21  ;;  %v1163_v6 = vmul.f32 %v2643_v24, %v1067_v28  ;;  %v1065_v24 = vld [vmem:[#allocation4 + $0x30] sm:$0xff]  ;;  %v1393_v28 = vld [vmem:[#allocation3 + $0x8] sm:$0xff] (!%p1742_p0) }
 0x291   : > { %v1031_v31 = vadd.f32 %v1005_v43, %v983_v30  ;;  %v1069_v30 = vld [vmem:[#allocation4 + $0x50] sm:$0xff] }
 0x293   : > { %1048 = vst.msk [vmem:[#allocation3 + $0x28] sm:$0xff] %vm1042_vm1, %v1031_v31  ;;  %v1158_v31 = vmul.f32 %v2633_v13, %v1062_v12 }
 0x295   : > { %v1007_v53 = vpop.xlane.xlu1 %1006 }
 0x296   : > { %v1032_v37 = vadd.f32 %v1007_v53, %v984_v51  ;;  %v1070_v53 = vld [vmem:[#allocation4 + $0x58] sm:$0xff] }
 0x297   : > { %v1166_v13 = vmul.f32 %v2649_v15, %v1070_v53  ;;  %v1161_v15 = vmul.f32 %v2639_v61, %v1065_v24 }
 0x298   : > { %1049 = vst.msk [vmem:[#allocation3 + $0x30] sm:$0xff] %vm1042_vm1, %v1032_v37  ;;  %v1009_v56 = vpop.xlane.xlu0 %1008 }
 0x299   : > { %v1011_v40 = vpop.xlane.xlu1 %1010  ;;  %v1033_v55 = vadd.f32 %v1009_v56, %v985_v39  ;;  %v1165_v39 = vmul.f32 %v2647_v1, %v1069_v30  ;;  %v2038_v30 = vmov (!%p1742_p0), 0  }
 0x29a   : > { %v1034_v41 = vadd.f32 %v1011_v40, %v986_v46  ;;  %v1068_v46 = vld [vmem:[#allocation4 + $0x48] sm:$0xff]  ;;  %1946 = vset.pattern.permute.xlu1 (!%p1742_p0), %v2038_v30  ;;  %1945 = vset.pattern.permute.xlu0 (!%p1742_p0), %v2038_v30 }
 0x29b   : > { %1050 = vst.msk [vmem:[#allocation3 + $0x38] sm:$0xff] %vm1042_vm1, %v1033_v55  ;;  %v1164_v18 = vmul.f32 %v2645_v60, %v1068_v46 }
 0x29c   : > { %1051 = vst.msk [vmem:[#allocation3 + $0x40] sm:$0xff] %vm1042_vm1, %v1034_v41  ;;  %v1013_v49 = vpop.xlane.xlu0 %1012 }
 0x29d   : > { %v1015_v2 = vpop.xlane.xlu1 %1014  ;;  %v1035_v3 = vadd.f32 %v1013_v49, %v987_v42 }
 0x29e   : > { %v1036_v47 = vadd.f32 %v1015_v2, %v988_v45  ;;  %v1066_v2 = vld [vmem:[#allocation4 + $0x38] sm:$0xff] }
 0x29f   : > { %1052 = vst.msk [vmem:[#allocation3 + $0x48] sm:$0xff] %vm1042_vm1, %v1035_v3  ;;  %v1064_v3 = vld [vmem:[#allocation4 + $0x28] sm:$0xff] }
 0x2a0   : > { %1053 = vst.msk [vmem:[#allocation3 + $0x50] sm:$0xff] %vm1042_vm1, %v1036_v47  ;;  %v1017_v33 = vpop.xlane.xlu0 %1016  ;;  %v1073_v47 = vld [vmem:[#allocation4 + $0x70] sm:$0xff] }
 0x2a1   : > { %v1019_v9 = vpop.xlane.xlu1 %1018  ;;  %v1037_v10 = vadd.f32 %v1017_v33, %v989_v32  ;;  %v1071_v33 = vld [vmem:[#allocation4 + $0x60] sm:$0xff] }
 0x2a2   : > { %v1038_v54 = vadd.f32 %v1019_v9, %v990_v8  ;;  %v1162_v8 = vmul.f32 %v2641_v14, %v1066_v2  ;;  %v1167_v29 = vmul.f32 %v2651_v16, %v1071_v33  ;;  %v1394_v16 = vld [vmem:[#allocation3 + $0x10] sm:$0xff] (!%p1742_p0) }
 0x2a3   : > { %1054 = vst.msk [vmem:[#allocation3 + $0x58] sm:$0xff] %vm1042_vm1, %v1037_v10  ;;  %v1160_v10 = vmul.f32 %v2637_v0, %v1064_v3 }
 0x2a4   : > { %1055 = vst.msk [vmem:[#allocation3 + $0x60] sm:$0xff] %vm1042_vm1, %v1038_v54  ;;  %v1021_v23 = vpop.xlane.xlu0 %1020 }
 0x2a5   : > { %v1023_v22 = vpop.xlane.xlu1 %1022  ;;  %v1039_v38 = vadd.f32 %v1021_v23, %v991_v4  ;;  %v1072_v23 = vld [vmem:[#allocation4 + $0x68] sm:$0xff] }
 0x2a6   : > { %v1040_v20 = vadd.f32 %v1023_v22, %v992_v19  ;;  %v1168_v0 = vmul.f32 %v2654_v7, %v1072_v23  ;;  %v1410_v7 = vmax.f32 (!%p1742_p0), %v1394_v16, 1e-30 }
 0x2a7   : > { %1056 = vst.msk [vmem:[#allocation3 + $0x68] sm:$0xff] %vm1042_vm1, %v1039_v38 }
 0x2a8   : > { %1057 = vst.msk [vmem:[#allocation3 + $0x70] sm:$0xff] %vm1042_vm1, %v1040_v20  ;;  %v1025_v25 = vpop.xlane.xlu0 %1024  ;;  %1947 = vrcp.f32 (!%p1742_p0), %v1410_v7 }
 0x2a9   : > { %v1041_v44 = vadd.f32 %v1025_v25, %v993_v34  ;;  %v1153_v54 = vpop.permute.xlu1 %1152 }
 0x2aa   : > { %v1170_v14 = vmul.f32 %v1153_v54, %v1074_v17 }
 0x2ab   : > { %1058 = vst.msk [vmem:[#allocation3 + $0x78] sm:$0xff] %vm1042_vm1, %v1041_v44  ;;  %v1404_v57 = vld [vmem:[#allocation3 + $0x60] sm:$0xff] (!%p1742_p0) }
 0x2ac   : > { %v1420_v3 = vmax.f32 (!%p1742_p0), %v1404_v57, 1e-30 }
 0x2b0   : > { %v1148_v60 = vpop.permute.xlu0 %1147 }
 0x2b1   : > { %v1169_v58 = vmul.f32 %v1148_v60, %v1073_v47  ;;  %v1406_v60 = vld [vmem:[#allocation3 + $0x70] sm:$0xff] (!%p1742_p0) }
 0x2b2   : > { %v1422_v33 = vmax.f32 (!%p1742_p0), %v1406_v60, 1e-30 }
 0x2d0   : > { %v1781_v43 = vpop.f32.mrb[0].mxu0 }
 0x2d1   : > { %v1342_v62 = vadd.f32 %v1781_v43, %v1157_v63  ;;  %v1277_v51 = vpop.f32.mrb[1].mxu0  ;;  %v1392_v63 = vld [vmem:[#allocation3] sm:$0xff] (!%p1742_p0) }
 0x2d2   : > { %v1340_v36 = vadd.f32 %v1277_v51, %v1155_v27  ;;  %v1782_v37 = vpop.f32.mrb[2].mxu0  ;;  %v1395_v27 = vld [vmem:[#allocation3 + $0x18] sm:$0xff] (!%p1742_p0)  ;;  %v1408_v43 = vmax.f32 (!%p1742_p0), %v1392_v63, 1e-30  ;;  %v1409_v51 = vmax.f32 (!%p1742_p0), %v1393_v28, 1e-30 }
 0x2d3   : > { %1358 = vst [vmem:[#allocation4 + $0x10] sm:$0xff] %v1342_v62  ;;  %v1343_v56 = vadd.f32 %v1782_v37, %v1158_v31  ;;  %v1280_v11 = vpop.f32.mrb[3].mxu0  ;;  %v1411_v31 = vmax.f32 (!%p1742_p0), %v1395_v27, 1e-30  ;;  %v1397_v62 = vld [vmem:[#allocation3 + $0x28] sm:$0xff] (!%p1742_p0)  ;;  %v1399_v37 = vld [vmem:[#allocation3 + $0x38] sm:$0xff] (!%p1742_p0) }
 0x2d4   : > { %1356 = vst [vmem:[#allocation4] sm:$0xff] %v1340_v36  ;;  %v1341_v48 = vadd.f32 %v1280_v11, %v1156_v52  ;;  %v1789_v40 = vpop.f32.mrb[0].mxu1  ;;  %v1396_v52 = vld [vmem:[#allocation3 + $0x20] sm:$0xff] (!%p1742_p0)  ;;  %1949 = vrcp.f32 (!%p1742_p0), %v1408_v43  ;;  %v1413_v53 = vmax.f32 (!%p1742_p0), %v1397_v62, 1e-30  ;;  %v1401_v11 = vld [vmem:[#allocation3 + $0x48] sm:$0xff] (!%p1742_p0) }
 0x2d5   : > { %1359 = vst [vmem:[#allocation4 + $0x18] sm:$0xff] %v1343_v56  ;;  %v1350_v55 = vadd.f32 %v1789_v40, %v1165_v39  ;;  %v1309_v35 = vpop.f32.mrb[1].mxu1  ;;  %1951 = vrcp.f32 (!%p1742_p0), %v1411_v31  ;;  %v1412_v36 = vmax.f32 (!%p1742_p0), %v1396_v52, 1e-30  ;;  %v1398_v39 = vld [vmem:[#allocation3 + $0x30] sm:$0xff] (!%p1742_p0) }
 0x2d6   : > { %1357 = vst [vmem:[#allocation4 + $0x8] sm:$0xff] %v1341_v48  ;;  %v1348_v41 = vadd.f32 %v1309_v35, %v1163_v6  ;;  %v1790_v42 = vpop.f32.mrb[2].mxu1  ;;  %1953 = vrcp.f32 (!%p1742_p0), %v1409_v51  ;;  %v1415_v46 = vmax.f32 (!%p1742_p0), %v1399_v37, 1e-30  ;;  %v1414_v56 = vmax.f32 (!%p1742_p0), %v1398_v39, 1e-30  ;;  %v1948_v48 = vpop.eup (!%p1742_p0), %1947 }
 0x2d7   : > { %1366 = vst [vmem:[#allocation4 + $0x50] sm:$0xff] %v1350_v55  ;;  %v1351_v1 = vadd.f32 %v1790_v42, %v1166_v13  ;;  %v1312_v45 = vpop.f32.mrb[3].mxu1  ;;  %1955 = vrcp.f32 (!%p1742_p0), %v1413_v53  ;;  %v1400_v6 = vld [vmem:[#allocation3 + $0x40] sm:$0xff] (!%p1742_p0)  ;;  %v1417_v40 = vmax.f32 (!%p1742_p0), %v1401_v11, 1e-30  ;;  %1468 = vperm.xlu1 (!%p1742_p0), %1946, %v1948_v48   ;;  %v1403_v35 = vld [vmem:[#allocation3 + $0x58] sm:$0xff] (!%p1742_p0) }
 0x2d8   : > { %1364 = vst [vmem:[#allocation4 + $0x40] sm:$0xff] %v1348_v41  ;;  %v1349_v49 = vadd.f32 %v1312_v45, %v1164_v18  ;;  %1957 = vrcp.f32 (!%p1742_p0), %v1412_v36  ;;  %v1416_v55 = vmax.f32 (!%p1742_p0), %v1400_v6, 1e-30  ;;  %v1402_v41 = vld [vmem:[#allocation3 + $0x50] sm:$0xff] (!%p1742_p0) }
 0x2d9   : > { %1367 = vst [vmem:[#allocation4 + $0x58] sm:$0xff] %v1351_v1  ;;  %1959 = vrcp.f32 (!%p1742_p0), %v1415_v46  ;;  %v1419_v1 = vmax.f32 (!%p1742_p0), %v1403_v35, 1e-30  ;;  %v1418_v45 = vmax.f32 (!%p1742_p0), %v1402_v41, 1e-30 }
 0x2da   : > { %1365 = vst [vmem:[#allocation4 + $0x48] sm:$0xff] %v1349_v49  ;;  %1961 = vrcp.f32 (!%p1742_p0), %v1414_v56  ;;  %v1405_v49 = vld [vmem:[#allocation3 + $0x68] sm:$0xff] (!%p1742_p0) }
 0x2db   : > { %1963 = vrcp.f32 (!%p1742_p0), %v1417_v40 }
 0x2dc   : > { %1965 = vrcp.f32 (!%p1742_p0), %v1416_v55 }
 0x2dd   : > { %1967 = vrcp.f32 (!%p1742_p0), %v1419_v1 }
 0x2de   : > { %v1950_v13 = vpop.eup (!%p1742_p0), %1949  ;;  %1969 = vrcp.f32 (!%p1742_p0), %v1418_v45 }
 0x2df   : > { %v1952_v18 = vpop.eup (!%p1742_p0), %1951  ;;  %1458 = vperm.xlu0 (!%p1742_p0), %1945, %v1950_v13  }
 0x2e0   : > { %v1785_v32 = vpop.f32.mrb[4].mxu0  ;;  %v1954_v42 = vpop.eup (!%p1742_p0), %1953  ;;  %1473 = vperm.xlu1 (!%p1742_p0), %1946, %v1952_v18   ;;  %v1432_v18 = vld [vmem:[#allocation4 + $0x40] sm:$0xff] (!%p1742_p0) }
 0x2e1   : > { %v1346_v50 = vadd.f32 %v1785_v32, %v1161_v15  ;;  %v1293_v9 = vpop.f32.mrb[5].mxu0  ;;  %v1956_v24 = vpop.eup (!%p1742_p0), %1955  ;;  %v1421_v15 = vmax.f32 (!%p1742_p0), %v1405_v49, 1e-30  ;;  %v1433_v55 = vld [vmem:[#allocation4 + $0x48] sm:$0xff] (!%p1742_p0) }
 0x2e2   : > { %v1344_v4 = vadd.f32 %v1293_v9, %v1159_v5  ;;  %v1786_v19 = vpop.f32.mrb[6].mxu0  ;;  %v1958_v2 = vpop.eup (!%p1742_p0), %1957  ;;  %v1407_v5 = vld [vmem:[#allocation3 + $0x78] sm:$0xff] (!%p1742_p0) }
 0x2e3   : > { %1362 = vst [vmem:[#allocation4 + $0x30] sm:$0xff] %v1346_v50  ;;  %v1347_v61 = vadd.f32 %v1786_v19, %v1162_v8  ;;  %v1296_v22 = vpop.f32.mrb[7].mxu0  ;;  %1463 = vperm.xlu0 (!%p1742_p0), %1945, %v1954_v42   ;;  %v1960_v47 = vpop.eup (!%p1742_p0), %1959  ;;  %1971 = vrcp.f32 (!%p1742_p0), %v1421_v15  ;;  %v1423_v8 = vmax.f32 (!%p1742_p0), %v1407_v5, 1e-30 }
 0x2e4   : > { %1360 = vst [vmem:[#allocation4 + $0x20] sm:$0xff] %v1344_v4  ;;  %v1345_v38 = vadd.f32 %v1296_v22, %v1160_v10  ;;  %v1793_v20 = vpop.f32.mrb[4].mxu1  ;;  %1391 = sbr.rel (%p1742_p0) target bundleno = 898 (0x382), region = 89  ;;  %1483 = vperm.xlu1 (!%p1742_p0), %1946, %v1956_v24   ;;  %v1962_v32 = vpop.eup (!%p1742_p0), %1961  ;;  %1973 = vrcp.f32 (!%p1742_p0), %v1420_v3  ;;  %v2705_v22 = vld [vmem:[%s2764_s4] ss:$0 sm:$0xff] (!%p1742_p0)  ;;  %v1434_v3 = vld [vmem:[#allocation4 + $0x50] sm:$0xff] (!%p1742_p0) }
 0x2e5   : > { %1363 = vst [vmem:[#allocation4 + $0x38] sm:$0xff] %v1347_v61  ;;  %v1354_v34 = vadd.f32 %v1793_v20, %v1169_v58  ;;  %v1325_v25 = vpop.f32.mrb[5].mxu1  ;;  %v1964_v50 = vpop.eup (!%p1742_p0), %1963  ;;  %1975 = vrcp.f32 (!%p1742_p0), %v1423_v8  ;;  %v1426_v58 = vld [vmem:[#allocation4 + $0x10] sm:$0xff] (!%p1742_p0)  ;;  %v1424_v61 = vld [vmem:[#allocation4] sm:$0xff] (!%p1742_p0) }
 0x2e6   : > { %1361 = vst [vmem:[#allocation4 + $0x28] sm:$0xff] %v1345_v38  ;;  %v1352_v44 = vadd.f32 %v1325_v25, %v1167_v29  ;;  %v1794_v59 = vpop.f32.mrb[6].mxu1  ;;  %v1966_v9 = vpop.eup (!%p1742_p0), %1965  ;;  %1977 = vrcp.f32 (!%p1742_p0), %v1422_v33 }
 0x2e7   : > { %1370 = vst [vmem:[#allocation4 + $0x70] sm:$0xff] %v1354_v34  ;;  %v1355_v21 = vadd.f32 %v1794_v59, %v1170_v14  ;;  %v1328_v12 = vpop.f32.mrb[7].mxu1  ;;  %1478 = vperm.xlu0 (!%p1742_p0), %1945, %v1958_v2   ;;  %v1968_v10 = vpop.eup (!%p1742_p0), %1967  ;;  %v1427_v34 = vld [vmem:[#allocation4 + $0x18] sm:$0xff] (!%p1742_p0) }
 0x2e8   : > { %1368 = vst [vmem:[#allocation4 + $0x60] sm:$0xff] %v1352_v44  ;;  %v1353_v26 = vadd.f32 %v1328_v12, %v1168_v0  ;;  %1493 = vperm.xlu1 (!%p1742_p0), %1946, %v1960_v47   ;;  %v1970_v17 = vpop.eup (!%p1742_p0), %1969  ;;  %v1425_v0 = vld [vmem:[#allocation4 + $0x8] sm:$0xff] (!%p1742_p0)  ;;  %v1435_v2 = vld [vmem:[#allocation4 + $0x58] sm:$0xff] (!%p1742_p0) }
 0x2e9   : > { %1371 = vst [vmem:[#allocation4 + $0x78] sm:$0xff] %v1355_v21 }
 0x2ea   : > { %1369 = vst [vmem:[#allocation4 + $0x68] sm:$0xff] %v1353_v26  ;;  %v1430_v39 = vld [vmem:[#allocation4 + $0x30] sm:$0xff] (!%p1742_p0) }
 0x2eb   : > { %1488 = vperm.xlu0 %1945, %v1962_v32   ;;  %v1428_v7 = vld [vmem:[#allocation4 + $0x20] sm:$0xff] }
 0x2ec   : > { %1503 = vperm.xlu1 %1946, %v1964_v50   ;;  %v1431_v36 = vld [vmem:[#allocation4 + $0x38] sm:$0xff] }
 0x2ed   : > { %v1972_v54 = vpop.eup %1971  ;;  %v1429_v27 = vld [vmem:[#allocation4 + $0x28] sm:$0xff] }
 0x2ee   : > { %v1974_v4 = vpop.eup %1973 }
 0x2ef   : > { %1498 = vperm.xlu0 %1945, %v1966_v9   ;;  %v1976_v19 = vpop.eup %1975 }
 0x2f0   : > { %1513 = vperm.xlu1 %1946, %v1968_v10   ;;  %v1978_v23 = vpop.eup %1977 }
 0x2f1   : > { %v1437_v9 = vld [vmem:[#allocation4 + $0x68] sm:$0xff] }
 0x2f3   : > { %1508 = vperm.xlu0 %1945, %v1970_v17   ;;  %v1436_v17 = vld [vmem:[#allocation4 + $0x60] sm:$0xff] }
 0x2f4   : > { %1523 = vperm.xlu1 %1946, %v1972_v54  }
 0x2f7   : > { %1518 = vperm.xlu0 %1945, %v1974_v4  }
 0x2f8   : > { %1533 = vperm.xlu1 %1946, %v1976_v19  }
 0x2fb   : > { %1528 = vperm.xlu0 %1945, %v1978_v23  }
 0x356   : > { %v1469_v29 = vpop.permute.xlu1 %1468 }
 0x357   : > { %v1538_v38 = vmul.f32 %v1469_v29, %v1426_v58 }
 0x359   : > { %v1561_v25 = vadd.f32 %v2705_v22, %v1538_v38  ;;  %v1439_v38 = vld [vmem:[#allocation4 + $0x78] sm:$0xff] }
 0x35b   : > { %v1577_v21 = vmax.f32 %v1561_v25, 0.0 }
 0x35d   : > { %1593 = vst [vmem:[%s2168_s13 + $0x10] sm:$0xff] %v1577_v21 }
 0x35e   : > { %v1459_v20 = vpop.permute.xlu0 %1458 }
 0x35f   : > { %v1536_v14 = vmul.f32 %v1459_v20, %v1424_v61  ;;  %v1474_v59 = vpop.permute.xlu1 %1473 }
 0x360   : > { %v1539_v12 = vmul.f32 %v1474_v59, %v1427_v34 }
 0x361   : > { %v1559_v44 = vadd.f32 %v2705_v22, %v1536_v14  ;;  %v1438_v14 = vld [vmem:[#allocation4 + $0x70] sm:$0xff] }
 0x362   : > { %v1464_v26 = vpop.permute.xlu0 %1463  ;;  %v1562_v30 = vadd.f32 %v2705_v22, %v1539_v12 }
 0x363   : > { %v1575_v16 = vmax.f32 %v1559_v44, 0.0  ;;  %v1537_v63 = vmul.f32 %v1464_v26, %v1425_v0  ;;  %v1484_v31 = vpop.permute.xlu1 %1483 }
 0x364   : > { %v1578_v28 = vmax.f32 %v1562_v30, 0.0  ;;  %v1541_v62 = vmul.f32 %v1484_v31, %v1429_v27 }
 0x365   : > { %1591 = vst [vmem:[%s2168_s13] sm:$0xff] %v1575_v16  ;;  %v1560_v43 = vadd.f32 %v2705_v22, %v1537_v63 }
 0x366   : > { %v1479_v51 = vpop.permute.xlu0 %1478  ;;  %1594 = vst [vmem:[%s2168_s13 + $0x18] sm:$0xff] %v1578_v28  ;;  %v1564_v37 = vadd.f32 %v2705_v22, %v1541_v62 }
 0x367   : > { %v1576_v52 = vmax.f32 %v1560_v43, 0.0  ;;  %v1540_v53 = vmul.f32 %v1479_v51, %v1428_v7  ;;  %v1494_v56 = vpop.permute.xlu1 %1493 }
 0x368   : > { %v1580_v11 = vmax.f32 %v1564_v37, 0.0  ;;  %v1543_v6 = vmul.f32 %v1494_v56, %v1431_v36 }
 0x369   : > { %1592 = vst [vmem:[%s2168_s13 + $0x8] sm:$0xff] %v1576_v52  ;;  %v1563_v46 = vadd.f32 %v2705_v22, %v1540_v53 }
 0x36a   : > { %v1489_v48 = vpop.permute.xlu0 %1488  ;;  %1596 = vst [vmem:[%s2168_s13 + $0x28] sm:$0xff] %v1580_v11  ;;  %v1566_v35 = vadd.f32 %v2705_v22, %v1543_v6 }
 0x36b   : > { %v1579_v40 = vmax.f32 %v1563_v46, 0.0  ;;  %v1542_v13 = vmul.f32 %v1489_v48, %v1430_v39  ;;  %v1504_v42 = vpop.permute.xlu1 %1503 }
 0x36c   : > { %v1582_v1 = vmax.f32 %v1566_v35, 0.0  ;;  %v1545_v45 = vmul.f32 %v1504_v42, %v1433_v55 }
 0x36d   : > { %1595 = vst [vmem:[%s2168_s13 + $0x20] sm:$0xff] %v1579_v40  ;;  %v1565_v41 = vadd.f32 %v2705_v22, %v1542_v13 }
 0x36e   : > { %v1499_v49 = vpop.permute.xlu0 %1498  ;;  %1598 = vst [vmem:[%s2168_s13 + $0x38] sm:$0xff] %v1582_v1  ;;  %v1568_v15 = vadd.f32 %v2705_v22, %v1545_v45 }
 0x36f   : > { %v1581_v24 = vmax.f32 %v1565_v41, 0.0  ;;  %v1544_v57 = vmul.f32 %v1499_v49, %v1432_v18  ;;  %v1514_v47 = vpop.permute.xlu1 %1513 }
 0x370   : > { %v1584_v60 = vmax.f32 %v1568_v15, 0.0  ;;  %v1547_v32 = vmul.f32 %v1514_v47, %v1435_v2 }
 0x371   : > { %1597 = vst [vmem:[%s2168_s13 + $0x30] sm:$0xff] %v1581_v24  ;;  %v1567_v5 = vadd.f32 %v2705_v22, %v1544_v57 }
 0x372   : > { %v1509_v8 = vpop.permute.xlu0 %1508  ;;  %1600 = vst [vmem:[%s2168_s13 + $0x48] sm:$0xff] %v1584_v60  ;;  %v1570_v10 = vadd.f32 %v2705_v22, %v1547_v32 }
 0x373   : > { %v1583_v33 = vmax.f32 %v1567_v5, 0.0  ;;  %v1546_v50 = vmul.f32 %v1509_v8, %v1434_v3  ;;  %v1524_v4 = vpop.permute.xlu1 %1523 }
 0x374   : > { %v1586_v19 = vmax.f32 %v1570_v10, 0.0  ;;  %v1549_v23 = vmul.f32 %v1524_v4, %v1437_v9 }
 0x375   : > { %1599 = vst [vmem:[%s2168_s13 + $0x40] sm:$0xff] %v1583_v33  ;;  %v1569_v54 = vadd.f32 %v2705_v22, %v1546_v50 }
 0x376   : > { %v1519_v58 = vpop.permute.xlu0 %1518  ;;  %1602 = vst [vmem:[%s2168_s13 + $0x58] sm:$0xff] %v1586_v19  ;;  %v1572_v20 = vadd.f32 %v2705_v22, %v1549_v23 }
 0x377   : > { %v1585_v61 = vmax.f32 %v1569_v54, 0.0  ;;  %v1548_v29 = vmul.f32 %v1519_v58, %v1436_v17  ;;  %v1534_v25 = vpop.permute.xlu1 %1533 }
 0x378   : > { %v1588_v0 = vmax.f32 %v1572_v20, 0.0  ;;  %v1551_v44 = vmul.f32 %v1534_v25, %v1439_v38 }
 0x379   : > { %1601 = vst [vmem:[%s2168_s13 + $0x50] sm:$0xff] %v1585_v61  ;;  %v1571_v34 = vadd.f32 %v2705_v22, %v1548_v29 }
 0x37a   : > { %v1529_v59 = vpop.permute.xlu0 %1528  ;;  %1604 = vst [vmem:[%s2168_s13 + $0x68] sm:$0xff] %v1588_v0  ;;  %v1574_v26 = vadd.f32 %v2705_v22, %v1551_v44 }
 0x37b   : > { %v1587_v21 = vmax.f32 %v1571_v34, 0.0  ;;  %v1550_v12 = vmul.f32 %v1529_v59, %v1438_v14 }
 0x37c   : > { %v1590_v63 = vmax.f32 %v1574_v26, 0.0 }
 0x37d   : > { %1603 = vst [vmem:[%s2168_s13 + $0x60] sm:$0xff] %v1587_v21  ;;  %v1573_v16 = vadd.f32 %v2705_v22, %v1550_v12 }
 0x37e   : > { %1606 = vst [vmem:[%s2168_s13 + $0x78] sm:$0xff] %v1590_v63 }
 0x37f   : > { %v1589_v27 = vmax.f32 %v1573_v16, 0.0 }
 0x381   : > { %1605 = vst [vmem:[%s2168_s13 + $0x70] sm:$0xff] %v1589_v27 }
 0x382 PF: > { %s15_s24 = sadd.s32 1, %s2033_s24   ;;  %s2792_s18 = smov %s2013_s19 }
 0x383   : > { %p12_p1 = scmp.ge.s32.totalorder %s15_s24, 6   ;;  %s2793_s19 = smov %s2120_s6 }
 0x384   : > { %s2794_s20 = smov %s2025_s22  ;;  %s2795_s21 = smov %s2029_s23 }
 0x385   : > { %s2796_s22 = smov %s2799_s25  ;;  %s2797_s23 = smov %s2803_s26 }
 0x386   :  { %14 = sbr.rel (!%p12_p1) target bundleno = 4 (0x4), region = 133 }

// kernel: gcn_forward.9
= control target key start
LH: loop header
LB: loop body
LE: loop exit
PB: predicated region body
PF: predicated region fallthrough
CT: control target
= control target key end

     0   :  { %9 = vsyncpa [#allocation4], 0  ;;  %s575_s15 = smov 0   ;;  %s694_s0 = inlined_call_operand.vmem [shape: f32[2,256], index: 0, kind: input, shape index: {}]   ;;  %s695_s1 = inlined_call_operand.vmem [shape: f32[256,128], index: 1, kind: input, shape index: {}]   ;;  %s696_s2 = inlined_call_operand.vmem [shape: f32[128,128], index: 2, kind: input, shape index: {}]   ;;  %s697_s3 = inlined_call_operand.vmem [shape: f32[1,128], index: 3, kind: input, shape index: {}]   ;;  %s698_s4 = inlined_call_operand.hbm [shape: f32[2,128], index: 4, kind: output, shape index: {}]  }
   0x1 LB: > { %s581_s16 = sadd.s32 4294967295, %s542_s15   ;;  %p417_p0 = scmp.ge.s32.totalorder %s542_s15, 1  ;;  %s542_s15 = sphi %s575_s15, %s15_s15  }
   0x2   : > { %p168_p1 = scmp.lt.s32.totalorder %s542_s15, 3 }
   0x4   : > { %p169_p2 = pnand %p417_p0, %p168_p1 }
   0x5   : > { %p193_p3 = scmp.lt.s32.totalorder (!%p169_p2), %s581_s16, 1  ;;  %s419_s17 = sshll.u32 (!%p169_p2), %s581_s16, 4 }
   0x6   : > { %172 = sbr.rel (%p169_p2) target bundleno = 519 (0x207), region = 36  ;;  %p198_p4 = scmp.lt.s32.totalorder (!%p169_p2), %s419_s17, 31 }
   0x7   : > { %p421_p5 = scmp.ne.s32.totalorder (!%p169_p2), %s581_s16, 0 }
   0xd   : > { %s194_s18 = scalar_select %p193_p3, %s581_s16, 1 }
   0xe   : > { %s700_s17 = smov (!%p198_p4, %s419_s17), 31  ;;  %207 = sbr.rel (%p421_p5) target bundleno = 21 (0x15), region = 40 }
   0xf   : > { %s418_s19 = sshll.u32 %s194_s18, 1  ;;  %s420_s23 = sshll.u32 %s700_s17, 3  ;;  %v544_v0 = vmov (!%p421_p5), 0.0  }
  0x10   : > { %s591_s22 = scalar_lea.vmem %s694_s0, %s418_s19  ;;  %s596_s26 = scalar_lea.vmem %s695_s1, %s420_s23  ;;  %208 = vst [vmem:[#allocation2] sm:$0x3] (!%p421_p5), %v544_v0 }
  0x15 PF: > { %v212_v1 = vld [vmem:[%s596_s26] sm:$0xff]  ;;  %v213_v2 = vld [vmem:[%s596_s26 + $0x8] sm:$0xff]  ;;  %v214_v3 = vld [vmem:[%s596_s26 + $0x10] sm:$0xff]  ;;  %v545_v4 = vmov 0.0   ;;  %vm546_vm0 = vmmov 0   ;;  %p422_p6 = scmp.ne.s32.totalorder %s581_s16, 1 }
  0x16   : > { %446 = vmatprep.subr.bf16.mxu0 %v545_v4  ;;  %v228_v5 = vpack.c.bf16 %v213_v2, %v212_v1  ;;  %v215_v6 = vld [vmem:[%s596_s26 + $0x18] sm:$0xff]  ;;  %462 = vmatprep.mubr.msk.bf16.mxu0 %vm546_vm0, %v545_v4  ;;  %v216_v8 = vld [vmem:[%s596_s26 + $0x20] sm:$0xff]  ;;  %v217_v9 = vld [vmem:[%s596_s26 + $0x28] sm:$0xff]  ;;  %v547_v37 = vmov (!%p422_p6), 0.0   ;;  %vm548_vm1 = vmmov (!%p422_p6), 0  }
  0x17   : > { %v229_v7 = vpack.c.bf16 %v215_v6, %v214_v3  ;;  %v230_v10 = vpack.c.bf16 %v217_v9, %v216_v8  ;;  %v218_v11 = vld [vmem:[%s596_s26 + $0x30] sm:$0xff]  ;;  %v219_v12 = vld [vmem:[%s596_s26 + $0x38] sm:$0xff]  ;;  %v220_v14 = vld [vmem:[%s596_s26 + $0x40] sm:$0xff] }
  0x18   : > { %447 = vmatpush3.bf16.msra.mxu0 %v228_v5  ;;  %v231_v13 = vpack.c.bf16 %v219_v12, %v218_v11  ;;  %v221_v15 = vld [vmem:[%s596_s26 + $0x48] sm:$0xff]  ;;  %v222_v17 = vld [vmem:[%s596_s26 + $0x50] sm:$0xff]  ;;  %v223_v18 = vld [vmem:[%s596_s26 + $0x58] sm:$0xff] }
  0x19   : > { %448 = vmatprep.subr.bf16.mxu0 %v545_v4  ;;  %v232_v16 = vpack.c.bf16 %v221_v15, %v220_v14  ;;  %v233_v19 = vpack.c.bf16 %v223_v18, %v222_v17  ;;  %v224_v20 = vld [vmem:[%s596_s26 + $0x60] sm:$0xff]  ;;  %v225_v21 = vld [vmem:[%s596_s26 + $0x68] sm:$0xff]  ;;  %v226_v23 = vld [vmem:[%s596_s26 + $0x70] sm:$0xff] }
  0x1a   : > { %v234_v22 = vpack.c.bf16 %v225_v21, %v224_v20  ;;  %v227_v24 = vld [vmem:[%s596_s26 + $0x78] sm:$0xff]  ;;  %v210_v26 = vld [vmem:[%s591_s22] sm:$0x3]  ;;  %v285_v35 = vld [vmem:[%s696_s2 + $0x8] sm:$0xff] (!%p422_p6) }
  0x1b   : > { %v235_v25 = vpack.c.bf16 %v227_v24, %v226_v23  ;;  %v211_v27 = vpack.c.bf16 %v210_v26, %v210_v26  ;;  %v209_v28 = vld [vmem:[#allocation2] sm:$0x3]  ;;  %v286_v36 = vld [vmem:[%s696_s2 + $0x10] sm:$0xff] (!%p422_p6)  ;;  %v287_v39 = vld [vmem:[%s696_s2 + $0x18] sm:$0xff] (!%p422_p6) }
  0x1c   : > { %449 = vmatpush3.bf16.msra.mxu0 %v229_v7  ;;  %v284_v34 = vld [vmem:[%s696_s2] sm:$0xff] (!%p422_p6)  ;;  %v301_v40 = vpack.c.bf16 (!%p422_p6), %v287_v39, %v286_v36  ;;  %v289_v42 = vld [vmem:[%s696_s2 + $0x28] sm:$0xff] (!%p422_p6)  ;;  %v290_v44 = vld [vmem:[%s696_s2 + $0x30] sm:$0xff] (!%p422_p6) }
  0x1d   : > { %450 = vmatprep.subr.bf16.mxu0 %v545_v4  ;;  %v300_v38 = vpack.c.bf16 (!%p422_p6), %v285_v35, %v284_v34  ;;  %v288_v41 = vld [vmem:[%s696_s2 + $0x20] sm:$0xff] (!%p422_p6)  ;;  %v291_v45 = vld [vmem:[%s696_s2 + $0x38] sm:$0xff] (!%p422_p6)  ;;  %v293_v48 = vld [vmem:[%s696_s2 + $0x48] sm:$0xff] (!%p422_p6) }
  0x1e   : > { %v302_v43 = vpack.c.bf16 (!%p422_p6), %v289_v42, %v288_v41  ;;  %v303_v46 = vpack.c.bf16 (!%p422_p6), %v291_v45, %v290_v44  ;;  %v292_v47 = vld [vmem:[%s696_s2 + $0x40] sm:$0xff] (!%p422_p6)  ;;  %v294_v50 = vld [vmem:[%s696_s2 + $0x50] sm:$0xff] (!%p422_p6)  ;;  %v295_v51 = vld [vmem:[%s696_s2 + $0x58] sm:$0xff] (!%p422_p6) }
  0x1f   : > { %v304_v49 = vpack.c.bf16 (!%p422_p6), %v293_v48, %v292_v47  ;;  %v305_v52 = vpack.c.bf16 (!%p422_p6), %v295_v51, %v294_v50  ;;  %v296_v53 = vld [vmem:[%s696_s2 + $0x60] sm:$0xff] (!%p422_p6)  ;;  %v297_v54 = vld [vmem:[%s696_s2 + $0x68] sm:$0xff] (!%p422_p6)  ;;  %v298_v56 = vld [vmem:[%s696_s2 + $0x70] sm:$0xff] (!%p422_p6) }
  0x20   : > { %451 = vmatpush3.bf16.msra.mxu0 %v230_v10  ;;  %v306_v55 = vpack.c.bf16 (!%p422_p6), %v297_v54, %v296_v53  ;;  %v299_v57 = vld [vmem:[%s696_s2 + $0x78] sm:$0xff] (!%p422_p6)  ;;  %v423_v61 = vld [vmem:[%s697_s3] ss:$0 sm:$0xff] (!%p422_p6) }
  0x21   : > { %452 = vmatprep.subr.bf16.mxu0 %v545_v4  ;;  %v307_v58 = vpack.c.bf16 (!%p422_p6), %v299_v57, %v298_v56 }
  0x24   : > { %453 = vmatpush3.bf16.msra.mxu0 %v231_v13 }
  0x25   : > { %454 = vmatprep.subr.bf16.mxu0 %v545_v4 }
  0x28   : > { %455 = vmatpush3.bf16.msra.mxu0 %v232_v16 }
  0x29   : > { %456 = vmatprep.subr.bf16.mxu0 %v545_v4 }
  0x2c   : > { %457 = vmatpush3.bf16.msra.mxu0 %v233_v19 }
  0x2d   : > { %458 = vmatprep.subr.bf16.mxu0 %v545_v4 }
  0x30   : > { %459 = vmatpush3.bf16.msra.mxu0 %v234_v22 }
  0x31   : > { %460 = vmatprep.subr.bf16.mxu0 %v545_v4 }
  0x34   : > { %461 = vmatpush3.bf16.msra.mxu0 %v235_v25 }
  0x35   : > { %466 = vmatprep.subr.bf16.mxu0 (!%p422_p6), %v547_v37 }
  0x37   : > { %463 = vmatmul.mubr.bf16.vlgmr.msra.gmra.mrb[0].mxu0 %v211_v27 }
  0x38   : > { %482 = vmatprep.mubr.msk.bf16.mxu0 (!%p422_p6), %vm548_vm1, %v547_v37  ;;  %467 = vmatpush3.bf16.msra.mxu0 (!%p422_p6), %v300_v38 }
  0x39   : > { %468 = vmatprep.subr.bf16.mxu0 (!%p422_p6), %v547_v37 }
  0x3c   : > { %469 = vmatpush3.bf16.msra.mxu0 (!%p422_p6), %v301_v40 }
  0x3d   : > { %470 = vmatprep.subr.bf16.mxu0 (!%p422_p6), %v547_v37 }
  0x40   : > { %471 = vmatpush3.bf16.msra.mxu0 (!%p422_p6), %v302_v43 }
  0x41   : > { %472 = vmatprep.subr.bf16.mxu0 (!%p422_p6), %v547_v37 }
  0x44   : > { %473 = vmatpush3.bf16.msra.mxu0 (!%p422_p6), %v303_v46 }
  0x45   : > { %474 = vmatprep.subr.bf16.mxu0 (!%p422_p6), %v547_v37 }
  0x48   : > { %475 = vmatpush3.bf16.msra.mxu0 (!%p422_p6), %v304_v49 }
  0x49   : > { %476 = vmatprep.subr.bf16.mxu0 (!%p422_p6), %v547_v37 }
  0x4c   : > { %477 = vmatpush3.bf16.msra.mxu0 (!%p422_p6), %v305_v52 }
  0x4d   : > { %478 = vmatprep.subr.bf16.mxu0 (!%p422_p6), %v547_v37 }
  0x50   : > { %479 = vmatpush3.bf16.msra.mxu0 (!%p422_p6), %v306_v55 }
  0x51   : > { %480 = vmatprep.subr.bf16.mxu0 (!%p422_p6), %v547_v37 }
  0x54   : > { %481 = vmatpush3.bf16.msra.mxu0 (!%p422_p6), %v307_v58 }
 0x107   : > { %281 = sbr.rel (%p422_p6) target bundleno = 494 (0x1ee), region = 44 }
 0x10a   : > { %v270_v29 = vpop.f32.mrb[0].mxu0 }
 0x10b   : > { %v276_v30 = vadd.f32 %v270_v29, %v209_v28  ;;  %v464_v31 = vpop.f32.mrb[1].mxu0 }
 0x10c   : > { %v273_v32 = vpop.f32.mrb[2].mxu0 }
 0x10d   : > { %277 = vst [vmem:[#allocation2] sm:$0x3] %v276_v30  ;;  %v465_v33 = vpop.f32.mrb[3].mxu0 }
 0x114   : > { %v282_v59 = vld [vmem:[#allocation2] sm:$0x3] }
 0x115   : > { %v283_v60 = vpack.c.bf16 %v282_v59, %v282_v59 }
 0x117   : > { %483 = vmatmul.mubr.bf16.vlgmr.msra.gmra.mrb[0].mxu0 %v283_v60 }
 0x1ea   : > { %v349_v62 = vpop.f32.mrb[0].mxu0 }
 0x1eb   : > { %v350_v63 = vadd.f32 %v423_v61, %v349_v62  ;;  %v484_v0 = vpop.f32.mrb[1].mxu0 }
 0x1ec   : > { %v352_v1 = vpop.f32.mrb[2].mxu0 }
 0x1ed   : > { %355 = vst [vmem:[#allocation3] sm:$0x3] %v350_v63  ;;  %v485_v2 = vpop.f32.mrb[3].mxu0 }
 0x1ee PF: > { %p490_p7 = scmp.eq.s32.totalorder %s581_s16, 1  ;;  %s549_s11 = smov [#allocation3]  }
 0x1ef   : > { %s363_s12 = sshll.u32 %s549_s11, 4  ;;  %s364_s12 = int_to_ptr.vmem [resolvable:$true] %s363_s12 }
 0x1f0   : > { %s506_s13 = scalar_lea.vmem %s364_s12, 32  ;;  %p513_p11 = scmp.lt.s32.totalorder %s364_s12, %s364_s12 }
 0x1f1   : > { %p507_p8 = scmp.ne.s32.totalorder %s364_s12, %s506_s13  ;;  %p514_p12 = scmp.lt.s32.totalorder %s506_s13, %s506_s13 }
 0x1f3   : > { %p508_p9 = pnand %p507_p8, %p490_p7  ;;  %p515_p13 = por %p514_p12, %p513_p11 }
 0x1f5   : > { %p509_p10 = pneg %p508_p9 }
 0x1f7   : > { %p516_p0 = pnand %p515_p13, %p509_p10 }
 0x1f9   : > { %519 = shalt.err (!%p516_p0)
}
 0x1fa   : > { %s520_s18 = scalar_lea.hbm %s698_s4, 32 }
 0x1fb   : > { %p521_p1 = scmp.ne.s32.totalorder %s698_s4, %s520_s18  ;;  %p526_p4 = scmp.lt.u32.totalorder %s520_s18, %s698_s4 }
 0x1fd   : > { %p522_p2 = pnand %p521_p1, %p490_p7 }
 0x1ff   : > { %p523_p3 = pneg %p522_p2 }
 0x201   : > { %p528_p5 = pnand %p526_p4, %p523_p3 }
 0x203   : > { %531 = shalt.err (!%p528_p5)
}
 0x204   : > { %487 = dma.vmem_to_hbm [thread:$0]  (%p490_p7), %s364_s12, 32, %s698_s4, [#allocation4]  }
 0x205   : > { %537 = dma.done.wait (%p490_p7), [#allocation4], 32  }
 0x206   : > { %539 = vsyncadd (%p490_p7), [#allocation4], 4294967264 }
 0x207 PF: > { %s15_s15 = sadd.s32 1, %s542_s15  }
 0x208   : > { %p12_p6 = scmp.ge.s32.totalorder %s15_s15, 4  }
 0x20a   :  { %14 = sbr.rel (!%p12_p6) target bundleno = 1 (0x1), region = 74 }
 0x211   :  { %376 = vsyncpa [#allocation4], 1 }
 0x212   :  { %378 = vsyncpa [#allocation4 + $0x1], 1 }

// kernel: gcn_forward.8
= control target key start
LH: loop header
LB: loop body
LE: loop exit
PB: predicated region body
PF: predicated region fallthrough
CT: control target
= control target key end

     0   :  { %s2053_s18 = smov 0   ;;  %s2055_s19 = smov 0   ;;  %s2744_s0 = inlined_call_operand.vmem [shape: f32[256,1], index: 0, kind: input, shape index: {}]   ;;  %s2745_s1 = inlined_call_operand.vmem [shape: f32[1,256], index: 1, kind: input, shape index: {}]   ;;  %s2746_s2 = inlined_call_operand.vmem [shape: bf16[256,256], index: 2, kind: input, shape index: {}]   ;;  %s2747_s3 = inlined_call_operand.vmem [shape: bf16[256,128], index: 3, kind: input, shape index: {}]   ;;  %s2748_s4 = inlined_call_operand.vmem [shape: f32[1,128], index: 4, kind: input, shape index: {}]   ;;  %s2749_s5 = inlined_call_operand.vmem [shape: f32[256,128], index: 5, kind: output, shape index: {}]  }
   0x1   :  { %s2057_s20 = smov 0   ;;  %s2059_s21 = smov 0  }
   0x2   :  { %s2061_s22 = smov 0   ;;  %s2063_s23 = smov 0  }
   0x3   :  { %s2065_s24 = smov 0  }
   0x4 LB: > { %s24_s25 = sadd.s32 1, %s2009_s22  ;;  %s27_s26 = sadd.s32 1, %s2013_s23  ;;  %s2017_s24 = sphi %s2065_s24, %s15_s24   ;;  %s2013_s23 = sphi %s2063_s23, %s2781_s23   ;;  %s2009_s22 = sphi %s2061_s22, %s2780_s22   ;;  %s2005_s21 = sphi %s2059_s21, %s2779_s21   ;;  %s2001_s20 = sphi %s2057_s20, %s2778_s20   ;;  %s1997_s19 = sphi %s2055_s19, %s2777_s19   ;;  %s1993_s18 = sphi %s2053_s18, %s2776_s18  }
   0x5   : > { %p25_p0 = scmp.ge.s32.totalorder %s24_s25, 2  ;;  %p95_p1 = scmp.ne.s32.totalorder %s1997_s19, %s1993_s18 }
   0x6   : > { %p96_p2 = scmp.eq.s32.totalorder %s2017_s24, 0  ;;  %s88_s30 = sadd.s32 1, %s1997_s19 }
   0x7   : > { %s2783_s25 = smov (%p25_p0, %s24_s25), 0  ;;  %s2785_s26 = smov (!%p25_p0, %s27_s26), %s2013_s23 }
   0x8   : > { %p97_p3 = por %p96_p2, %p95_p1  ;;  %p29_p4 = scmp.ge.s32.totalorder %s2785_s26, 2 }
   0x9   : > { %s84_s27 = ssub.s32 %s2009_s22, %s2783_s25  ;;  %p1703_p6 = scmp.ge.s32.totalorder %s2017_s24, 4 }
   0xa   : > { %s2787_s26 = smov (%p29_p4, %s2785_s26), 0 }
   0xb   : > { %s83_s28 = ssub.s32 %s2013_s23, %s2787_s26  ;;  %197 = sbr.rel (%p1703_p6) target bundleno = 34 (0x22), region = 20 }
   0xc   : > { %s85_s29 = sor.u32 %s84_s27, %s83_s28 }
   0xd   : > { %p86_p5 = scmp.eq.s32.totalorder %s85_s29, 0 }
   0xf   : > { %s2104_s6 = scalar_select %p86_p5, %s1997_s19, %s88_s30  }
  0x12   : > { %215 = sbr.rel (!%p97_p3) target bundleno = 34 (0x22), region = 32  ;;  %s217_s7 = sand.u32 (%p97_p3), 1, %s1997_s19  }
  0x13   : > { %s1730_s8 = sshll.u32 (%p97_p3), %s2013_s23, 5  ;;  %s1704_s9 = sshll.u32 (%p97_p3), %s217_s7, 6 }
  0x14   : > { %s222_s10 = sadd.s32 (%p97_p3), %s2009_s22, %s1730_s8  ;;  %s219_s15 = scalar_lea.vmem (%p97_p3), [#allocation5], %s1704_s9 }
  0x15   : > { %s1707_s11 = sshll.u32 (%p97_p3), %s222_s10, 2 }
  0x16   : > { %s2113_s14 = scalar_lea.vmem (%p97_p3), %s2746_s2, %s1707_s11 }
  0x17   : > { %v240_v0 = vld [vmem:[%s2113_s14] sm:$0xf] (%p97_p3)  ;;  %v242_v1 = vld [vmem:[%s2113_s14 + $0x8] sm:$0xf] (%p97_p3)  ;;  %v244_v2 = vld [vmem:[%s2113_s14 + $0x10] sm:$0xf] (%p97_p3) }
  0x18   : > { %241 = vst [vmem:[%s219_s15] sm:$0xf] (%p97_p3), %v240_v0  ;;  %243 = vst [vmem:[%s219_s15 + $0x4] sm:$0xf] (%p97_p3), %v242_v1  ;;  %v246_v3 = vld [vmem:[%s2113_s14 + $0x18] sm:$0xf] (%p97_p3) }
  0x19   : > { %245 = vst [vmem:[%s219_s15 + $0x8] sm:$0xf] %v244_v2  ;;  %v248_v4 = vld [vmem:[%s2113_s14 + $0x20] sm:$0xf]  ;;  %v250_v5 = vld [vmem:[%s2113_s14 + $0x28] sm:$0xf] }
  0x1a   : > { %247 = vst [vmem:[%s219_s15 + $0xc] sm:$0xf] %v246_v3  ;;  %249 = vst [vmem:[%s219_s15 + $0x10] sm:$0xf] %v248_v4  ;;  %v252_v6 = vld [vmem:[%s2113_s14 + $0x30] sm:$0xf] }
  0x1b   : > { %251 = vst [vmem:[%s219_s15 + $0x14] sm:$0xf] %v250_v5  ;;  %v254_v7 = vld [vmem:[%s2113_s14 + $0x38] sm:$0xf]  ;;  %v256_v8 = vld [vmem:[%s2113_s14 + $0x40] sm:$0xf] }
  0x1c   : > { %253 = vst [vmem:[%s219_s15 + $0x18] sm:$0xf] %v252_v6  ;;  %255 = vst [vmem:[%s219_s15 + $0x1c] sm:$0xf] %v254_v7  ;;  %v258_v9 = vld [vmem:[%s2113_s14 + $0x48] sm:$0xf] }
  0x1d   : > { %257 = vst [vmem:[%s219_s15 + $0x20] sm:$0xf] %v256_v8  ;;  %v260_v10 = vld [vmem:[%s2113_s14 + $0x50] sm:$0xf]  ;;  %v262_v11 = vld [vmem:[%s2113_s14 + $0x58] sm:$0xf] }
  0x1e   : > { %259 = vst [vmem:[%s219_s15 + $0x24] sm:$0xf] %v258_v9  ;;  %261 = vst [vmem:[%s219_s15 + $0x28] sm:$0xf] %v260_v10  ;;  %v264_v12 = vld [vmem:[%s2113_s14 + $0x60] sm:$0xf] }
  0x1f   : > { %263 = vst [vmem:[%s219_s15 + $0x2c] sm:$0xf] %v262_v11  ;;  %v266_v13 = vld [vmem:[%s2113_s14 + $0x68] sm:$0xf]  ;;  %v268_v14 = vld [vmem:[%s2113_s14 + $0x70] sm:$0xf] }
  0x20   : > { %265 = vst [vmem:[%s219_s15 + $0x30] sm:$0xf] %v264_v12  ;;  %267 = vst [vmem:[%s219_s15 + $0x34] sm:$0xf] %v266_v13  ;;  %v270_v15 = vld [vmem:[%s2113_s14 + $0x78] sm:$0xf] }
  0x21   : > { %269 = vst [vmem:[%s219_s15 + $0x38] sm:$0xf] %v268_v14  ;;  %271 = vst [vmem:[%s219_s15 + $0x3c] sm:$0xf] %v270_v15 }
  0x22 PF: > { %p1708_p7 = scmp.ge.s32.totalorder %s2017_s24, 1  ;;  %p334_p8 = scmp.lt.s32.totalorder %s2017_s24, 5 }
  0x24   : > { %p335_p9 = pnand %p1708_p7, %p334_p8 }
  0x25   : > { %s341_s16 = sand.u32 (!%p335_p9), 1, %s1993_s18   ;;  %s1710_s17 = sshll.u32 (!%p335_p9), %s2005_s21, 4 }
  0x26   : > { %338 = sbr.rel (%p335_p9) target bundleno = 896 (0x380), region = 77  ;;  %s1709_s27 = sshll.u32 (!%p335_p9), %s341_s16, 6 }
  0x27   : > { %p382_p10 = scmp.lt.s32.totalorder (!%p335_p9), %s1710_s17, 31  ;;  %p387_p11 = scmp.lt.s32.totalorder (!%p335_p9), %s2001_s20, 1 }
  0x28   : > { %s1712_s30 = sshll.u32 (!%p335_p9), %s2001_s20, 4  ;;  %s2159_s7 = scalar_lea.vmem (!%p335_p9), [#allocation5], %s1709_s27 }
  0x29   : > { %p392_p12 = scmp.lt.s32.totalorder (!%p335_p9), %s1712_s30, 31  ;;  %p1716_p13 = scmp.ne.s32.totalorder (!%p335_p9), %s2001_s20, 0 }
  0x2d   : > { %s2789_s17 = smov (!%p382_p10, %s1710_s17), 31  ;;  %s2791_s30 = smov (!%p392_p12, %s1712_s30), 31 }
  0x2e   : > { %s2137_s28 = scalar_select %p387_p11, %s2001_s20, 1 }
  0x2f   : > { %s1711_s29 = sshll.u32 %s2789_s17, 3  ;;  %s1713_s14 = sshll.u32 %s2791_s30, 2  ;;  %vm410_vm0 = vcmask (!%p1716_p13), 7168   ;;  %v2019_v16 = vmov (!%p1716_p13), -1e+30   ;;  %v2020_v17 = vmov (!%p1716_p13), 0.0  }
  0x30   : > { %s2143_s9 = scalar_lea.vmem %s2744_s0, %s1711_s29  ;;  %s389_s12 = scalar_lea.vmem %s2745_s1, %s2137_s28  ;;  %411 = vst.msk [vmem:[#allocation2] sm:$0xff] (!%p1716_p13), %vm410_vm0, %v2019_v16  ;;  %412 = vst.msk [vmem:[#allocation2 + $0x8] sm:$0xff] (!%p1716_p13), %vm410_vm0, %v2019_v16 }
  0x31   : > { %s2152_s13 = scalar_lea.vmem %s2749_s5, %s1711_s29  ;;  %s2157_s17 = scalar_lea.vmem %s2747_s3, %s1713_s14  ;;  %413 = vst.msk [vmem:[#allocation2 + $0x10] sm:$0xff] (!%p1716_p13), %vm410_vm0, %v2019_v16  ;;  %414 = vst.msk [vmem:[#allocation2 + $0x18] sm:$0xff] (!%p1716_p13), %vm410_vm0, %v2019_v16 }
  0x32   : > { %409 = sbr.rel (%p1716_p13) target bundleno = 72 (0x48), region = 85  ;;  %415 = vst.msk [vmem:[#allocation2 + $0x20] sm:$0xff] (!%p1716_p13), %vm410_vm0, %v2019_v16  ;;  %416 = vst.msk [vmem:[#allocation2 + $0x28] sm:$0xff] (!%p1716_p13), %vm410_vm0, %v2019_v16 }
  0x33   : > { %417 = vst.msk [vmem:[#allocation2 + $0x30] sm:$0xff] (!%p1716_p13), %vm410_vm0, %v2019_v16  ;;  %418 = vst.msk [vmem:[#allocation2 + $0x38] sm:$0xff] (!%p1716_p13), %vm410_vm0, %v2019_v16 }
  0x34   : > { %419 = vst.msk [vmem:[#allocation2 + $0x40] sm:$0xff] (!%p1716_p13), %vm410_vm0, %v2019_v16  ;;  %420 = vst.msk [vmem:[#allocation2 + $0x48] sm:$0xff] (!%p1716_p13), %vm410_vm0, %v2019_v16 }
  0x35   : > { %421 = vst.msk [vmem:[#allocation2 + $0x50] sm:$0xff] (!%p1716_p13), %vm410_vm0, %v2019_v16  ;;  %422 = vst.msk [vmem:[#allocation2 + $0x58] sm:$0xff] (!%p1716_p13), %vm410_vm0, %v2019_v16 }
  0x36   : > { %423 = vst.msk [vmem:[#allocation2 + $0x60] sm:$0xff] (!%p1716_p13), %vm410_vm0, %v2019_v16  ;;  %424 = vst.msk [vmem:[#allocation2 + $0x68] sm:$0xff] (!%p1716_p13), %vm410_vm0, %v2019_v16 }
  0x37   : > { %425 = vst.msk [vmem:[#allocation2 + $0x70] sm:$0xff] (!%p1716_p13), %vm410_vm0, %v2019_v16  ;;  %426 = vst.msk [vmem:[#allocation2 + $0x78] sm:$0xff] (!%p1716_p13), %vm410_vm0, %v2019_v16 }
  0x38   : > { %427 = vst.msk [vmem:[#allocation3] sm:$0xff] (!%p1716_p13), %vm410_vm0, %v2020_v17  ;;  %428 = vst.msk [vmem:[#allocation3 + $0x8] sm:$0xff] (!%p1716_p13), %vm410_vm0, %v2020_v17 }
  0x39   : > { %429 = vst.msk [vmem:[#allocation3 + $0x10] sm:$0xff] %vm410_vm0, %v2020_v17  ;;  %430 = vst.msk [vmem:[#allocation3 + $0x18] sm:$0xff] %vm410_vm0, %v2020_v17 }
  0x3a   : > { %431 = vst.msk [vmem:[#allocation3 + $0x20] sm:$0xff] %vm410_vm0, %v2020_v17  ;;  %432 = vst.msk [vmem:[#allocation3 + $0x28] sm:$0xff] %vm410_vm0, %v2020_v17 }
  0x3b   : > { %433 = vst.msk [vmem:[#allocation3 + $0x30] sm:$0xff] %vm410_vm0, %v2020_v17  ;;  %434 = vst.msk [vmem:[#allocation3 + $0x38] sm:$0xff] %vm410_vm0, %v2020_v17 }
  0x3c   : > { %435 = vst.msk [vmem:[#allocation3 + $0x40] sm:$0xff] %vm410_vm0, %v2020_v17  ;;  %436 = vst.msk [vmem:[#allocation3 + $0x48] sm:$0xff] %vm410_vm0, %v2020_v17 }
  0x3d   : > { %437 = vst.msk [vmem:[#allocation3 + $0x50] sm:$0xff] %vm410_vm0, %v2020_v17  ;;  %438 = vst.msk [vmem:[#allocation3 + $0x58] sm:$0xff] %vm410_vm0, %v2020_v17 }
  0x3e   : > { %439 = vst.msk [vmem:[#allocation3 + $0x60] sm:$0xff] %vm410_vm0, %v2020_v17  ;;  %440 = vst.msk [vmem:[#allocation3 + $0x68] sm:$0xff] %vm410_vm0, %v2020_v17 }
  0x3f   : > { %441 = vst.msk [vmem:[#allocation3 + $0x70] sm:$0xff] %vm410_vm0, %v2020_v17  ;;  %442 = vst.msk [vmem:[#allocation3 + $0x78] sm:$0xff] %vm410_vm0, %v2020_v17 }
  0x40   : > { %443 = vst [vmem:[#allocation4] sm:$0xff] %v2020_v17  ;;  %444 = vst [vmem:[#allocation4 + $0x8] sm:$0xff] %v2020_v17 }
  0x41   : > { %445 = vst [vmem:[#allocation4 + $0x10] sm:$0xff] %v2020_v17  ;;  %446 = vst [vmem:[#allocation4 + $0x18] sm:$0xff] %v2020_v17 }
  0x42   : > { %447 = vst [vmem:[#allocation4 + $0x20] sm:$0xff] %v2020_v17  ;;  %448 = vst [vmem:[#allocation4 + $0x28] sm:$0xff] %v2020_v17 }
  0x43   : > { %449 = vst [vmem:[#allocation4 + $0x30] sm:$0xff] %v2020_v17  ;;  %450 = vst [vmem:[#allocation4 + $0x38] sm:$0xff] %v2020_v17 }
  0x44   : > { %451 = vst [vmem:[#allocation4 + $0x40] sm:$0xff] %v2020_v17  ;;  %452 = vst [vmem:[#allocation4 + $0x48] sm:$0xff] %v2020_v17 }
  0x45   : > { %453 = vst [vmem:[#allocation4 + $0x50] sm:$0xff] %v2020_v17  ;;  %454 = vst [vmem:[#allocation4 + $0x58] sm:$0xff] %v2020_v17 }
  0x46   : > { %455 = vst [vmem:[#allocation4 + $0x60] sm:$0xff] %v2020_v17  ;;  %456 = vst [vmem:[#allocation4 + $0x68] sm:$0xff] %v2020_v17 }
  0x47   : > { %457 = vst [vmem:[#allocation4 + $0x70] sm:$0xff] %v2020_v17  ;;  %458 = vst [vmem:[#allocation4 + $0x78] sm:$0xff] %v2020_v17 }
  0x48 PF: > { %v467_v18 = vld [vmem:[%s2143_s9 + $0x40] sm:$0xff]  ;;  %v2021_v20 = vmov 0   ;;  %v468_v21 = vld [vmem:[%s2143_s9 + $0x48] sm:$0xff]  ;;  %v462_v23 = vld [vmem:[%s2143_s9 + $0x18] sm:$0xff]  ;;  %p1726_p0 = scmp.ne.s32.totalorder %s2001_s20, 1 }
  0x49   : > { %v459_v19 = vld [vmem:[%s2143_s9] sm:$0xff]  ;;  %1856 = vset.pattern.permute.xlu1 %v2021_v20  ;;  %1855 = vset.pattern.permute.xlu0 %v2021_v20  ;;  %v460_v22 = vld [vmem:[%s2143_s9 + $0x8] sm:$0xff]  ;;  %v461_v24 = vld [vmem:[%s2143_s9 + $0x10] sm:$0xff] }
  0x4a   : > { %518 = vperm.xlu1 %1856, %v467_v18   ;;  %478 = vperm.xlu0 %1855, %v459_v19   ;;  %v470_v25 = vld [vmem:[%s2143_s9 + $0x58] sm:$0xff]  ;;  %v469_v26 = vld [vmem:[%s2143_s9 + $0x50] sm:$0xff]  ;;  %v464_v27 = vld [vmem:[%s2143_s9 + $0x28] sm:$0xff] }
  0x4b   : > { %v463_v28 = vld [vmem:[%s2143_s9 + $0x20] sm:$0xff]  ;;  %v472_v29 = vld [vmem:[%s2143_s9 + $0x68] sm:$0xff]  ;;  %v466_v31 = vld [vmem:[%s2143_s9 + $0x38] sm:$0xff] }
  0x4c   : > { %v471_v30 = vld [vmem:[%s2143_s9 + $0x60] sm:$0xff]  ;;  %v465_v32 = vld [vmem:[%s2143_s9 + $0x30] sm:$0xff]  ;;  %v474_v33 = vld [vmem:[%s2143_s9 + $0x78] sm:$0xff] }
  0x4d   : > { %v473_v34 = vld [vmem:[%s2143_s9 + $0x70] sm:$0xff]  ;;  %v578_v35 = vld [vmem:[%s2159_s7] sm:$0xf]  ;;  %v579_v37 = vld [vmem:[%s2159_s7 + $0x4] sm:$0xf] }
  0x4e   : > { %523 = vperm.xlu1 %1856, %v468_v21   ;;  %483 = vperm.xlu0 %1855, %v460_v22   ;;  %v586_v36 = vld [vmem:[%s2159_s7 + $0x20] sm:$0xf]  ;;  %vm594_vm1 = vcmp.gt.bf16.partialorder %v578_v35, 0  ;;  %v587_v38 = vld [vmem:[%s2159_s7 + $0x24] sm:$0xf]  ;;  %vm595_vm3 = vcmp.gt.bf16.partialorder %v579_v37, 0 }
  0x4f   : > { %vm602_vm2 = vcmp.gt.bf16.partialorder %v586_v36, 0  ;;  %v658_v39 = vsel %vm594_vm1, 65537, %v2021_v20  ;;  %v580_v40 = vld [vmem:[%s2159_s7 + $0x8] sm:$0xf]  ;;  %vm603_vm4 = vcmp.gt.bf16.partialorder %v587_v38, 0  ;;  %v659_v42 = vsel %vm595_vm3, 65537, %v2021_v20 }
  0x50   : > { %v666_v41 = vsel %vm602_vm2, 65537, %v2021_v20  ;;  %v581_v43 = vld [vmem:[%s2159_s7 + $0xc] sm:$0xf]  ;;  %v588_v44 = vld [vmem:[%s2159_s7 + $0x28] sm:$0xf]  ;;  %v674_v45 = vunpack.c.l.b16 %v658_v39  ;;  %vm596_vm5 = vcmp.gt.bf16.partialorder %v580_v40, 0  ;;  %v675_v49 = vunpack.c.l.b16 %v659_v42 }
  0x51   : > { %v667_v46 = vsel %vm603_vm4, 65537, %v2021_v20  ;;  %v2228_v47 = vld [vmem:[%s389_s12] ss:$0 sm:$0xff]  ;;  %v682_v48 = vunpack.c.l.b16 %v666_v41  ;;  %vm597_vm6 = vcmp.gt.bf16.partialorder %v581_v43, 0  ;;  %vm604_vm7 = vcmp.gt.bf16.partialorder %v588_v44, 0 }
  0x52   : > { %493 = vperm.xlu1 %1856, %v462_v23   ;;  %488 = vperm.xlu0 %1855, %v461_v24   ;;  %v660_v50 = vsel %vm596_vm5, 65537, %v2021_v20  ;;  %v589_v51 = vld [vmem:[%s2159_s7 + $0x2c] sm:$0xf]  ;;  %vm2232_vm8 = vcmp.ne.s32.totalorder %v674_v45, 0  ;;  %v683_v55 = vunpack.c.l.b16 %v667_v46  ;;  %v582_v56 = vld [vmem:[%s2159_s7 + $0x10] sm:$0xf] }
  0x53   : > { %v661_v59 = vsel %vm597_vm6, 65537, %v2021_v20  ;;  %v668_v60 = vsel %vm604_vm7, 65537, %v2021_v20  ;;  %vm2241_vm9 = vcmp.ne.s32.totalorder %v682_v48, 0  ;;  %vm2245_vm10 = vcmp.ne.s32.totalorder %v675_v49, 0  ;;  %v583_v0 = vld [vmem:[%s2159_s7 + $0x14] sm:$0xf] }
  0x54   : > { %v676_v63 = vunpack.c.l.b16 %v660_v50  ;;  %vm605_vm11 = vcmp.gt.bf16.partialorder %v589_v51, 0  ;;  %vm598_vm13 = vcmp.gt.bf16.partialorder %v582_v56, 0  ;;  %vm2250_vm15 = vcmp.ne.s32.totalorder %v683_v55, 0  ;;  %v590_v15 = vld [vmem:[%s2159_s7 + $0x30] sm:$0xf]  ;;  %v1857_v56 = vld [vmem:[%s2157_s17] sm:$0xff]  }
  0x55   : > { %v677_v6 = vunpack.c.l.b16 %v661_v59  ;;  %v684_v7 = vunpack.c.l.b16 %v668_v60  ;;  %v669_v11 = vsel %vm605_vm11, 65537, %v2021_v20  ;;  %v662_v14 = vsel %vm598_vm13, 65537, %v2021_v20  ;;  %v585_v45 = vld [vmem:[%s2159_s7 + $0x1c] sm:$0xf]  ;;  %v592_v50 = vld [vmem:[%s2159_s7 + $0x38] sm:$0xf]  ;;  %1747 = vmatprep.subr.bf16.mxu0 %v1857_v56  ;;  %1779 = vmatprep.subr.bf16.mxu1 %v1857_v56 }
  0x56   : > { %533 = vperm.xlu1 %1856, %v470_v25   ;;  %528 = vperm.xlu0 %1855, %v469_v26   ;;  %vm2261_vm0 = vcmp.ne.s32.totalorder %v676_v63, 0  ;;  %vm599_vm1 = vcmp.gt.bf16.partialorder %v583_v0, 0  ;;  %v685_v24 = vunpack.c.l.b16 %v669_v11  ;;  %vm606_vm6 = vcmp.gt.bf16.partialorder %v590_v15, 0 }
  0x57   : > { %vm2269_vm4 = vcmp.ne.s32.totalorder %v677_v6, 0  ;;  %vm2273_vm5 = vcmp.ne.s32.totalorder %v684_v7, 0  ;;  %v670_v44 = vsel %vm606_vm6, 65537, %v2021_v20  ;;  %1748 = vmatpush3.bf16.msra.mxu0 %v1857_v56  ;;  %1787 = vmatpush3.bf16.msra.mxu1 %v1857_v56  ;;  %v1859_v7 = vld [vmem:[%s2157_s17 + $0x10] sm:$0xff]  }
  0x5a   : > { %503 = vperm.xlu1 %1856, %v464_v27   ;;  %498 = vperm.xlu0 %1855, %v463_v28   ;;  %v663_v28 = vsel %vm599_vm1, 65537, %v2021_v20  ;;  %vm608_vm1 = vcmp.gt.bf16.partialorder %v592_v50, 0 }
  0x5b   : > { %v679_v40 = vunpack.c.l.b16 %v663_v28 }
  0x5e   : > { %543 = vperm.xlu1 %1856, %v472_v29   ;;  %538 = vperm.xlu0 %1855, %v471_v30   ;;  %v591_v29 = vld [vmem:[%s2159_s7 + $0x34] sm:$0xf] }
  0x62   : > { %513 = vperm.xlu1 %1856, %v466_v31   ;;  %508 = vperm.xlu0 %1855, %v465_v32   ;;  %v678_v32 = vunpack.c.l.b16 %v662_v14 }
  0x64   : > { %vm2311_vm11 = vcmp.ne.s32.totalorder %v678_v32, 0 }
  0x66   : > { %553 = vperm.xlu1 %1856, %v474_v33   ;;  %548 = vperm.xlu0 %1855, %v473_v34   ;;  %v584_v33 = vld [vmem:[%s2159_s7 + $0x18] sm:$0xf] }
  0xc9   : > { %v519_v52 = vpop.permute.xlu1 %518  ;;  %v479_v53 = vpop.permute.xlu0 %478 }
  0xca   : > { %v570_v57 = vadd.f32 %v2228_v47, %v519_v52  ;;  %v562_v58 = vadd.f32 %v2228_v47, %v479_v53 }
  0xcc   : > { %v634_v1 = vmul.f32 0.2, %v570_v57  ;;  %v626_v2 = vmul.f32 0.2, %v562_v58  ;;  %vm610_vm12 = vcmp.gt.f32.partialorder %v562_v58, 0.0  ;;  %vm618_vm14 = vcmp.gt.f32.partialorder %v570_v57, 0.0 }
  0xcd   : > { %v524_v3 = vpop.permute.xlu1 %523  ;;  %v484_v4 = vpop.permute.xlu0 %483 }
  0xce   : > { %v571_v8 = vadd.f32 %v2228_v47, %v524_v3  ;;  %v563_v9 = vadd.f32 %v2228_v47, %v484_v4  ;;  %v642_v10 = vsel %vm610_vm12, %v562_v58, %v626_v2  ;;  %v650_v18 = vsel %vm618_vm14, %v570_v57, %v634_v1  ;;  %v593_v1 = vld [vmem:[%s2159_s7 + $0x3c] sm:$0xf] }
  0xcf   : > { %v2259_v12 = vsel %vm2232_vm8, %v642_v10, -inf  ;;  %v2284_v30 = vsel %vm2241_vm9, %v650_v18, -inf  ;;  %vm2294_vm9 = vcmp.ne.s32.totalorder %v685_v24, 0  ;;  %vm600_vm12 = vcmp.gt.bf16.partialorder %v584_v33, 0  ;;  %v2455_v24 = vld [vmem:[#allocation2 + $0x58] sm:$0xff] }
  0xd0   : > { %v635_v16 = vmul.f32 0.2, %v571_v8  ;;  %v627_v17 = vmul.f32 0.2, %v563_v9  ;;  %738 = vmax.xlane.f32.xlu0 %v2259_v12  ;;  %vm611_vm2 = vcmp.gt.f32.partialorder %v563_v9, 0.0  ;;  %vm619_vm3 = vcmp.gt.f32.partialorder %v571_v8, 0.0 }
  0xd1   : > { %v494_v19 = vpop.permute.xlu1 %493  ;;  %v489_v21 = vpop.permute.xlu0 %488  ;;  %v686_v57 = vunpack.c.l.b16 %v670_v44  ;;  %v664_v0 = vsel %vm600_vm12, 65537, %v2021_v20 }
  0xd2   : > { %v565_v25 = vadd.f32 %v2228_v47, %v494_v19  ;;  %v564_v26 = vadd.f32 %v2228_v47, %v489_v21  ;;  %v643_v27 = vsel %vm611_vm2, %v563_v9, %v627_v17  ;;  %v651_v36 = vsel %vm619_vm3, %v571_v8, %v635_v16 }
  0xd3   : > { %v2288_v31 = vsel %vm2245_vm10, %v643_v27, -inf  ;;  %vm607_vm10 = vcmp.gt.bf16.partialorder %v591_v29, 0  ;;  %v2305_v46 = vsel %vm2250_vm15, %v651_v36, -inf  ;;  %vm2319_vm15 = vcmp.ne.s32.totalorder %v679_v40, 0 }
  0xd4   : > { %v629_v34 = vmul.f32 0.2, %v565_v25  ;;  %v628_v35 = vmul.f32 0.2, %v564_v26  ;;  %754 = vmax.xlane.f32.xlu0 %v2284_v30  ;;  %740 = vmax.xlane.f32.xlu1 %v2288_v31  ;;  %vm612_vm7 = vcmp.gt.f32.partialorder %v564_v26, 0.0  ;;  %vm613_vm8 = vcmp.gt.f32.partialorder %v565_v25, 0.0 }
  0xd5   : > { %v534_v37 = vpop.permute.xlu1 %533  ;;  %v529_v38 = vpop.permute.xlu0 %528  ;;  %v671_v58 = vsel %vm607_vm10, 65537, %v2021_v20  ;;  %v680_v14 = vunpack.c.l.b16 %v664_v0  ;;  %v672_v17 = vsel %vm608_vm1, 65537, %v2021_v20  ;;  %vm1042_vm1 = vcmask 7168   ;;  %v1858_v0 = vld [vmem:[%s2157_s17 + $0x8] sm:$0xff]  }
  0xd6   : > { %v573_v41 = vadd.f32 %v2228_v47, %v534_v37  ;;  %v572_v42 = vadd.f32 %v2228_v47, %v529_v38  ;;  %v644_v43 = vsel %vm612_vm7, %v564_v26, %v628_v35  ;;  %v645_v53 = vsel %vm613_vm8, %v565_v25, %v629_v34  ;;  %1749 = vmatprep.subr.bf16.mxu0 %v1858_v0 }
  0xd7   : > { %v2309_v48 = vsel %vm2261_vm0, %v644_v43, -inf  ;;  %vm601_vm0 = vcmp.gt.bf16.partialorder %v585_v45, 0  ;;  %v2329_v62 = vsel %vm2269_vm4, %v645_v53, -inf  ;;  %vm2341_vm4 = vcmp.ne.s32.totalorder %v686_v57, 0  ;;  %v2406_v57 = vld [vmem:[#allocation2] sm:$0xff]  ;;  %1780 = vmatprep.subr.bf16.mxu1 %v1858_v0  ;;  %1750 = vmatpush3.bf16.msra.mxu0 %v1858_v0 }
  0xd8   : > { %v637_v51 = vmul.f32 0.2, %v573_v41  ;;  %v636_v52 = vmul.f32 0.2, %v572_v42  ;;  %756 = vmax.xlane.f32.xlu0 %v2305_v46  ;;  %742 = vmax.xlane.f32.xlu1 %v2309_v48  ;;  %vm620_vm13 = vcmp.gt.f32.partialorder %v572_v42, 0.0  ;;  %vm621_vm14 = vcmp.gt.f32.partialorder %v573_v41, 0.0 }
  0xd9   : > { %v504_v54 = vpop.permute.xlu1 %503  ;;  %v499_v55 = vpop.permute.xlu0 %498  ;;  %v687_v8 = vunpack.c.l.b16 %v671_v58  ;;  %v665_v9 = vsel %vm601_vm0, 65537, %v2021_v20  ;;  %v688_v34 = vunpack.c.l.b16 %v672_v17  ;;  %1788 = vmatpush3.bf16.msra.mxu1 %v1858_v0  ;;  %1751 = vmatprep.subr.bf16.mxu0 %v1859_v7  ;;  %v1860_v17 = vld [vmem:[%s2157_s17 + $0x18] sm:$0xff]   ;;  %v2499_v0 = vld [vmem:[#allocation2 + $0x70] sm:$0xff] }
  0xda   : > { %v567_v59 = vadd.f32 %v2228_v47, %v504_v54  ;;  %v566_v60 = vadd.f32 %v2228_v47, %v499_v55  ;;  %v652_v61 = vsel %vm620_vm13, %v572_v42, %v636_v52  ;;  %v653_v4 = vsel %vm621_vm14, %v573_v41, %v637_v51  ;;  %1781 = vmatprep.subr.bf16.mxu1 %v1859_v7 }
  0xdb   : > { %v2333_v63 = vsel %vm2273_vm5, %v652_v61, -inf  ;;  %v2351_v15 = vsel %vm2294_vm9, %v653_v4, -inf  ;;  %vm609_vm5 = vcmp.gt.bf16.partialorder %v593_v1, 0  ;;  %vm2362_vm8 = vcmp.ne.s32.totalorder %v687_v8, 0  ;;  %v2413_v61 = vld [vmem:[#allocation2 + $0x40] sm:$0xff]  ;;  %1752 = vmatpush3.bf16.msra.mxu0 %v1859_v7 }
  0xdc   : > { %v631_v2 = vmul.f32 0.2, %v567_v59  ;;  %v630_v3 = vmul.f32 0.2, %v566_v60  ;;  %744 = vmax.xlane.f32.xlu0 %v2329_v62  ;;  %758 = vmax.xlane.f32.xlu1 %v2333_v63  ;;  %vm614_vm2 = vcmp.gt.f32.partialorder %v566_v60, 0.0  ;;  %vm615_vm3 = vcmp.gt.f32.partialorder %v567_v59, 0.0 }
  0xdd   : > { %v544_v5 = vpop.permute.xlu1 %543  ;;  %v539_v6 = vpop.permute.xlu0 %538  ;;  %v681_v25 = vunpack.c.l.b16 %v665_v9  ;;  %vm2368_vm9 = vcmp.ne.s32.totalorder %v680_v14, 0  ;;  %v673_v35 = vsel %vm609_vm5, 65537, %v2021_v20  ;;  %vm704_vm13 = vcmp.ne.s32.totalorder %v688_v34, 0  ;;  %v2440_v14 = vld [vmem:[#allocation2 + $0x18] sm:$0xff]  ;;  %1789 = vmatpush3.bf16.msra.mxu1 %v1859_v7  ;;  %1753 = vmatprep.subr.bf16.mxu0 %v1860_v17 }
  0xde   : > { %v575_v10 = vadd.f32 %v2228_v47, %v544_v5  ;;  %v574_v11 = vadd.f32 %v2228_v47, %v539_v6  ;;  %v646_v13 = vsel %vm614_vm2, %v566_v60, %v630_v3  ;;  %v647_v21 = vsel %vm615_vm3, %v567_v59, %v631_v2  ;;  %v2411_v60 = vld [vmem:[#allocation2 + $0x8] sm:$0xff]  ;;  %v2423_v5 = vld [vmem:[#allocation2 + $0x10] sm:$0xff]  ;;  %1782 = vmatprep.subr.bf16.mxu1 %v1860_v17 }
  0xdf   : > { %v2355_v16 = vsel %vm2311_vm11, %v646_v13, -inf  ;;  %v2374_v32 = vsel %vm2319_vm15, %v647_v21, -inf  ;;  %vm697_vm12 = vcmp.ne.s32.totalorder %v681_v25, 0  ;;  %v689_v45 = vunpack.c.l.b16 %v673_v35  ;;  %v2425_v6 = vld [vmem:[#allocation2 + $0x48] sm:$0xff]  ;;  %v2438_v13 = vld [vmem:[#allocation2 + $0x50] sm:$0xff]  ;;  %1754 = vmatpush3.bf16.msra.mxu0 %v1860_v17  ;;  %v1861_v25 = vld [vmem:[%s2157_s17 + $0x20] sm:$0xff]  }
  0xe0   : > { %v639_v18 = vmul.f32 0.2, %v575_v10  ;;  %v638_v19 = vmul.f32 0.2, %v574_v11  ;;  %760 = vmax.xlane.f32.xlu0 %v2351_v15  ;;  %746 = vmax.xlane.f32.xlu1 %v2355_v16  ;;  %vm622_vm6 = vcmp.gt.f32.partialorder %v574_v11, 0.0  ;;  %vm623_vm7 = vcmp.gt.f32.partialorder %v575_v10, 0.0 }
  0xe1   : > { %v514_v22 = vpop.permute.xlu1 %513  ;;  %v509_v23 = vpop.permute.xlu0 %508  ;;  %vm705_vm0 = vcmp.ne.s32.totalorder %v689_v45, 0  ;;  %1790 = vmatpush3.bf16.msra.mxu1 %v1860_v17  ;;  %1755 = vmatprep.subr.bf16.mxu0 %v1861_v25  ;;  %v2468_v35 = vld [vmem:[#allocation2 + $0x60] sm:$0xff] }
  0xe2   : > { %v569_v26 = vadd.f32 %v2228_v47, %v514_v22  ;;  %v568_v27 = vadd.f32 %v2228_v47, %v509_v23  ;;  %v654_v28 = vsel %vm622_vm6, %v574_v11, %v638_v19  ;;  %v655_v38 = vsel %vm623_vm7, %v575_v10, %v639_v18  ;;  %v726_v23 = vld [vmem:[#allocation2 + $0x20] sm:$0xff]  ;;  %1783 = vmatprep.subr.bf16.mxu1 %v1861_v25 }
  0xe3   : > { %v2378_v33 = vsel %vm2341_vm4, %v654_v28, -inf  ;;  %v2388_v20 = vsel %vm2362_vm8, %v655_v38, -inf  ;;  %1756 = vmatpush3.bf16.msra.mxu0 %v1861_v25  ;;  %v1862_v38 = vld [vmem:[%s2157_s17 + $0x28] sm:$0xff]  }
  0xe4   : > { %v633_v36 = vmul.f32 0.2, %v569_v26  ;;  %v632_v37 = vmul.f32 0.2, %v568_v27  ;;  %748 = vmax.xlane.f32.xlu0 %v2374_v32  ;;  %762 = vmax.xlane.f32.xlu1 %v2378_v33  ;;  %vm616_vm10 = vcmp.gt.f32.partialorder %v568_v27, 0.0  ;;  %vm617_vm11 = vcmp.gt.f32.partialorder %v569_v26, 0.0 }
  0xe5   : > { %v554_v39 = vpop.permute.xlu1 %553  ;;  %v549_v40 = vpop.permute.xlu0 %548  ;;  %1791 = vmatpush3.bf16.msra.mxu1 %v1861_v25  ;;  %1757 = vmatprep.subr.bf16.mxu0 %v1862_v38 }
  0xe6   : > { %v577_v41 = vadd.f32 %v2228_v47, %v554_v39  ;;  %v576_v42 = vadd.f32 %v2228_v47, %v549_v40  ;;  %v648_v43 = vsel %vm616_vm10, %v568_v27, %v632_v37  ;;  %v649_v47 = vsel %vm617_vm11, %v569_v26, %v633_v36  ;;  %v2470_v36 = vld [vmem:[#allocation2 + $0x28] sm:$0xff]  ;;  %1784 = vmatprep.subr.bf16.mxu1 %v1862_v38 }
  0xe7   : > { %v2392_v44 = vsel %vm2368_vm9, %v648_v43, -inf  ;;  %v2396_v52 = vsel %vm697_vm12, %v649_v47, -inf  ;;  %1758 = vmatpush3.bf16.msra.mxu0 %v1862_v38 }
  0xe8   : > { %v641_v49 = vmul.f32 0.2, %v577_v41  ;;  %v640_v50 = vmul.f32 0.2, %v576_v42  ;;  %764 = vmax.xlane.f32.xlu0 %v2388_v20  ;;  %750 = vmax.xlane.f32.xlu1 %v2392_v44  ;;  %vm624_vm14 = vcmp.gt.f32.partialorder %v576_v42, 0.0  ;;  %vm625_vm15 = vcmp.gt.f32.partialorder %v577_v41, 0.0 }
  0xe9   : > { %1792 = vmatpush3.bf16.msra.mxu1 %v1862_v38 }
  0xea   : > { %v656_v51 = vsel %vm624_vm14, %v576_v42, %v640_v50  ;;  %v657_v54 = vsel %vm625_vm15, %v577_v41, %v641_v49  ;;  %v728_v49 = vld [vmem:[#allocation2 + $0x30] sm:$0xff]  ;;  %v2485_v50 = vld [vmem:[#allocation2 + $0x68] sm:$0xff] }
  0xeb   : > { %v2398_v53 = vsel %vm704_vm13, %v656_v51, -inf  ;;  %v2402_v55 = vsel %vm705_vm0, %v657_v54, -inf  ;;  %v1863_v51 = vld [vmem:[%s2157_s17 + $0x30] sm:$0xff]  }
  0xec   : > { %752 = vmax.xlane.f32.xlu0 %v2396_v52  ;;  %766 = vmax.xlane.f32.xlu1 %v2398_v53 }
  0xed   : > { %1759 = vmatprep.subr.bf16.mxu0 %v1863_v51  ;;  %1785 = vmatprep.subr.bf16.mxu1 %v1863_v51 }
  0xee   : > { %1760 = vmatpush3.bf16.msra.mxu0 %v1863_v51  ;;  %1793 = vmatpush3.bf16.msra.mxu1 %v1863_v51 }
  0xf0   : > { %768 = vmax.xlane.f32.xlu0 %v2402_v55 }
 0x15d   : > { %v739_v58 = vpop.xlane.xlu0 %738 }
 0x15e   : > { %v2409_v59 = vmax.f32 %v2406_v57, %v739_v58 }
 0x160   : > { %1372 = vst.msk [vmem:[#allocation2] sm:$0xff] %vm1042_vm1, %v2409_v59  ;;  %836 = vperm.xlu1 %1856, %v2409_v59   ;;  %v786_v37 = vsub.f32 %v2406_v57, %v2409_v59 }
 0x161   : > { %v741_v1 = vpop.xlane.xlu1 %740  ;;  %v755_v2 = vpop.xlane.xlu0 %754 }
 0x162   : > { %v771_v3 = vmax.f32 %v2411_v60, %v741_v1  ;;  %v2421_v4 = vmax.f32 %v2413_v61, %v755_v2  ;;  %v802_v47 = vmul.f32 1.442695, %v786_v37  ;;  %v729_v1 = vld [vmem:[#allocation2 + $0x38] sm:$0xff] }
 0x164   : > { %1373 = vst.msk [vmem:[#allocation2 + $0x8] sm:$0xff] %vm1042_vm1, %v771_v3  ;;  %1380 = vst.msk [vmem:[#allocation2 + $0x40] sm:$0xff] %vm1042_vm1, %v2421_v4  ;;  %841 = vperm.xlu0 %1855, %v771_v3   ;;  %876 = vperm.xlu1 %1856, %v2421_v4   ;;  %v787_v26 = vsub.f32 %v2411_v60, %v771_v3  ;;  %v794_v2 = vsub.f32 %v2413_v61, %v2421_v4 }
 0x165   : > { %v743_v8 = vpop.xlane.xlu1 %742  ;;  %v757_v9 = vpop.xlane.xlu0 %756 }
 0x166   : > { %v2433_v10 = vmax.f32 %v2423_v5, %v743_v8  ;;  %v2436_v11 = vmax.f32 %v2425_v6, %v757_v9  ;;  %v804_v39 = vmul.f32 1.442695, %v787_v26 }
 0x168   : > { %1374 = vst.msk [vmem:[#allocation2 + $0x10] sm:$0xff] %vm1042_vm1, %v2433_v10  ;;  %1381 = vst.msk [vmem:[#allocation2 + $0x48] sm:$0xff] %vm1042_vm1, %v2436_v11  ;;  %846 = vperm.xlu0 %1855, %v2433_v10   ;;  %881 = vperm.xlu1 %1856, %v2436_v11   ;;  %1865 = vpow2.f32 %v804_v39  ;;  %v788_v54 = vsub.f32 %v2423_v5, %v2433_v10  ;;  %v1864_v5 = vld [vmem:[%s2157_s17 + $0x38] sm:$0xff]  }
 0x169   : > { %v759_v18 = vpop.xlane.xlu1 %758  ;;  %v745_v19 = vpop.xlane.xlu0 %744  ;;  %1867 = vpow2.f32 %v802_v47  ;;  %1761 = vmatprep.subr.bf16.mxu0 %v1864_v5  ;;  %1786 = vmatprep.subr.bf16.mxu1 %v1864_v5 }
 0x16a   : > { %v2450_v21 = vmax.f32 %v2438_v13, %v759_v18  ;;  %v2453_v22 = vmax.f32 %v2440_v14, %v745_v19  ;;  %v806_v7 = vmul.f32 1.442695, %v788_v54  ;;  %v2513_v18 = vld [vmem:[#allocation2 + $0x78] sm:$0xff]  ;;  %1762 = vmatpush3.bf16.msra.mxu0 %v1864_v5  ;;  %1794 = vmatpush3.bf16.msra.mxu1 %v1864_v5  ;;  %v818_v19 = vmul.f32 1.442695, %v794_v2 }
 0x16c   : > { %1382 = vst.msk [vmem:[#allocation2 + $0x50] sm:$0xff] %vm1042_vm1, %v2450_v21  ;;  %1375 = vst.msk [vmem:[#allocation2 + $0x18] sm:$0xff] %vm1042_vm1, %v2453_v22  ;;  %886 = vperm.xlu0 %1855, %v2450_v21   ;;  %851 = vperm.xlu1 %1856, %v2453_v22   ;;  %v789_v8 = vsub.f32 %v2440_v14, %v2453_v22 }
 0x16d   : > { %v747_v27 = vpop.xlane.xlu1 %746  ;;  %v761_v28 = vpop.xlane.xlu0 %760 }
 0x16e   : > { %v774_v29 = vmax.f32 %v726_v23, %v747_v27  ;;  %v2466_v34 = vmax.f32 %v2455_v24, %v761_v28  ;;  %v808_v22 = vmul.f32 1.442695, %v789_v8 }
 0x170   : > { %1376 = vst.msk [vmem:[#allocation2 + $0x20] sm:$0xff] %vm1042_vm1, %v774_v29  ;;  %1383 = vst.msk [vmem:[#allocation2 + $0x58] sm:$0xff] %vm1042_vm1, %v2466_v34  ;;  %856 = vperm.xlu0 %1855, %v774_v29   ;;  %891 = vperm.xlu1 %1856, %v2466_v34   ;;  %v790_v40 = vsub.f32 %v726_v23, %v774_v29  ;;  %v796_v23 = vsub.f32 %v2438_v13, %v2450_v21 }
 0x171   : > { %v763_v41 = vpop.xlane.xlu1 %762  ;;  %v749_v42 = vpop.xlane.xlu0 %748 }
 0x172   : > { %v2480_v43 = vmax.f32 %v2468_v35, %v763_v41  ;;  %v2483_v45 = vmax.f32 %v2470_v36, %v749_v42  ;;  %v810_v56 = vmul.f32 1.442695, %v790_v40  ;;  %v2528_v21 = vpop.eup %1865  ;;  %v822_v27 = vmul.f32 1.442695, %v796_v23 }
 0x173   : > { %v2538_v38 = vpop.eup %1867 }
 0x174   : > { %1384 = vst.msk [vmem:[#allocation2 + $0x60] sm:$0xff] %vm1042_vm1, %v2480_v43  ;;  %1377 = vst.msk [vmem:[#allocation2 + $0x28] sm:$0xff] %vm1042_vm1, %v2483_v45  ;;  %896 = vperm.xlu0 %1855, %v2480_v43   ;;  %861 = vperm.xlu1 %1856, %v2483_v45   ;;  %1869 = vpow2.f32 %v810_v56  ;;  %v791_v25 = vsub.f32 %v2470_v36, %v2483_v45  ;;  %v798_v28 = vsub.f32 %v2468_v35, %v2480_v43 }
 0x175   : > { %v751_v57 = vpop.xlane.xlu1 %750  ;;  %v765_v58 = vpop.xlane.xlu0 %764  ;;  %v795_v35 = vsub.f32 %v2425_v6, %v2436_v11 }
 0x176   : > { %v776_v59 = vmax.f32 %v728_v49, %v751_v57  ;;  %v2497_v60 = vmax.f32 %v2485_v50, %v765_v58  ;;  %v812_v36 = vmul.f32 1.442695, %v791_v25  ;;  %v826_v40 = vmul.f32 1.442695, %v798_v28 }
 0x177   : > { %v820_v45 = vmul.f32 1.442695, %v795_v35 }
 0x178   : > { %v792_v3 = vsub.f32 %v728_v49, %v776_v59  ;;  %1378 = vst.msk [vmem:[#allocation2 + $0x30] sm:$0xff] %vm1042_vm1, %v776_v59  ;;  %1385 = vst.msk [vmem:[#allocation2 + $0x68] sm:$0xff] %vm1042_vm1, %v2497_v60  ;;  %866 = vperm.xlu0 %1855, %v776_v59   ;;  %901 = vperm.xlu1 %1856, %v2497_v60   ;;  %v797_v49 = vsub.f32 %v2455_v24, %v2466_v34 }
 0x179   : > { %v767_v9 = vpop.xlane.xlu1 %766  ;;  %v753_v10 = vpop.xlane.xlu0 %752  ;;  %v799_v11 = vsub.f32 %v2485_v50, %v2497_v60 }
 0x17a   : > { %v814_v17 = vmul.f32 1.442695, %v792_v3  ;;  %v2511_v61 = vmax.f32 %v2499_v0, %v767_v9  ;;  %v777_v4 = vmax.f32 %v729_v1, %v753_v10  ;;  %v824_v6 = vmul.f32 1.442695, %v797_v49 }
 0x17b   : > { %v828_v24 = vmul.f32 1.442695, %v799_v11 }
 0x17c   : > { %1871 = vpow2.f32 %v814_v17  ;;  %v800_v14 = vsub.f32 %v2499_v0, %v2511_v61  ;;  %1386 = vst.msk [vmem:[#allocation2 + $0x70] sm:$0xff] %vm1042_vm1, %v2511_v61  ;;  %1379 = vst.msk [vmem:[#allocation2 + $0x38] sm:$0xff] %vm1042_vm1, %v777_v4  ;;  %906 = vperm.xlu0 %1855, %v2511_v61   ;;  %871 = vperm.xlu1 %1856, %v777_v4   ;;  %v793_v37 = vsub.f32 %v729_v1, %v777_v4 }
 0x17d   : > { %1873 = vpow2.f32 %v806_v7  ;;  %v769_v26 = vpop.xlane.xlu0 %768 }
 0x17e   : > { %v2526_v13 = vmax.f32 %v2513_v18, %v769_v26  ;;  %1875 = vpow2.f32 %v818_v19  ;;  %v2540_v39 = vpop.eup %1869  ;;  %v816_v41 = vmul.f32 1.442695, %v793_v37 }
 0x17f   : > { %1877 = vpow2.f32 %v808_v22 }
 0x180   : > { %v801_v29 = vsub.f32 %v2513_v18, %v2526_v13  ;;  %1387 = vst.msk [vmem:[#allocation2 + $0x78] sm:$0xff] %vm1042_vm1, %v2526_v13  ;;  %1082 = vperm.xlu0 %1855, %v2528_v21   ;;  %911 = vperm.xlu1 %1856, %v2526_v13   ;;  %1879 = vpow2.f32 %v822_v27 }
 0x181   : > { %1881 = vpow2.f32 %v812_v36 }
 0x182   : > { %1883 = vpow2.f32 %v826_v40 }
 0x183   : > { %1885 = vpow2.f32 %v816_v41 }
 0x184   : > { %1097 = vperm.xlu0 %1855, %v2540_v39   ;;  %1077 = vperm.xlu1 %1856, %v2538_v38   ;;  %1887 = vpow2.f32 %v820_v45 }
 0x185   : > { %1889 = vpow2.f32 %v824_v6 }
 0x186   : > { %v2546_v42 = vpop.eup %1871  ;;  %1891 = vpow2.f32 %v828_v24 }
 0x187   : > { %v2548_v43 = vpop.eup %1873 }
 0x188   : > { %1107 = vperm.xlu0 %1855, %v2546_v42   ;;  %1087 = vperm.xlu1 %1856, %v2548_v43   ;;  %v2554_v47 = vpop.eup %1875 }
 0x189   : > { %v2556_v51 = vpop.eup %1877 }
 0x18a   : > { %v2562_v54 = vpop.eup %1879 }
 0x18b   : > { %v2564_v56 = vpop.eup %1881 }
 0x18c   : > { %1117 = vperm.xlu0 %1855, %v2554_v47   ;;  %1092 = vperm.xlu1 %1856, %v2556_v51   ;;  %v2568_v34 = vpop.eup %1883 }
 0x18d   : > { %v2570_v57 = vpop.eup %1885 }
 0x18e   : > { %v2574_v50 = vpop.eup %1887 }
 0x18f   : > { %v2577_v58 = vpop.eup %1889 }
 0x190   : > { %1127 = vperm.xlu0 %1855, %v2562_v54   ;;  %1102 = vperm.xlu1 %1856, %v2564_v56   ;;  %v2580_v59 = vpop.eup %1891 }
 0x194   : > { %1137 = vperm.xlu0 %1855, %v2568_v34   ;;  %1112 = vperm.xlu1 %1856, %v2570_v57  }
 0x198   : > { %1122 = vperm.xlu1 %1856, %v2574_v50  }
 0x19c   : > { %1132 = vperm.xlu1 %1856, %v2577_v58  }
 0x1a0   : > { %1142 = vperm.xlu1 %1856, %v2580_v59  }
 0x1df   : > { %v837_v60 = vpop.permute.xlu1 %836 }
 0x1e0   : > { %v914_v1 = vsub.f32 %v2259_v12, %v837_v60 }
 0x1e2   : > { %v930_v2 = vmul.f32 1.442695, %v914_v1 }
 0x1e3   : > { %v877_v3 = vpop.permute.xlu1 %876  ;;  %v842_v5 = vpop.permute.xlu0 %841 }
 0x1e4   : > { %1893 = vpow2.f32 %v930_v2  ;;  %v922_v7 = vsub.f32 %v2284_v30, %v877_v3  ;;  %v915_v8 = vsub.f32 %v2288_v31, %v842_v5 }
 0x1e6   : > { %v932_v9 = vmul.f32 1.442695, %v915_v8  ;;  %v946_v10 = vmul.f32 1.442695, %v922_v7 }
 0x1e7   : > { %v882_v17 = vpop.permute.xlu1 %881  ;;  %v847_v4 = vpop.permute.xlu0 %846 }
 0x1e8   : > { %v923_v19 = vsub.f32 %v2305_v46, %v882_v17  ;;  %v916_v23 = vsub.f32 %v2309_v48, %v847_v4  ;;  %1895 = vpow2.f32 %v932_v9 }
 0x1e9   : > { %1897 = vpow2.f32 %v946_v10 }
 0x1ea   : > { %v948_v22 = vmul.f32 1.442695, %v923_v19  ;;  %v934_v25 = vmul.f32 1.442695, %v916_v23 }
 0x1eb   : > { %v852_v12 = vpop.permute.xlu1 %851  ;;  %v887_v26 = vpop.permute.xlu0 %886 }
 0x1ec   : > { %1899 = vpow2.f32 %v948_v22  ;;  %v917_v27 = vsub.f32 %v2329_v62, %v852_v12  ;;  %v924_v30 = vsub.f32 %v2333_v63, %v887_v26 }
 0x1ed   : > { %1901 = vpow2.f32 %v934_v25 }
 0x1ee   : > { %v1894_v31 = vpop.eup %1893  ;;  %v936_v28 = vmul.f32 1.442695, %v917_v27  ;;  %v950_v36 = vmul.f32 1.442695, %v924_v30 }
 0x1ef   : > { %994 = vadd.xlane.f32.xlu0 %v1894_v31  ;;  %v892_v37 = vpop.permute.xlu1 %891  ;;  %v857_v46 = vpop.permute.xlu0 %856 }
 0x1f0   : > { %1903 = vpow2.f32 %v936_v28  ;;  %v925_v48 = vsub.f32 %v2351_v15, %v892_v37  ;;  %v918_v40 = vsub.f32 %v2355_v16, %v857_v46 }
 0x1f1   : > { %1905 = vpow2.f32 %v950_v36 }
 0x1f2   : > { %v952_v35 = vmul.f32 1.442695, %v925_v48  ;;  %v938_v41 = vmul.f32 1.442695, %v918_v40  ;;  %v1896_v45 = vpop.eup %1895 }
 0x1f3   : > { %v862_v49 = vpop.permute.xlu1 %861  ;;  %v897_v62 = vpop.permute.xlu0 %896  ;;  %996 = vadd.xlane.f32.xlu1 %v1896_v45  ;;  %v1171_v11 = vpack.c.bf16 %v1896_v45, %v1894_v31  ;;  %v832_v45 = vmul.f32 1.442695, %v801_v29 }
 0x1f4   : > { %1907 = vpow2.f32 %v952_v35  ;;  %v919_v63 = vsub.f32 %v2374_v32, %v862_v49  ;;  %v926_v6 = vsub.f32 %v2378_v33, %v897_v62  ;;  %v1898_v24 = vpop.eup %1897  ;;  %v830_v49 = vmul.f32 1.442695, %v800_v14 }
 0x1f5   : > { %1909 = vpow2.f32 %v938_v41  ;;  %1763 = vmatprep.mubr.bf16.mxu0 %v1171_v11 }
 0x1f6   : > { %v1900_v60 = vpop.eup %1899  ;;  %v940_v1 = vmul.f32 1.442695, %v919_v63  ;;  %v954_v16 = vmul.f32 1.442695, %v926_v6 }
 0x1f7   : > { %v1902_v15 = vpop.eup %1901  ;;  %v902_v2 = vpop.permute.xlu1 %901  ;;  %v1175_v5 = vpack.c.bf16 %v1900_v60, %v1898_v24 }
 0x1f8   : > { %v867_v3 = vpop.permute.xlu0 %866  ;;  %1911 = vpow2.f32 %v940_v1  ;;  %v927_v7 = vsub.f32 %v2388_v20, %v902_v2  ;;  %998 = vadd.xlane.f32.xlu0 %v1902_v15  ;;  %v962_v2 = vld [vmem:[#allocation3] sm:$0xff] }
 0x1f9   : > { %v920_v32 = vsub.f32 %v2392_v44, %v867_v3  ;;  %1771 = vmatprep.mubr.bf16.mxu1 %v1175_v5  ;;  %1913 = vpow2.f32 %v954_v16  ;;  %v978_v3 = vmul.f32 %v2538_v38, %v962_v2 }
 0x1fa   : > { %v1904_v8 = vpop.eup %1903  ;;  %v956_v33 = vmul.f32 1.442695, %v927_v7 }
 0x1fb   : > { %v942_v9 = vmul.f32 1.442695, %v920_v32  ;;  %v872_v10 = vpop.permute.xlu1 %871  ;;  %v1172_v4 = vpack.c.bf16 %v1904_v8, %v1902_v15  ;;  %v1906_v22 = vpop.eup %1905 }
 0x1fc   : > { %v907_v17 = vpop.permute.xlu0 %906  ;;  %1915 = vpow2.f32 %v956_v33  ;;  %v921_v19 = vsub.f32 %v2396_v52, %v872_v10  ;;  %1000 = vadd.xlane.f32.xlu0 %v1904_v8  ;;  %v963_v8 = vld [vmem:[#allocation3 + $0x8] sm:$0xff]  ;;  %v964_v10 = vld [vmem:[#allocation3 + $0x10] sm:$0xff] }
 0x1fd   : > { %v928_v23 = vsub.f32 %v2398_v53, %v907_v17  ;;  %1917 = vpow2.f32 %v942_v9  ;;  %1764 = vmatmul.mubr.bf16.vlgmr.msra.gmra.mrb[0].mxu0 %v1172_v4  ;;  %v979_v33 = vmul.f32 %v2528_v21, %v963_v8  ;;  %v980_v4 = vmul.f32 %v2548_v43, %v964_v10 }
 0x1fe   : > { %v1908_v20 = vpop.eup %1907  ;;  %v944_v25 = vmul.f32 1.442695, %v921_v19 }
 0x1ff   : > { %v1910_v44 = vpop.eup %1909  ;;  %v958_v12 = vmul.f32 1.442695, %v928_v23  ;;  %v912_v26 = vpop.permute.xlu1 %911  ;;  %v1176_v27 = vpack.c.bf16 %v1908_v20, %v1906_v22  ;;  %v965_v23 = vld [vmem:[#allocation3 + $0x18] sm:$0xff] }
 0x200   : > { %1919 = vpow2.f32 %v944_v25  ;;  %v929_v30 = vsub.f32 %v2402_v55, %v912_v26  ;;  %1002 = vadd.xlane.f32.xlu1 %v1910_v44  ;;  %v2615_v18 = vpop.permute.xlu0 %1082  ;;  %v981_v38 = vmul.f32 %v2556_v51, %v965_v23  ;;  %v966_v25 = vld [vmem:[#allocation3 + $0x20] sm:$0xff] }
 0x201   : > { %1772 = vmatmul.mubr.bf16.vlgmr.msra.gmra.mrb[0].mxu1 %v1176_v27  ;;  %1921 = vpow2.f32 %v958_v12  ;;  %v982_v21 = vmul.f32 %v2540_v39, %v966_v25  ;;  %v967_v12 = vld [vmem:[#allocation3 + $0x28] sm:$0xff] }
 0x202   : > { %v1912_v31 = vpop.eup %1911  ;;  %v960_v28 = vmul.f32 1.442695, %v929_v30  ;;  %v983_v30 = vmul.f32 %v2564_v56, %v967_v12  ;;  %v1062_v12 = vld [vmem:[#allocation4 + $0x18] sm:$0xff] }
 0x203   : > { %1004 = vadd.xlane.f32.xlu0 %v1912_v31  ;;  %v1173_v52 = vpack.c.bf16 %v1912_v31, %v1910_v44  ;;  %v1914_v53 = vpop.eup %1913  ;;  %v2611_v6 = vpop.permute.xlu1 %1077 }
 0x204   : > { %1923 = vpow2.f32 %v960_v28  ;;  %v2619_v29 = vpop.permute.xlu0 %1097  ;;  %v968_v28 = vld [vmem:[#allocation3 + $0x30] sm:$0xff] }
 0x205   : > { %1767 = vmatprep.mubr.bf16.mxu0 %v1173_v52  ;;  %1925 = vpow2.f32 %v832_v45  ;;  %v984_v51 = vmul.f32 %v2546_v42, %v968_v28  ;;  %v969_v52 = vld [vmem:[#allocation3 + $0x38] sm:$0xff]  ;;  %v1067_v28 = vld [vmem:[#allocation4 + $0x40] sm:$0xff] }
 0x206   : > { %v1916_v36 = vpop.eup %1915  ;;  %1927 = vpow2.f32 %v830_v49  ;;  %v985_v39 = vmul.f32 %v2570_v57, %v969_v52  ;;  %v973_v57 = vld [vmem:[#allocation3 + $0x58] sm:$0xff] }
 0x207   : > { %v1918_v37 = vpop.eup %1917  ;;  %v1177_v46 = vpack.c.bf16 %v1916_v36, %v1914_v53  ;;  %v2613_v11 = vpop.permute.xlu1 %1087 }
 0x208   : > { %1006 = vadd.xlane.f32.xlu1 %v1918_v37  ;;  %v2623_v61 = vpop.permute.xlu0 %1107 }
 0x209   : > { %1775 = vmatprep.mubr.bf16.mxu1 %v1177_v46 }
 0x20a   : > { %v1920_v48 = vpop.eup %1919 }
 0x20b   : > { %1008 = vadd.xlane.f32.xlu0 %v1920_v48  ;;  %v1174_v40 = vpack.c.bf16 %v1920_v48, %v1918_v37  ;;  %v1922_v55 = vpop.eup %1921  ;;  %v2617_v13 = vpop.permute.xlu1 %1092  ;;  %v971_v48 = vld [vmem:[#allocation3 + $0x48] sm:$0xff] }
 0x20c   : > { %1010 = vadd.xlane.f32.xlu1 %v1898_v24  ;;  %v2627_v24 = vpop.permute.xlu0 %1117  ;;  %v987_v42 = vmul.f32 %v2574_v50, %v971_v48  ;;  %v975_v50 = vld [vmem:[#allocation3 + $0x68] sm:$0xff] }
 0x20d   : > { %1768 = vmatmul.mubr.bf16.gmra.mrb[4].mxu0 %v1174_v40 }
 0x20e   : > { %v1924_v35 = vpop.eup %1923 }
 0x20f   : > { %1012 = vadd.xlane.f32.xlu0 %v1900_v60  ;;  %v1178_v41 = vpack.c.bf16 %v1924_v35, %v1922_v55  ;;  %v2605_v62 = vpop.eup %1925  ;;  %v2621_v0 = vpop.permute.xlu1 %1102 }
 0x210   : > { %1014 = vadd.xlane.f32.xlu1 %v1906_v22  ;;  %v2608_v63 = vpop.eup %1927  ;;  %v2631_v1 = vpop.permute.xlu0 %1127 }
 0x211   : > { %1776 = vmatmul.mubr.bf16.gmra.mrb[4].mxu1 %v1178_v41 }
 0x213   : > { %1016 = vadd.xlane.f32.xlu0 %v1908_v20  ;;  %v2625_v14 = vpop.permute.xlu1 %1112 }
 0x214   : > { %1018 = vadd.xlane.f32.xlu1 %v1914_v53  ;;  %v2635_v16 = vpop.permute.xlu0 %1137 }
 0x217   : > { %1020 = vadd.xlane.f32.xlu0 %v1916_v36  ;;  %v2629_v60 = vpop.permute.xlu1 %1122  ;;  %v970_v36 = vld [vmem:[#allocation3 + $0x40] sm:$0xff] }
 0x218   : > { %1022 = vadd.xlane.f32.xlu1 %v1922_v55  ;;  %v986_v46 = vmul.f32 %v2554_v47, %v970_v36 }
 0x21b   : > { %1024 = vadd.xlane.f32.xlu0 %v1924_v35  ;;  %v2633_v15 = vpop.permute.xlu1 %1132  ;;  %v972_v35 = vld [vmem:[#allocation3 + $0x50] sm:$0xff] }
 0x21c   : > { %v988_v45 = vmul.f32 %v2562_v54, %v972_v35 }
 0x21f   : > { %v2638_v7 = vpop.permute.xlu1 %1142 }
 0x229   : > { %1152 = vperm.xlu1 %1856, %v2605_v62  }
 0x231   : > { %1147 = vperm.xlu0 %1855, %v2608_v63  }
 0x27c   : > { %v995_v5 = vpop.xlane.xlu0 %994 }
 0x27d   : > { %v1026_v32 = vadd.f32 %v995_v5, %v978_v3  ;;  %v974_v5 = vld [vmem:[#allocation3 + $0x60] sm:$0xff] }
 0x27e   : > { %v990_v8 = vmul.f32 %v2568_v34, %v974_v5 }
 0x27f   : > { %1043 = vst.msk [vmem:[#allocation3] sm:$0xff] %vm1042_vm1, %v1026_v32  ;;  %v989_v32 = vmul.f32 %v2577_v58, %v973_v57  ;;  %v977_v58 = vld [vmem:[#allocation3 + $0x78] sm:$0xff]  ;;  %v1063_v57 = vld [vmem:[#allocation4 + $0x20] sm:$0xff] }
 0x280   : > { %v997_v9 = vpop.xlane.xlu1 %996  ;;  %v993_v34 = vmul.f32 %v2605_v62, %v977_v58  ;;  %v1159_v5 = vmul.f32 %v2619_v29, %v1063_v57 }
 0x281   : > { %v1027_v17 = vadd.f32 %v997_v9, %v979_v33 }
 0x283   : > { %1044 = vst.msk [vmem:[#allocation3 + $0x8] sm:$0xff] %vm1042_vm1, %v1027_v17  ;;  %v976_v17 = vld [vmem:[#allocation3 + $0x70] sm:$0xff] }
 0x285   : > { %v999_v19 = vpop.xlane.xlu0 %998 }
 0x286   : > { %v1028_v22 = vadd.f32 %v999_v19, %v980_v4  ;;  %v991_v4 = vmul.f32 %v2580_v59, %v975_v50  ;;  %v992_v19 = vmul.f32 %v2608_v63, %v976_v17  ;;  %v1061_v59 = vld [vmem:[#allocation4 + $0x10] sm:$0xff]  ;;  %v1074_v17 = vld [vmem:[#allocation4 + $0x78] sm:$0xff] }
 0x287   : > { %v1157_v63 = vmul.f32 %v2613_v11, %v1061_v59 }
 0x288   : > { %1045 = vst.msk [vmem:[#allocation3 + $0x10] sm:$0xff] %vm1042_vm1, %v1028_v22 }
 0x289   : > { %v1001_v20 = vpop.xlane.xlu0 %1000 }
 0x28a   : > { %v1029_v44 = vadd.f32 %v1001_v20, %v981_v38 }
 0x28c   : > { %1046 = vst.msk [vmem:[#allocation3 + $0x18] sm:$0xff] %vm1042_vm1, %v1029_v44 }
 0x28d   : > { %v1003_v26 = vpop.xlane.xlu1 %1002 }
 0x28e   : > { %v1030_v27 = vadd.f32 %v1003_v26, %v982_v21  ;;  %v1059_v21 = vld [vmem:[#allocation4] sm:$0xff]  ;;  %v1060_v26 = vld [vmem:[#allocation4 + $0x8] sm:$0xff] }
 0x28f   : > { %v1156_v52 = vmul.f32 %v2615_v18, %v1060_v26 }
 0x290   : > { %1047 = vst.msk [vmem:[#allocation3 + $0x20] sm:$0xff] %vm1042_vm1, %v1030_v27  ;;  %v1005_v43 = vpop.xlane.xlu0 %1004  ;;  %v1155_v27 = vmul.f32 %v2611_v6, %v1059_v21  ;;  %v1163_v6 = vmul.f32 %v2627_v24, %v1067_v28  ;;  %v1065_v24 = vld [vmem:[#allocation4 + $0x30] sm:$0xff]  ;;  %v1393_v28 = vld [vmem:[#allocation3 + $0x8] sm:$0xff] (!%p1726_p0) }
 0x291   : > { %v1031_v31 = vadd.f32 %v1005_v43, %v983_v30  ;;  %v1069_v30 = vld [vmem:[#allocation4 + $0x50] sm:$0xff] }
 0x293   : > { %1048 = vst.msk [vmem:[#allocation3 + $0x28] sm:$0xff] %vm1042_vm1, %v1031_v31  ;;  %v1158_v31 = vmul.f32 %v2617_v13, %v1062_v12 }
 0x295   : > { %v1007_v53 = vpop.xlane.xlu1 %1006 }
 0x296   : > { %v1032_v37 = vadd.f32 %v1007_v53, %v984_v51  ;;  %v1070_v53 = vld [vmem:[#allocation4 + $0x58] sm:$0xff] }
 0x297   : > { %v1166_v13 = vmul.f32 %v2633_v15, %v1070_v53  ;;  %v1161_v15 = vmul.f32 %v2623_v61, %v1065_v24 }
 0x298   : > { %1049 = vst.msk [vmem:[#allocation3 + $0x30] sm:$0xff] %vm1042_vm1, %v1032_v37  ;;  %v1009_v56 = vpop.xlane.xlu0 %1008 }
 0x299   : > { %v1011_v40 = vpop.xlane.xlu1 %1010  ;;  %v1033_v55 = vadd.f32 %v1009_v56, %v985_v39  ;;  %v1165_v39 = vmul.f32 %v2631_v1, %v1069_v30  ;;  %v2022_v30 = vmov (!%p1726_p0), 0  }
 0x29a   : > { %v1034_v41 = vadd.f32 %v1011_v40, %v986_v46  ;;  %v1068_v46 = vld [vmem:[#allocation4 + $0x48] sm:$0xff]  ;;  %1930 = vset.pattern.permute.xlu1 (!%p1726_p0), %v2022_v30  ;;  %1929 = vset.pattern.permute.xlu0 (!%p1726_p0), %v2022_v30 }
 0x29b   : > { %1050 = vst.msk [vmem:[#allocation3 + $0x38] sm:$0xff] %vm1042_vm1, %v1033_v55  ;;  %v1164_v18 = vmul.f32 %v2629_v60, %v1068_v46 }
 0x29c   : > { %1051 = vst.msk [vmem:[#allocation3 + $0x40] sm:$0xff] %vm1042_vm1, %v1034_v41  ;;  %v1013_v49 = vpop.xlane.xlu0 %1012 }
 0x29d   : > { %v1015_v2 = vpop.xlane.xlu1 %1014  ;;  %v1035_v3 = vadd.f32 %v1013_v49, %v987_v42 }
 0x29e   : > { %v1036_v47 = vadd.f32 %v1015_v2, %v988_v45  ;;  %v1066_v2 = vld [vmem:[#allocation4 + $0x38] sm:$0xff] }
 0x29f   : > { %1052 = vst.msk [vmem:[#allocation3 + $0x48] sm:$0xff] %vm1042_vm1, %v1035_v3  ;;  %v1064_v3 = vld [vmem:[#allocation4 + $0x28] sm:$0xff] }
 0x2a0   : > { %1053 = vst.msk [vmem:[#allocation3 + $0x50] sm:$0xff] %vm1042_vm1, %v1036_v47  ;;  %v1017_v33 = vpop.xlane.xlu0 %1016  ;;  %v1073_v47 = vld [vmem:[#allocation4 + $0x70] sm:$0xff] }
 0x2a1   : > { %v1019_v9 = vpop.xlane.xlu1 %1018  ;;  %v1037_v10 = vadd.f32 %v1017_v33, %v989_v32  ;;  %v1071_v33 = vld [vmem:[#allocation4 + $0x60] sm:$0xff] }
 0x2a2   : > { %v1038_v54 = vadd.f32 %v1019_v9, %v990_v8  ;;  %v1162_v8 = vmul.f32 %v2625_v14, %v1066_v2  ;;  %v1167_v29 = vmul.f32 %v2635_v16, %v1071_v33  ;;  %v1394_v16 = vld [vmem:[#allocation3 + $0x10] sm:$0xff] (!%p1726_p0) }
 0x2a3   : > { %1054 = vst.msk [vmem:[#allocation3 + $0x58] sm:$0xff] %vm1042_vm1, %v1037_v10  ;;  %v1160_v10 = vmul.f32 %v2621_v0, %v1064_v3 }
 0x2a4   : > { %1055 = vst.msk [vmem:[#allocation3 + $0x60] sm:$0xff] %vm1042_vm1, %v1038_v54  ;;  %v1021_v23 = vpop.xlane.xlu0 %1020 }
 0x2a5   : > { %v1023_v22 = vpop.xlane.xlu1 %1022  ;;  %v1039_v38 = vadd.f32 %v1021_v23, %v991_v4  ;;  %v1072_v23 = vld [vmem:[#allocation4 + $0x68] sm:$0xff] }
 0x2a6   : > { %v1040_v20 = vadd.f32 %v1023_v22, %v992_v19  ;;  %v1168_v0 = vmul.f32 %v2638_v7, %v1072_v23  ;;  %v1410_v7 = vmax.f32 (!%p1726_p0), %v1394_v16, 1e-30 }
 0x2a7   : > { %1056 = vst.msk [vmem:[#allocation3 + $0x68] sm:$0xff] %vm1042_vm1, %v1039_v38 }
 0x2a8   : > { %1057 = vst.msk [vmem:[#allocation3 + $0x70] sm:$0xff] %vm1042_vm1, %v1040_v20  ;;  %v1025_v25 = vpop.xlane.xlu0 %1024  ;;  %1931 = vrcp.f32 (!%p1726_p0), %v1410_v7 }
 0x2a9   : > { %v1041_v44 = vadd.f32 %v1025_v25, %v993_v34  ;;  %v1153_v54 = vpop.permute.xlu1 %1152 }
 0x2aa   : > { %v1170_v14 = vmul.f32 %v1153_v54, %v1074_v17 }
 0x2ab   : > { %1058 = vst.msk [vmem:[#allocation3 + $0x78] sm:$0xff] %vm1042_vm1, %v1041_v44  ;;  %v1404_v57 = vld [vmem:[#allocation3 + $0x60] sm:$0xff] (!%p1726_p0) }
 0x2ac   : > { %v1420_v3 = vmax.f32 (!%p1726_p0), %v1404_v57, 1e-30 }
 0x2b0   : > { %v1148_v60 = vpop.permute.xlu0 %1147 }
 0x2b1   : > { %v1169_v58 = vmul.f32 %v1148_v60, %v1073_v47  ;;  %v1406_v60 = vld [vmem:[#allocation3 + $0x70] sm:$0xff] (!%p1726_p0) }
 0x2b2   : > { %v1422_v33 = vmax.f32 (!%p1726_p0), %v1406_v60, 1e-30 }
 0x2d0   : > { %v1765_v43 = vpop.f32.mrb[0].mxu0 }
 0x2d1   : > { %v1342_v62 = vadd.f32 %v1765_v43, %v1157_v63  ;;  %v1277_v51 = vpop.f32.mrb[1].mxu0  ;;  %v1392_v63 = vld [vmem:[#allocation3] sm:$0xff] (!%p1726_p0) }
 0x2d2   : > { %v1340_v36 = vadd.f32 %v1277_v51, %v1155_v27  ;;  %v1766_v37 = vpop.f32.mrb[2].mxu0  ;;  %v1395_v27 = vld [vmem:[#allocation3 + $0x18] sm:$0xff] (!%p1726_p0)  ;;  %v1408_v43 = vmax.f32 (!%p1726_p0), %v1392_v63, 1e-30  ;;  %v1409_v51 = vmax.f32 (!%p1726_p0), %v1393_v28, 1e-30 }
 0x2d3   : > { %1358 = vst [vmem:[#allocation4 + $0x10] sm:$0xff] %v1342_v62  ;;  %v1343_v56 = vadd.f32 %v1766_v37, %v1158_v31  ;;  %v1280_v11 = vpop.f32.mrb[3].mxu0  ;;  %v1411_v31 = vmax.f32 (!%p1726_p0), %v1395_v27, 1e-30  ;;  %v1397_v62 = vld [vmem:[#allocation3 + $0x28] sm:$0xff] (!%p1726_p0)  ;;  %v1399_v37 = vld [vmem:[#allocation3 + $0x38] sm:$0xff] (!%p1726_p0) }
 0x2d4   : > { %1356 = vst [vmem:[#allocation4] sm:$0xff] %v1340_v36  ;;  %v1341_v48 = vadd.f32 %v1280_v11, %v1156_v52  ;;  %v1773_v40 = vpop.f32.mrb[0].mxu1  ;;  %v1396_v52 = vld [vmem:[#allocation3 + $0x20] sm:$0xff] (!%p1726_p0)  ;;  %1933 = vrcp.f32 (!%p1726_p0), %v1408_v43  ;;  %v1413_v53 = vmax.f32 (!%p1726_p0), %v1397_v62, 1e-30  ;;  %v1401_v11 = vld [vmem:[#allocation3 + $0x48] sm:$0xff] (!%p1726_p0) }
 0x2d5   : > { %1359 = vst [vmem:[#allocation4 + $0x18] sm:$0xff] %v1343_v56  ;;  %v1350_v55 = vadd.f32 %v1773_v40, %v1165_v39  ;;  %v1309_v35 = vpop.f32.mrb[1].mxu1  ;;  %1935 = vrcp.f32 (!%p1726_p0), %v1411_v31  ;;  %v1412_v36 = vmax.f32 (!%p1726_p0), %v1396_v52, 1e-30  ;;  %v1398_v39 = vld [vmem:[#allocation3 + $0x30] sm:$0xff] (!%p1726_p0) }
 0x2d6   : > { %1357 = vst [vmem:[#allocation4 + $0x8] sm:$0xff] %v1341_v48  ;;  %v1348_v41 = vadd.f32 %v1309_v35, %v1163_v6  ;;  %v1774_v42 = vpop.f32.mrb[2].mxu1  ;;  %1937 = vrcp.f32 (!%p1726_p0), %v1409_v51  ;;  %v1415_v46 = vmax.f32 (!%p1726_p0), %v1399_v37, 1e-30  ;;  %v1414_v56 = vmax.f32 (!%p1726_p0), %v1398_v39, 1e-30  ;;  %v1932_v48 = vpop.eup (!%p1726_p0), %1931 }
 0x2d7   : > { %1366 = vst [vmem:[#allocation4 + $0x50] sm:$0xff] %v1350_v55  ;;  %v1351_v1 = vadd.f32 %v1774_v42, %v1166_v13  ;;  %v1312_v45 = vpop.f32.mrb[3].mxu1  ;;  %1939 = vrcp.f32 (!%p1726_p0), %v1413_v53  ;;  %v1400_v6 = vld [vmem:[#allocation3 + $0x40] sm:$0xff] (!%p1726_p0)  ;;  %v1417_v40 = vmax.f32 (!%p1726_p0), %v1401_v11, 1e-30  ;;  %1468 = vperm.xlu1 (!%p1726_p0), %1930, %v1932_v48   ;;  %v1403_v35 = vld [vmem:[#allocation3 + $0x58] sm:$0xff] (!%p1726_p0) }
 0x2d8   : > { %1364 = vst [vmem:[#allocation4 + $0x40] sm:$0xff] %v1348_v41  ;;  %v1349_v49 = vadd.f32 %v1312_v45, %v1164_v18  ;;  %1941 = vrcp.f32 (!%p1726_p0), %v1412_v36  ;;  %v1416_v55 = vmax.f32 (!%p1726_p0), %v1400_v6, 1e-30  ;;  %v1402_v41 = vld [vmem:[#allocation3 + $0x50] sm:$0xff] (!%p1726_p0) }
 0x2d9   : > { %1367 = vst [vmem:[#allocation4 + $0x58] sm:$0xff] %v1351_v1  ;;  %1943 = vrcp.f32 (!%p1726_p0), %v1415_v46  ;;  %v1419_v1 = vmax.f32 (!%p1726_p0), %v1403_v35, 1e-30  ;;  %v1418_v45 = vmax.f32 (!%p1726_p0), %v1402_v41, 1e-30 }
 0x2da   : > { %1365 = vst [vmem:[#allocation4 + $0x48] sm:$0xff] %v1349_v49  ;;  %1945 = vrcp.f32 (!%p1726_p0), %v1414_v56  ;;  %v1405_v49 = vld [vmem:[#allocation3 + $0x68] sm:$0xff] (!%p1726_p0) }
 0x2db   : > { %1947 = vrcp.f32 (!%p1726_p0), %v1417_v40 }
 0x2dc   : > { %1949 = vrcp.f32 (!%p1726_p0), %v1416_v55 }
 0x2dd   : > { %1951 = vrcp.f32 (!%p1726_p0), %v1419_v1 }
 0x2de   : > { %v1934_v13 = vpop.eup (!%p1726_p0), %1933  ;;  %1953 = vrcp.f32 (!%p1726_p0), %v1418_v45 }
 0x2df   : > { %v1936_v18 = vpop.eup (!%p1726_p0), %1935  ;;  %1458 = vperm.xlu0 (!%p1726_p0), %1929, %v1934_v13   ;;  %v1432_v6 = vld [vmem:[#allocation4 + $0x40] sm:$0xff] (!%p1726_p0) }
 0x2e0   : > { %v1769_v32 = vpop.f32.mrb[4].mxu0  ;;  %v1938_v42 = vpop.eup (!%p1726_p0), %1937  ;;  %1473 = vperm.xlu1 (!%p1726_p0), %1930, %v1936_v18   ;;  %v1435_v18 = vld [vmem:[#allocation4 + $0x58] sm:$0xff] (!%p1726_p0) }
 0x2e1   : > { %v1346_v50 = vadd.f32 %v1769_v32, %v1161_v15  ;;  %v1293_v9 = vpop.f32.mrb[5].mxu0  ;;  %v1940_v24 = vpop.eup (!%p1726_p0), %1939  ;;  %v1421_v15 = vmax.f32 (!%p1726_p0), %v1405_v49, 1e-30  ;;  %v1433_v56 = vld [vmem:[#allocation4 + $0x48] sm:$0xff] (!%p1726_p0) }
 0x2e2   : > { %v1344_v4 = vadd.f32 %v1293_v9, %v1159_v5  ;;  %v1770_v19 = vpop.f32.mrb[6].mxu0  ;;  %v1942_v2 = vpop.eup (!%p1726_p0), %1941  ;;  %v1407_v5 = vld [vmem:[#allocation3 + $0x78] sm:$0xff] (!%p1726_p0) }
 0x2e3   : > { %1362 = vst [vmem:[#allocation4 + $0x30] sm:$0xff] %v1346_v50  ;;  %v1347_v61 = vadd.f32 %v1770_v19, %v1162_v8  ;;  %v1296_v22 = vpop.f32.mrb[7].mxu0  ;;  %1463 = vperm.xlu0 (!%p1726_p0), %1929, %v1938_v42   ;;  %v1944_v47 = vpop.eup (!%p1726_p0), %1943  ;;  %1955 = vrcp.f32 (!%p1726_p0), %v1421_v15  ;;  %v1423_v8 = vmax.f32 (!%p1726_p0), %v1407_v5, 1e-30  ;;  %v1434_v42 = vld [vmem:[#allocation4 + $0x50] sm:$0xff] (!%p1726_p0) }
 0x2e4   : > { %1360 = vst [vmem:[#allocation4 + $0x20] sm:$0xff] %v1344_v4  ;;  %v1345_v38 = vadd.f32 %v1296_v22, %v1160_v10  ;;  %v1777_v20 = vpop.f32.mrb[4].mxu1  ;;  %1391 = sbr.rel (%p1726_p0) target bundleno = 896 (0x380), region = 89  ;;  %1483 = vperm.xlu1 (!%p1726_p0), %1930, %v1940_v24   ;;  %v1946_v32 = vpop.eup (!%p1726_p0), %1945  ;;  %1957 = vrcp.f32 (!%p1726_p0), %v1420_v3  ;;  %v2689_v22 = vld [vmem:[%s2748_s4] ss:$0 sm:$0xff] (!%p1726_p0) }
 0x2e5   : > { %1363 = vst [vmem:[#allocation4 + $0x38] sm:$0xff] %v1347_v61  ;;  %v1354_v34 = vadd.f32 %v1777_v20, %v1169_v58  ;;  %v1325_v25 = vpop.f32.mrb[5].mxu1  ;;  %v1948_v50 = vpop.eup (!%p1726_p0), %1947  ;;  %1959 = vrcp.f32 (!%p1726_p0), %v1423_v8  ;;  %v1426_v58 = vld [vmem:[#allocation4 + $0x10] sm:$0xff] (!%p1726_p0)  ;;  %v1424_v61 = vld [vmem:[#allocation4] sm:$0xff] (!%p1726_p0) }
 0x2e6   : > { %1361 = vst [vmem:[#allocation4 + $0x28] sm:$0xff] %v1345_v38  ;;  %v1352_v44 = vadd.f32 %v1325_v25, %v1167_v29  ;;  %v1778_v59 = vpop.f32.mrb[6].mxu1  ;;  %v1950_v9 = vpop.eup (!%p1726_p0), %1949  ;;  %1961 = vrcp.f32 (!%p1726_p0), %v1422_v33 }
 0x2e7   : > { %1370 = vst [vmem:[#allocation4 + $0x70] sm:$0xff] %v1354_v34  ;;  %v1355_v21 = vadd.f32 %v1778_v59, %v1170_v14  ;;  %v1328_v12 = vpop.f32.mrb[7].mxu1  ;;  %1478 = vperm.xlu0 (!%p1726_p0), %1929, %v1942_v2   ;;  %v1952_v10 = vpop.eup (!%p1726_p0), %1951  ;;  %v1427_v34 = vld [vmem:[#allocation4 + $0x18] sm:$0xff] (!%p1726_p0) }
 0x2e8   : > { %1368 = vst [vmem:[#allocation4 + $0x60] sm:$0xff] %v1352_v44  ;;  %v1353_v26 = vadd.f32 %v1328_v12, %v1168_v0  ;;  %1493 = vperm.xlu1 (!%p1726_p0), %1930, %v1944_v47   ;;  %v1954_v17 = vpop.eup (!%p1726_p0), %1953  ;;  %v1425_v0 = vld [vmem:[#allocation4 + $0x8] sm:$0xff] (!%p1726_p0) }
 0x2e9   : > { %1371 = vst [vmem:[#allocation4 + $0x78] sm:$0xff] %v1355_v21 }
 0x2ea   : > { %1369 = vst [vmem:[#allocation4 + $0x68] sm:$0xff] %v1353_v26  ;;  %v1430_v52 = vld [vmem:[#allocation4 + $0x30] sm:$0xff] (!%p1726_p0) }
 0x2eb   : > { %1488 = vperm.xlu0 %1929, %v1946_v32   ;;  %v1428_v27 = vld [vmem:[#allocation4 + $0x20] sm:$0xff] }
 0x2ec   : > { %1503 = vperm.xlu1 %1930, %v1948_v50   ;;  %v1431_v62 = vld [vmem:[#allocation4 + $0x38] sm:$0xff] }
 0x2ed   : > { %v1956_v54 = vpop.eup %1955  ;;  %v1429_v16 = vld [vmem:[#allocation4 + $0x28] sm:$0xff] }
 0x2ee   : > { %v1958_v4 = vpop.eup %1957 }
 0x2ef   : > { %1498 = vperm.xlu0 %1929, %v1950_v9   ;;  %v1960_v19 = vpop.eup %1959  ;;  %v1436_v3 = vld [vmem:[#allocation4 + $0x60] sm:$0xff]  ;;  %v1438_v9 = vld [vmem:[#allocation4 + $0x70] sm:$0xff] }
 0x2f0   : > { %1513 = vperm.xlu1 %1930, %v1952_v10   ;;  %v1962_v23 = vpop.eup %1961  ;;  %v1439_v33 = vld [vmem:[#allocation4 + $0x78] sm:$0xff] }
 0x2f1   : > { %v1437_v2 = vld [vmem:[#allocation4 + $0x68] sm:$0xff] }
 0x2f3   : > { %1508 = vperm.xlu0 %1929, %v1954_v17  }
 0x2f4   : > { %1523 = vperm.xlu1 %1930, %v1956_v54  }
 0x2f7   : > { %1518 = vperm.xlu0 %1929, %v1958_v4  }
 0x2f8   : > { %1533 = vperm.xlu1 %1930, %v1960_v19  }
 0x2fb   : > { %1528 = vperm.xlu0 %1929, %v1962_v23  }
 0x356   : > { %v1469_v29 = vpop.permute.xlu1 %1468 }
 0x357   : > { %v1538_v38 = vmul.f32 %v1469_v29, %v1426_v58 }
 0x359   : > { %v1561_v25 = vadd.f32 %v2689_v22, %v1538_v38 }
 0x35b   : > { %1577 = vst [vmem:[%s2152_s13 + $0x10] sm:$0xff] %v1561_v25 }
 0x35e   : > { %v1459_v20 = vpop.permute.xlu0 %1458 }
 0x35f   : > { %v1536_v14 = vmul.f32 %v1459_v20, %v1424_v61  ;;  %v1474_v59 = vpop.permute.xlu1 %1473 }
 0x360   : > { %v1539_v21 = vmul.f32 %v1474_v59, %v1427_v34 }
 0x361   : > { %v1559_v44 = vadd.f32 %v2689_v22, %v1536_v14 }
 0x362   : > { %v1464_v12 = vpop.permute.xlu0 %1463  ;;  %v1562_v63 = vadd.f32 %v2689_v22, %v1539_v21 }
 0x363   : > { %1575 = vst [vmem:[%s2152_s13] sm:$0xff] %v1559_v44  ;;  %v1537_v26 = vmul.f32 %v1464_v12, %v1425_v0  ;;  %v1484_v7 = vpop.permute.xlu1 %1483 }
 0x364   : > { %1578 = vst [vmem:[%s2152_s13 + $0x18] sm:$0xff] %v1562_v63  ;;  %v1541_v43 = vmul.f32 %v1484_v7, %v1429_v16 }
 0x365   : > { %v1560_v30 = vadd.f32 %v2689_v22, %v1537_v26 }
 0x366   : > { %v1479_v31 = vpop.permute.xlu0 %1478  ;;  %v1564_v51 = vadd.f32 %v2689_v22, %v1541_v43 }
 0x367   : > { %1576 = vst [vmem:[%s2152_s13 + $0x8] sm:$0xff] %v1560_v30  ;;  %v1540_v28 = vmul.f32 %v1479_v31, %v1428_v27  ;;  %v1494_v36 = vpop.permute.xlu1 %1493 }
 0x368   : > { %1580 = vst [vmem:[%s2152_s13 + $0x28] sm:$0xff] %v1564_v51  ;;  %v1543_v37 = vmul.f32 %v1494_v36, %v1431_v62 }
 0x369   : > { %v1563_v53 = vadd.f32 %v2689_v22, %v1540_v28 }
 0x36a   : > { %v1489_v39 = vpop.permute.xlu0 %1488  ;;  %v1566_v11 = vadd.f32 %v2689_v22, %v1543_v37 }
 0x36b   : > { %1579 = vst [vmem:[%s2152_s13 + $0x20] sm:$0xff] %v1563_v53  ;;  %v1542_v46 = vmul.f32 %v1489_v39, %v1430_v52  ;;  %v1504_v40 = vpop.permute.xlu1 %1503 }
 0x36c   : > { %1582 = vst [vmem:[%s2152_s13 + $0x38] sm:$0xff] %v1566_v11  ;;  %v1545_v13 = vmul.f32 %v1504_v40, %v1433_v56 }
 0x36d   : > { %v1565_v48 = vadd.f32 %v2689_v22, %v1542_v46 }
 0x36e   : > { %v1499_v55 = vpop.permute.xlu0 %1498  ;;  %v1568_v41 = vadd.f32 %v2689_v22, %v1545_v13 }
 0x36f   : > { %1581 = vst [vmem:[%s2152_s13 + $0x30] sm:$0xff] %v1565_v48  ;;  %v1544_v35 = vmul.f32 %v1499_v55, %v1432_v6  ;;  %v1514_v45 = vpop.permute.xlu1 %1513 }
 0x370   : > { %1584 = vst [vmem:[%s2152_s13 + $0x48] sm:$0xff] %v1568_v41  ;;  %v1547_v49 = vmul.f32 %v1514_v45, %v1435_v18 }
 0x371   : > { %v1567_v1 = vadd.f32 %v2689_v22, %v1544_v35 }
 0x372   : > { %v1509_v24 = vpop.permute.xlu0 %1508  ;;  %v1570_v15 = vadd.f32 %v2689_v22, %v1547_v49 }
 0x373   : > { %1583 = vst [vmem:[%s2152_s13 + $0x40] sm:$0xff] %v1567_v1  ;;  %v1546_v57 = vmul.f32 %v1509_v24, %v1434_v42  ;;  %v1524_v47 = vpop.permute.xlu1 %1523 }
 0x374   : > { %1586 = vst [vmem:[%s2152_s13 + $0x58] sm:$0xff] %v1570_v15  ;;  %v1549_v60 = vmul.f32 %v1524_v47, %v1437_v2 }
 0x375   : > { %v1569_v5 = vadd.f32 %v2689_v22, %v1546_v57 }
 0x376   : > { %v1519_v32 = vpop.permute.xlu0 %1518  ;;  %v1572_v50 = vadd.f32 %v2689_v22, %v1549_v60 }
 0x377   : > { %1585 = vst [vmem:[%s2152_s13 + $0x50] sm:$0xff] %v1569_v5  ;;  %v1548_v8 = vmul.f32 %v1519_v32, %v1436_v3  ;;  %v1534_v17 = vpop.permute.xlu1 %1533 }
 0x378   : > { %1588 = vst [vmem:[%s2152_s13 + $0x68] sm:$0xff] %v1572_v50  ;;  %v1551_v54 = vmul.f32 %v1534_v17, %v1439_v33 }
 0x379   : > { %v1571_v10 = vadd.f32 %v2689_v22, %v1548_v8 }
 0x37a   : > { %v1529_v4 = vpop.permute.xlu0 %1528  ;;  %v1574_v23 = vadd.f32 %v2689_v22, %v1551_v54 }
 0x37b   : > { %1587 = vst [vmem:[%s2152_s13 + $0x60] sm:$0xff] %v1571_v10  ;;  %v1550_v19 = vmul.f32 %v1529_v4, %v1438_v9 }
 0x37c   : > { %1590 = vst [vmem:[%s2152_s13 + $0x78] sm:$0xff] %v1574_v23 }
 0x37d   : > { %v1573_v58 = vadd.f32 %v2689_v22, %v1550_v19 }
 0x37f   : > { %1589 = vst [vmem:[%s2152_s13 + $0x70] sm:$0xff] %v1573_v58 }
 0x380 PF: > { %s15_s24 = sadd.s32 1, %s2017_s24   ;;  %s2776_s18 = smov %s1997_s19 }
 0x381   : > { %p12_p1 = scmp.ge.s32.totalorder %s15_s24, 6   ;;  %s2777_s19 = smov %s2104_s6 }
 0x382   : > { %s2778_s20 = smov %s2009_s22  ;;  %s2779_s21 = smov %s2013_s23 }
 0x383   : > { %s2780_s22 = smov %s2783_s25  ;;  %s2781_s23 = smov %s2787_s26 }
 0x384   :  { %14 = sbr.rel (!%p12_p1) target bundleno = 4 (0x4), region = 133 }

</bundles_post_ra>
